<compile_context>
chip_gen: v7x
topology: tpu7x:2x2x1
jax: 0.10.0
libtpu: 0.0.40
codegen_flags: <defaults>
</compile_context>

<pallas_src>
import jax
import jax.numpy as jnp
import numpy as np
from jax import lax
from jax.experimental import pallas as pl
from jax.experimental.pallas import tpu as pltpu


# ------------------------------ Pallas kernel --------------------------------

def _mnist_cnn_kernel(x_ref, m1_ref, b1_ref, m2_ref, b2_ref, m3_ref, b3_ref,
                      pool_ref, out_ref):
    """conv1+ReLU -> conv2+ReLU -> conv3+ReLU -> 4x4 avg-pool, fully in VMEM."""
    f32 = jnp.float32
    tb = out_ref.shape[0]

    def conv_layer(a2d, h, m_ref, b_ref, ho):
        # a2d: (h*tb, W*Cin) bf16, row (i*tb + b) = image-row i of batch elem b.
        # m_ref: (3, W*Cin, Wo*Cout) bf16 per-kernel-row tap matrices.
        wc = a2d.shape[-1]
        zrow = jnp.zeros((tb, wc), a2d.dtype)
        apad = jnp.concatenate([zrow, a2d, zrow], axis=0)       # ((h+2)*tb, W*Cin)
        n = m_ref.shape[-1]
        acc = jnp.zeros((ho * tb, n), f32)
        for ki in range(3):                                     # 3 kernel rows
            # Output row io reads padded input row 2*io + ki; row-block offsets
            # are multiples of tb (tile-aligned), so this is pure tile copies.
            slab = jnp.concatenate(
                [apad[(2 * io + ki) * tb:(2 * io + ki + 1) * tb, :]
                 for io in range(ho)], axis=0)                  # (ho*tb, W*Cin)
            acc = acc + jnp.dot(slab, m_ref[ki],
                                preferred_element_type=f32)
        # f32 bias + ReLU epilogue (v5e-safe).
        return jnp.maximum(acc + b_ref[...], 0.0)               # (ho*tb, Wo*Cout)

    x = x_ref[...]                                              # (28*tb, 28) bf16
    a1 = conv_layer(x, 28, m1_ref, b1_ref, 14).astype(jnp.bfloat16)   # (14*tb, 224)
    a2 = conv_layer(a1, 14, m2_ref, b2_ref, 7).astype(jnp.bfloat16)   # (7*tb, 112)
    a3 = conv_layer(a2, 7, m3_ref, b3_ref, 4)                          # (4*tb, 40) f32

    # 4x4 average pool: sum the 4 output rows (tile-aligned row blocks), then
    # the 4 column groups via a tiny constant matmul carrying the 1/16 factor.
    rowsum = (a3[0 * tb:1 * tb] + a3[1 * tb:2 * tb]
              + a3[2 * tb:3 * tb] + a3[3 * tb:4 * tb])          # (tb, 40) f32
    pooled = jnp.dot(rowsum, pool_ref[...], preferred_element_type=f32)
    out_ref[...] = pooled.astype(out_ref.dtype)                 # (tb, 10)


# ------------------------------ glue (JAX) -----------------------------------

def _stride2_taps(width, w_out):
    """sel[kj, j, jo] = 1 iff input column j == 2*jo + kj - 1 (pad cols dropped)."""
    sel = np.zeros((3, width, w_out), np.float32)
    for kj in range(3):
        for jo in range(w_out):
            j = 2 * jo + kj - 1
            if 0 <= j < width:
                sel[kj, j, jo] = 1.0
    return sel


def _conv_as_tap_matmuls(w, bias, height, width):
    """Fold kernel columns + channels + width padding of a 3x3/stride2/pad1 conv
    into 3 dense matrices (one per kernel row).

    m[ki, j*Cin + ci, jo*Cout + co] = w[co, ci, ki, kj] where j = 2*jo + kj - 1.
    brow[0, jo*Cout + co] = bias[co].
    """
    c_out, c_in = w.shape[0], w.shape[1]
    h_out = (height - 1) // 2 + 1
    w_out = (width - 1) // 2 + 1
    sel = jnp.asarray(_stride2_taps(width, w_out))              # (3, W, Wo)
    m = jnp.einsum('ocik,kjp->ijcpo', w.astype(jnp.float32), sel)
    m = m.reshape(3, width * c_in, w_out * c_out).astype(jnp.bfloat16)
    brow = jnp.tile(bias.astype(jnp.float32), (w_out,)).reshape(1, w_out * c_out)
    return m, brow, h_out, w_out


def mnist_cnn_forward(xb, params, tile_b=32):
    """Equivalent of Mnist_CNN.forward.  xb: (B, 784) (or (B, 1, 28, 28)) float."""
    assert tile_b % 8 == 0, "tile_b must be a multiple of 8 (sublane tiling)"
    x = xb.reshape(-1, 28, 28).astype(jnp.float32)
    b = x.shape[0]
    nb = -(-b // tile_b)
    bp = nb * tile_b
    if bp != b:
        x = jnp.concatenate([x, jnp.zeros((bp - b, 28, 28), x.dtype)], axis=0)

    # Lane-dense staging: xt[t, i*tile_b + n, j] = image row i, column j of
    # batch element t*tile_b + n (bf16 MXU operand).  Pure layout plumbing.
    xt = (x.reshape(nb, tile_b, 28, 28)
            .transpose(0, 2, 1, 3)
            .reshape(nb, 28 * tile_b, 28)
            .astype(jnp.bfloat16))

    m1, b1, _, _ = _conv_as_tap_matmuls(params["w1"], params["b1"], 28, 28)
    m2, b2, _, _ = _conv_as_tap_matmuls(params["w2"], params["b2"], 14, 14)
    m3, b3, _, _ = _conv_as_tap_matmuls(params["w3"], params["b3"], 7, 7)
    # (40, 10) pooling matrix: sums the 4 column groups and applies 1/16.
    pool = jnp.asarray(np.tile(np.eye(10, dtype=np.float32), (4, 1)) / 16.0)

    flops = 2 * bp * 3 * (14 * 28 * 224 + 7 * 224 * 112 + 4 * 112 * 40)
    bytes_accessed = (xt.size * 2 + (m1.size + m2.size + m3.size) * 2
                      + (b1.size + b2.size + b3.size + pool.size) * 4
                      + bp * 10 * 4)

    out = pl.pallas_call(
        _mnist_cnn_kernel,
        out_shape=jax.ShapeDtypeStruct((bp, 10), jnp.float32),
        grid_spec=pltpu.PrefetchScalarGridSpec(
            num_scalar_prefetch=0,
            grid=(nb,),
            in_specs=[
                pl.BlockSpec((None, 28 * tile_b, 28), lambda i: (i, 0, 0)),
                pl.BlockSpec((3, 28, 224), lambda i: (0, 0, 0)),
                pl.BlockSpec((1, 224), lambda i: (0, 0)),
                pl.BlockSpec((3, 224, 112), lambda i: (0, 0, 0)),
                pl.BlockSpec((1, 112), lambda i: (0, 0)),
                pl.BlockSpec((3, 112, 40), lambda i: (0, 0, 0)),
                pl.BlockSpec((1, 40), lambda i: (0, 0)),
                pl.BlockSpec((40, 10), lambda i: (0, 0)),
            ],
            out_specs=pl.BlockSpec((tile_b, 10), lambda i: (i, 0)),
        ),
        compiler_params=pltpu.CompilerParams(
            dimension_semantics=("parallel",),
            vmem_limit_bytes=32 * 1024 * 1024),
        cost_estimate=pl.CostEstimate(
            flops=int(flops), transcendentals=0,
            bytes_accessed=int(bytes_accessed)),
    )(xt, m1, b1, m2, b2, m3, b3, pool)
    return out[:b]


# ------------------------- deterministic parameters --------------------------

def init_params(key):
    def conv_init(k, cout, cin, ksz):
        kw, kb = jax.random.split(k)
        fan_in = cin * ksz * ksz
        bound = 1.0 / jnp.sqrt(fan_in)
        w = jax.random.uniform(kw, (cout, cin, ksz, ksz), jnp.float32, -bound, bound)
        b = jax.random.uniform(kb, (cout,), jnp.float32, -bound, bound)
        return w, b

    k1, k2, k3 = jax.random.split(key, 3)
    w1, b1 = conv_init(k1, 16, 1, 3)
    w2, b2 = conv_init(k2, 16, 16, 3)
    w3, b3 = conv_init(k3, 10, 16, 3)
    return {"w1": w1, "b1": b1, "w2": w2, "b2": b2, "w3": w3, "b3": b3}


# ------------------------------ reference check ------------------------------

def _reference_forward(xb, params):
    x = xb.reshape(-1, 1, 28, 28)

    def conv(x, w, b):
        y = lax.conv_general_dilated(
            x, w, window_strides=(2, 2), padding=((1, 1), (1, 1)),
            dimension_numbers=("NCHW", "OIHW", "NCHW"),
            precision=lax.Precision.HIGHEST)
        return jax.nn.relu(y + b.reshape(1, -1, 1, 1))

    x = conv(x, params["w1"], params["b1"])
    x = conv(x, params["w2"], params["b2"])
    x = conv(x, params["w3"], params["b3"])
    return jnp.mean(x, axis=(2, 3))


if __name__ == "__main__":
    key = jax.random.PRNGKey(0)
    k_params, k_x = jax.random.split(key)
    params = init_params(k_params)

    B = 64                                   # matches bs=64 in the PyTorch spec
    x = jax.random.normal(k_x, (B, 784), dtype=jnp.float32)

    fwd = jax.jit(mnist_cnn_forward)
    out = jax.block_until_ready(fwd(x, params))
    assert out.shape == (B, 10), out.shape

    ref = _reference_forward(x, params)
    max_err = float(jnp.max(jnp.abs(out - ref)))
    assert jnp.allclose(out, ref, atol=5e-2, rtol=5e-2), max_err  # bf16 MXU operands

    print("KERNEL_OK")
</pallas_src>

<mosaic_0001>
module attributes {stable_mosaic.version = 11 : i64} {
  func.func @_mnist_cnn_kernel(%arg0: i32, %arg1: memref<1x896x28xbf16, #tpu.memory_space<vmem>>, %arg2: memref<3x28x224xbf16, #tpu.memory_space<vmem>>, %arg3: memref<1x224xf32, #tpu.memory_space<vmem>>, %arg4: memref<3x224x112xbf16, #tpu.memory_space<vmem>>, %arg5: memref<1x112xf32, #tpu.memory_space<vmem>>, %arg6: memref<3x112x40xbf16, #tpu.memory_space<vmem>>, %arg7: memref<1x40xf32, #tpu.memory_space<vmem>>, %arg8: memref<40x10xf32, #tpu.memory_space<vmem>>, %arg9: memref<32x10xf32, #tpu.memory_space<vmem>>) attributes {dimension_semantics = [#tpu.dimension_semantics<parallel>], iteration_bounds = array<i64: 2>, scalar_prefetch = 0 : i64, scratch_operands = 0 : i64, tpu.core_type = #tpu.core_type<tc>, window_params = [{transform_indices = @transform_0, window_bounds = array<i64: 1, 896, 28>}, {pipeline_mode = #tpu.pipeline_mode<synchronous>, transform_indices = @transform_1, window_bounds = array<i64: 3, 28, 224>}, {pipeline_mode = #tpu.pipeline_mode<synchronous>, transform_indices = @transform_2, window_bounds = array<i64: 1, 224>}, {pipeline_mode = #tpu.pipeline_mode<synchronous>, transform_indices = @transform_3, window_bounds = array<i64: 3, 224, 112>}, {pipeline_mode = #tpu.pipeline_mode<synchronous>, transform_indices = @transform_4, window_bounds = array<i64: 1, 112>}, {pipeline_mode = #tpu.pipeline_mode<synchronous>, transform_indices = @transform_5, window_bounds = array<i64: 3, 112, 40>}, {pipeline_mode = #tpu.pipeline_mode<synchronous>, transform_indices = @transform_6, window_bounds = array<i64: 1, 40>}, {pipeline_mode = #tpu.pipeline_mode<synchronous>, transform_indices = @transform_7, window_bounds = array<i64: 40, 10>}, {transform_indices = @transform_8, window_bounds = array<i64: 32, 10>}]} {
    %c0 = arith.constant 0 : index
    %c0_0 = arith.constant 0 : index
    %c0_1 = arith.constant 0 : index
    %0 = vector.load %arg1[%c0, %c0_0, %c0_1] : memref<1x896x28xbf16, #tpu.memory_space<vmem>>, vector<1x896x28xbf16>
    %1 = vector.shape_cast %0 : vector<1x896x28xbf16> to vector<896x28xbf16>
    %cst = arith.constant 0.000000e+00 : bf16
    %2 = vector.broadcast %cst : bf16 to vector<32x28xbf16>
    %3 = tpu.concatenate %2, %1, %2 in 0 : vector<32x28xbf16>, vector<896x28xbf16>, vector<32x28xbf16> -> vector<960x28xbf16>
    %cst_2 = arith.constant 0.000000e+00 : f32
    %4 = vector.broadcast %cst_2 : f32 to vector<448x224xf32>
    %5 = vector.extract_strided_slice %3 {offsets = [0, 0], sizes = [32, 28], strides = [1, 1]} : vector<960x28xbf16> to vector<32x28xbf16>
    %6 = vector.extract_strided_slice %3 {offsets = [64, 0], sizes = [32, 28], strides = [1, 1]} : vector<960x28xbf16> to vector<32x28xbf16>
    %7 = vector.extract_strided_slice %3 {offsets = [128, 0], sizes = [32, 28], strides = [1, 1]} : vector<960x28xbf16> to vector<32x28xbf16>
    %8 = vector.extract_strided_slice %3 {offsets = [192, 0], sizes = [32, 28], strides = [1, 1]} : vector<960x28xbf16> to vector<32x28xbf16>
    %9 = vector.extract_strided_slice %3 {offsets = [256, 0], sizes = [32, 28], strides = [1, 1]} : vector<960x28xbf16> to vector<32x28xbf16>
    %10 = vector.extract_strided_slice %3 {offsets = [320, 0], sizes = [32, 28], strides = [1, 1]} : vector<960x28xbf16> to vector<32x28xbf16>
    %11 = vector.extract_strided_slice %3 {offsets = [384, 0], sizes = [32, 28], strides = [1, 1]} : vector<960x28xbf16> to vector<32x28xbf16>
    %12 = vector.extract_strided_slice %3 {offsets = [448, 0], sizes = [32, 28], strides = [1, 1]} : vector<960x28xbf16> to vector<32x28xbf16>
    %13 = vector.extract_strided_slice %3 {offsets = [512, 0], sizes = [32, 28], strides = [1, 1]} : vector<960x28xbf16> to vector<32x28xbf16>
    %14 = vector.extract_strided_slice %3 {offsets = [576, 0], sizes = [32, 28], strides = [1, 1]} : vector<960x28xbf16> to vector<32x28xbf16>
    %15 = vector.extract_strided_slice %3 {offsets = [640, 0], sizes = [32, 28], strides = [1, 1]} : vector<960x28xbf16> to vector<32x28xbf16>
    %16 = vector.extract_strided_slice %3 {offsets = [704, 0], sizes = [32, 28], strides = [1, 1]} : vector<960x28xbf16> to vector<32x28xbf16>
    %17 = vector.extract_strided_slice %3 {offsets = [768, 0], sizes = [32, 28], strides = [1, 1]} : vector<960x28xbf16> to vector<32x28xbf16>
    %18 = vector.extract_strided_slice %3 {offsets = [832, 0], sizes = [32, 28], strides = [1, 1]} : vector<960x28xbf16> to vector<32x28xbf16>
    %19 = tpu.concatenate %5, %6, %7, %8, %9, %10, %11, %12, %13, %14, %15, %16, %17, %18 in 0 : vector<32x28xbf16>, vector<32x28xbf16>, vector<32x28xbf16>, vector<32x28xbf16>, vector<32x28xbf16>, vector<32x28xbf16>, vector<32x28xbf16>, vector<32x28xbf16>, vector<32x28xbf16>, vector<32x28xbf16>, vector<32x28xbf16>, vector<32x28xbf16>, vector<32x28xbf16>, vector<32x28xbf16> -> vector<448x28xbf16>
    %c0_3 = arith.constant 0 : index
    %c0_4 = arith.constant 0 : index
    %c0_5 = arith.constant 0 : index
    %20 = vector.load %arg2[%c0_3, %c0_4, %c0_5] : memref<3x28x224xbf16, #tpu.memory_space<vmem>>, vector<1x28x224xbf16>
    %21 = vector.shape_cast %20 : vector<1x28x224xbf16> to vector<28x224xbf16>
    %cst_6 = arith.constant dense<0.000000e+00> : vector<448x224xf32>
    %22 = tpu.matmul %19, %21, %cst_6 {dimension_numbers = #tpu.dot_dimension_numbers<[1], [0], [0], [1], [0, 0, 1, 1], [], []>} : vector<448x28xbf16>, vector<28x224xbf16>, vector<448x224xf32> -> vector<448x224xf32>
    %23 = arith.addf %4, %22 : vector<448x224xf32>
    %24 = vector.extract_strided_slice %3 {offsets = [32, 0], sizes = [32, 28], strides = [1, 1]} : vector<960x28xbf16> to vector<32x28xbf16>
    %25 = vector.extract_strided_slice %3 {offsets = [96, 0], sizes = [32, 28], strides = [1, 1]} : vector<960x28xbf16> to vector<32x28xbf16>
    %26 = vector.extract_strided_slice %3 {offsets = [160, 0], sizes = [32, 28], strides = [1, 1]} : vector<960x28xbf16> to vector<32x28xbf16>
    %27 = vector.extract_strided_slice %3 {offsets = [224, 0], sizes = [32, 28], strides = [1, 1]} : vector<960x28xbf16> to vector<32x28xbf16>
    %28 = vector.extract_strided_slice %3 {offsets = [288, 0], sizes = [32, 28], strides = [1, 1]} : vector<960x28xbf16> to vector<32x28xbf16>
    %29 = vector.extract_strided_slice %3 {offsets = [352, 0], sizes = [32, 28], strides = [1, 1]} : vector<960x28xbf16> to vector<32x28xbf16>
    %30 = vector.extract_strided_slice %3 {offsets = [416, 0], sizes = [32, 28], strides = [1, 1]} : vector<960x28xbf16> to vector<32x28xbf16>
    %31 = vector.extract_strided_slice %3 {offsets = [480, 0], sizes = [32, 28], strides = [1, 1]} : vector<960x28xbf16> to vector<32x28xbf16>
    %32 = vector.extract_strided_slice %3 {offsets = [544, 0], sizes = [32, 28], strides = [1, 1]} : vector<960x28xbf16> to vector<32x28xbf16>
    %33 = vector.extract_strided_slice %3 {offsets = [608, 0], sizes = [32, 28], strides = [1, 1]} : vector<960x28xbf16> to vector<32x28xbf16>
    %34 = vector.extract_strided_slice %3 {offsets = [672, 0], sizes = [32, 28], strides = [1, 1]} : vector<960x28xbf16> to vector<32x28xbf16>
    %35 = vector.extract_strided_slice %3 {offsets = [736, 0], sizes = [32, 28], strides = [1, 1]} : vector<960x28xbf16> to vector<32x28xbf16>
    %36 = vector.extract_strided_slice %3 {offsets = [800, 0], sizes = [32, 28], strides = [1, 1]} : vector<960x28xbf16> to vector<32x28xbf16>
    %37 = vector.extract_strided_slice %3 {offsets = [864, 0], sizes = [32, 28], strides = [1, 1]} : vector<960x28xbf16> to vector<32x28xbf16>
    %38 = tpu.concatenate %24, %25, %26, %27, %28, %29, %30, %31, %32, %33, %34, %35, %36, %37 in 0 : vector<32x28xbf16>, vector<32x28xbf16>, vector<32x28xbf16>, vector<32x28xbf16>, vector<32x28xbf16>, vector<32x28xbf16>, vector<32x28xbf16>, vector<32x28xbf16>, vector<32x28xbf16>, vector<32x28xbf16>, vector<32x28xbf16>, vector<32x28xbf16>, vector<32x28xbf16>, vector<32x28xbf16> -> vector<448x28xbf16>
    %c1 = arith.constant 1 : index
    %c0_7 = arith.constant 0 : index
    %c0_8 = arith.constant 0 : index
    %39 = vector.load %arg2[%c1, %c0_7, %c0_8] : memref<3x28x224xbf16, #tpu.memory_space<vmem>>, vector<1x28x224xbf16>
    %40 = vector.shape_cast %39 : vector<1x28x224xbf16> to vector<28x224xbf16>
    %cst_9 = arith.constant dense<0.000000e+00> : vector<448x224xf32>
    %41 = tpu.matmul %38, %40, %cst_9 {dimension_numbers = #tpu.dot_dimension_numbers<[1], [0], [0], [1], [0, 0, 1, 1], [], []>} : vector<448x28xbf16>, vector<28x224xbf16>, vector<448x224xf32> -> vector<448x224xf32>
    %42 = arith.addf %23, %41 : vector<448x224xf32>
    %43 = vector.extract_strided_slice %3 {offsets = [64, 0], sizes = [32, 28], strides = [1, 1]} : vector<960x28xbf16> to vector<32x28xbf16>
    %44 = vector.extract_strided_slice %3 {offsets = [128, 0], sizes = [32, 28], strides = [1, 1]} : vector<960x28xbf16> to vector<32x28xbf16>
    %45 = vector.extract_strided_slice %3 {offsets = [192, 0], sizes = [32, 28], strides = [1, 1]} : vector<960x28xbf16> to vector<32x28xbf16>
    %46 = vector.extract_strided_slice %3 {offsets = [256, 0], sizes = [32, 28], strides = [1, 1]} : vector<960x28xbf16> to vector<32x28xbf16>
    %47 = vector.extract_strided_slice %3 {offsets = [320, 0], sizes = [32, 28], strides = [1, 1]} : vector<960x28xbf16> to vector<32x28xbf16>
    %48 = vector.extract_strided_slice %3 {offsets = [384, 0], sizes = [32, 28], strides = [1, 1]} : vector<960x28xbf16> to vector<32x28xbf16>
    %49 = vector.extract_strided_slice %3 {offsets = [448, 0], sizes = [32, 28], strides = [1, 1]} : vector<960x28xbf16> to vector<32x28xbf16>
    %50 = vector.extract_strided_slice %3 {offsets = [512, 0], sizes = [32, 28], strides = [1, 1]} : vector<960x28xbf16> to vector<32x28xbf16>
    %51 = vector.extract_strided_slice %3 {offsets = [576, 0], sizes = [32, 28], strides = [1, 1]} : vector<960x28xbf16> to vector<32x28xbf16>
    %52 = vector.extract_strided_slice %3 {offsets = [640, 0], sizes = [32, 28], strides = [1, 1]} : vector<960x28xbf16> to vector<32x28xbf16>
    %53 = vector.extract_strided_slice %3 {offsets = [704, 0], sizes = [32, 28], strides = [1, 1]} : vector<960x28xbf16> to vector<32x28xbf16>
    %54 = vector.extract_strided_slice %3 {offsets = [768, 0], sizes = [32, 28], strides = [1, 1]} : vector<960x28xbf16> to vector<32x28xbf16>
    %55 = vector.extract_strided_slice %3 {offsets = [832, 0], sizes = [32, 28], strides = [1, 1]} : vector<960x28xbf16> to vector<32x28xbf16>
    %56 = vector.extract_strided_slice %3 {offsets = [896, 0], sizes = [32, 28], strides = [1, 1]} : vector<960x28xbf16> to vector<32x28xbf16>
    %57 = tpu.concatenate %43, %44, %45, %46, %47, %48, %49, %50, %51, %52, %53, %54, %55, %56 in 0 : vector<32x28xbf16>, vector<32x28xbf16>, vector<32x28xbf16>, vector<32x28xbf16>, vector<32x28xbf16>, vector<32x28xbf16>, vector<32x28xbf16>, vector<32x28xbf16>, vector<32x28xbf16>, vector<32x28xbf16>, vector<32x28xbf16>, vector<32x28xbf16>, vector<32x28xbf16>, vector<32x28xbf16> -> vector<448x28xbf16>
    %c2 = arith.constant 2 : index
    %c0_10 = arith.constant 0 : index
    %c0_11 = arith.constant 0 : index
    %58 = vector.load %arg2[%c2, %c0_10, %c0_11] : memref<3x28x224xbf16, #tpu.memory_space<vmem>>, vector<1x28x224xbf16>
    %59 = vector.shape_cast %58 : vector<1x28x224xbf16> to vector<28x224xbf16>
    %cst_12 = arith.constant dense<0.000000e+00> : vector<448x224xf32>
    %60 = tpu.matmul %57, %59, %cst_12 {dimension_numbers = #tpu.dot_dimension_numbers<[1], [0], [0], [1], [0, 0, 1, 1], [], []>} : vector<448x28xbf16>, vector<28x224xbf16>, vector<448x224xf32> -> vector<448x224xf32>
    %61 = arith.addf %42, %60 : vector<448x224xf32>
    %c0_13 = arith.constant 0 : index
    %c0_14 = arith.constant 0 : index
    %62 = vector.load %arg3[%c0_13, %c0_14] : memref<1x224xf32, #tpu.memory_space<vmem>>, vector<1x224xf32>
    %63 = vector.broadcast %62 : vector<1x224xf32> to vector<448x224xf32>
    %64 = arith.addf %61, %63 : vector<448x224xf32>
    %cst_15 = arith.constant 0.000000e+00 : f32
    %65 = vector.broadcast %cst_15 : f32 to vector<448x224xf32>
    %66 = arith.maximumf %64, %65 : vector<448x224xf32>
    %67 = arith.truncf %66 : vector<448x224xf32> to vector<448x224xbf16>
    %cst_16 = arith.constant 0.000000e+00 : bf16
    %68 = vector.broadcast %cst_16 : bf16 to vector<32x224xbf16>
    %69 = tpu.concatenate %68, %67, %68 in 0 : vector<32x224xbf16>, vector<448x224xbf16>, vector<32x224xbf16> -> vector<512x224xbf16>
    %cst_17 = arith.constant 0.000000e+00 : f32
    %70 = vector.broadcast %cst_17 : f32 to vector<224x112xf32>
    %71 = vector.extract_strided_slice %69 {offsets = [0, 0], sizes = [32, 224], strides = [1, 1]} : vector<512x224xbf16> to vector<32x224xbf16>
    %72 = vector.extract_strided_slice %69 {offsets = [64, 0], sizes = [32, 224], strides = [1, 1]} : vector<512x224xbf16> to vector<32x224xbf16>
    %73 = vector.extract_strided_slice %69 {offsets = [128, 0], sizes = [32, 224], strides = [1, 1]} : vector<512x224xbf16> to vector<32x224xbf16>
    %74 = vector.extract_strided_slice %69 {offsets = [192, 0], sizes = [32, 224], strides = [1, 1]} : vector<512x224xbf16> to vector<32x224xbf16>
    %75 = vector.extract_strided_slice %69 {offsets = [256, 0], sizes = [32, 224], strides = [1, 1]} : vector<512x224xbf16> to vector<32x224xbf16>
    %76 = vector.extract_strided_slice %69 {offsets = [320, 0], sizes = [32, 224], strides = [1, 1]} : vector<512x224xbf16> to vector<32x224xbf16>
    %77 = vector.extract_strided_slice %69 {offsets = [384, 0], sizes = [32, 224], strides = [1, 1]} : vector<512x224xbf16> to vector<32x224xbf16>
    %78 = tpu.concatenate %71, %72, %73, %74, %75, %76, %77 in 0 : vector<32x224xbf16>, vector<32x224xbf16>, vector<32x224xbf16>, vector<32x224xbf16>, vector<32x224xbf16>, vector<32x224xbf16>, vector<32x224xbf16> -> vector<224x224xbf16>
    %c0_18 = arith.constant 0 : index
    %c0_19 = arith.constant 0 : index
    %c0_20 = arith.constant 0 : index
    %79 = vector.load %arg4[%c0_18, %c0_19, %c0_20] : memref<3x224x112xbf16, #tpu.memory_space<vmem>>, vector<1x224x112xbf16>
    %80 = vector.shape_cast %79 : vector<1x224x112xbf16> to vector<224x112xbf16>
    %cst_21 = arith.constant dense<0.000000e+00> : vector<224x112xf32>
    %81 = tpu.matmul %78, %80, %cst_21 {dimension_numbers = #tpu.dot_dimension_numbers<[1], [0], [0], [1], [0, 0, 1, 1], [], []>} : vector<224x224xbf16>, vector<224x112xbf16>, vector<224x112xf32> -> vector<224x112xf32>
    %82 = arith.addf %70, %81 : vector<224x112xf32>
    %83 = vector.extract_strided_slice %69 {offsets = [32, 0], sizes = [32, 224], strides = [1, 1]} : vector<512x224xbf16> to vector<32x224xbf16>
    %84 = vector.extract_strided_slice %69 {offsets = [96, 0], sizes = [32, 224], strides = [1, 1]} : vector<512x224xbf16> to vector<32x224xbf16>
    %85 = vector.extract_strided_slice %69 {offsets = [160, 0], sizes = [32, 224], strides = [1, 1]} : vector<512x224xbf16> to vector<32x224xbf16>
    %86 = vector.extract_strided_slice %69 {offsets = [224, 0], sizes = [32, 224], strides = [1, 1]} : vector<512x224xbf16> to vector<32x224xbf16>
    %87 = vector.extract_strided_slice %69 {offsets = [288, 0], sizes = [32, 224], strides = [1, 1]} : vector<512x224xbf16> to vector<32x224xbf16>
    %88 = vector.extract_strided_slice %69 {offsets = [352, 0], sizes = [32, 224], strides = [1, 1]} : vector<512x224xbf16> to vector<32x224xbf16>
    %89 = vector.extract_strided_slice %69 {offsets = [416, 0], sizes = [32, 224], strides = [1, 1]} : vector<512x224xbf16> to vector<32x224xbf16>
    %90 = tpu.concatenate %83, %84, %85, %86, %87, %88, %89 in 0 : vector<32x224xbf16>, vector<32x224xbf16>, vector<32x224xbf16>, vector<32x224xbf16>, vector<32x224xbf16>, vector<32x224xbf16>, vector<32x224xbf16> -> vector<224x224xbf16>
    %c1_22 = arith.constant 1 : index
    %c0_23 = arith.constant 0 : index
    %c0_24 = arith.constant 0 : index
    %91 = vector.load %arg4[%c1_22, %c0_23, %c0_24] : memref<3x224x112xbf16, #tpu.memory_space<vmem>>, vector<1x224x112xbf16>
    %92 = vector.shape_cast %91 : vector<1x224x112xbf16> to vector<224x112xbf16>
    %cst_25 = arith.constant dense<0.000000e+00> : vector<224x112xf32>
    %93 = tpu.matmul %90, %92, %cst_25 {dimension_numbers = #tpu.dot_dimension_numbers<[1], [0], [0], [1], [0, 0, 1, 1], [], []>} : vector<224x224xbf16>, vector<224x112xbf16>, vector<224x112xf32> -> vector<224x112xf32>
    %94 = arith.addf %82, %93 : vector<224x112xf32>
    %95 = vector.extract_strided_slice %69 {offsets = [64, 0], sizes = [32, 224], strides = [1, 1]} : vector<512x224xbf16> to vector<32x224xbf16>
    %96 = vector.extract_strided_slice %69 {offsets = [128, 0], sizes = [32, 224], strides = [1, 1]} : vector<512x224xbf16> to vector<32x224xbf16>
    %97 = vector.extract_strided_slice %69 {offsets = [192, 0], sizes = [32, 224], strides = [1, 1]} : vector<512x224xbf16> to vector<32x224xbf16>
    %98 = vector.extract_strided_slice %69 {offsets = [256, 0], sizes = [32, 224], strides = [1, 1]} : vector<512x224xbf16> to vector<32x224xbf16>
    %99 = vector.extract_strided_slice %69 {offsets = [320, 0], sizes = [32, 224], strides = [1, 1]} : vector<512x224xbf16> to vector<32x224xbf16>
    %100 = vector.extract_strided_slice %69 {offsets = [384, 0], sizes = [32, 224], strides = [1, 1]} : vector<512x224xbf16> to vector<32x224xbf16>
    %101 = vector.extract_strided_slice %69 {offsets = [448, 0], sizes = [32, 224], strides = [1, 1]} : vector<512x224xbf16> to vector<32x224xbf16>
    %102 = tpu.concatenate %95, %96, %97, %98, %99, %100, %101 in 0 : vector<32x224xbf16>, vector<32x224xbf16>, vector<32x224xbf16>, vector<32x224xbf16>, vector<32x224xbf16>, vector<32x224xbf16>, vector<32x224xbf16> -> vector<224x224xbf16>
    %c2_26 = arith.constant 2 : index
    %c0_27 = arith.constant 0 : index
    %c0_28 = arith.constant 0 : index
    %103 = vector.load %arg4[%c2_26, %c0_27, %c0_28] : memref<3x224x112xbf16, #tpu.memory_space<vmem>>, vector<1x224x112xbf16>
    %104 = vector.shape_cast %103 : vector<1x224x112xbf16> to vector<224x112xbf16>
    %cst_29 = arith.constant dense<0.000000e+00> : vector<224x112xf32>
    %105 = tpu.matmul %102, %104, %cst_29 {dimension_numbers = #tpu.dot_dimension_numbers<[1], [0], [0], [1], [0, 0, 1, 1], [], []>} : vector<224x224xbf16>, vector<224x112xbf16>, vector<224x112xf32> -> vector<224x112xf32>
    %106 = arith.addf %94, %105 : vector<224x112xf32>
    %c0_30 = arith.constant 0 : index
    %c0_31 = arith.constant 0 : index
    %107 = vector.load %arg5[%c0_30, %c0_31] : memref<1x112xf32, #tpu.memory_space<vmem>>, vector<1x112xf32>
    %108 = vector.broadcast %107 : vector<1x112xf32> to vector<224x112xf32>
    %109 = arith.addf %106, %108 : vector<224x112xf32>
    %cst_32 = arith.constant 0.000000e+00 : f32
    %110 = vector.broadcast %cst_32 : f32 to vector<224x112xf32>
    %111 = arith.maximumf %109, %110 : vector<224x112xf32>
    %112 = arith.truncf %111 : vector<224x112xf32> to vector<224x112xbf16>
    %cst_33 = arith.constant 0.000000e+00 : bf16
    %113 = vector.broadcast %cst_33 : bf16 to vector<32x112xbf16>
    %114 = tpu.concatenate %113, %112, %113 in 0 : vector<32x112xbf16>, vector<224x112xbf16>, vector<32x112xbf16> -> vector<288x112xbf16>
    %cst_34 = arith.constant 0.000000e+00 : f32
    %115 = vector.broadcast %cst_34 : f32 to vector<128x40xf32>
    %116 = vector.extract_strided_slice %114 {offsets = [0, 0], sizes = [32, 112], strides = [1, 1]} : vector<288x112xbf16> to vector<32x112xbf16>
    %117 = vector.extract_strided_slice %114 {offsets = [64, 0], sizes = [32, 112], strides = [1, 1]} : vector<288x112xbf16> to vector<32x112xbf16>
    %118 = vector.extract_strided_slice %114 {offsets = [128, 0], sizes = [32, 112], strides = [1, 1]} : vector<288x112xbf16> to vector<32x112xbf16>
    %119 = vector.extract_strided_slice %114 {offsets = [192, 0], sizes = [32, 112], strides = [1, 1]} : vector<288x112xbf16> to vector<32x112xbf16>
    %120 = tpu.concatenate %116, %117, %118, %119 in 0 : vector<32x112xbf16>, vector<32x112xbf16>, vector<32x112xbf16>, vector<32x112xbf16> -> vector<128x112xbf16>
    %c0_35 = arith.constant 0 : index
    %c0_36 = arith.constant 0 : index
    %c0_37 = arith.constant 0 : index
    %121 = vector.load %arg6[%c0_35, %c0_36, %c0_37] : memref<3x112x40xbf16, #tpu.memory_space<vmem>>, vector<1x112x40xbf16>
    %122 = vector.shape_cast %121 : vector<1x112x40xbf16> to vector<112x40xbf16>
    %cst_38 = arith.constant dense<0.000000e+00> : vector<128x40xf32>
    %123 = tpu.matmul %120, %122, %cst_38 {dimension_numbers = #tpu.dot_dimension_numbers<[1], [0], [0], [1], [0, 0, 1, 1], [], []>} : vector<128x112xbf16>, vector<112x40xbf16>, vector<128x40xf32> -> vector<128x40xf32>
    %124 = arith.addf %115, %123 : vector<128x40xf32>
    %125 = vector.extract_strided_slice %114 {offsets = [32, 0], sizes = [32, 112], strides = [1, 1]} : vector<288x112xbf16> to vector<32x112xbf16>
    %126 = vector.extract_strided_slice %114 {offsets = [96, 0], sizes = [32, 112], strides = [1, 1]} : vector<288x112xbf16> to vector<32x112xbf16>
    %127 = vector.extract_strided_slice %114 {offsets = [160, 0], sizes = [32, 112], strides = [1, 1]} : vector<288x112xbf16> to vector<32x112xbf16>
    %128 = vector.extract_strided_slice %114 {offsets = [224, 0], sizes = [32, 112], strides = [1, 1]} : vector<288x112xbf16> to vector<32x112xbf16>
    %129 = tpu.concatenate %125, %126, %127, %128 in 0 : vector<32x112xbf16>, vector<32x112xbf16>, vector<32x112xbf16>, vector<32x112xbf16> -> vector<128x112xbf16>
    %c1_39 = arith.constant 1 : index
    %c0_40 = arith.constant 0 : index
    %c0_41 = arith.constant 0 : index
    %130 = vector.load %arg6[%c1_39, %c0_40, %c0_41] : memref<3x112x40xbf16, #tpu.memory_space<vmem>>, vector<1x112x40xbf16>
    %131 = vector.shape_cast %130 : vector<1x112x40xbf16> to vector<112x40xbf16>
    %cst_42 = arith.constant dense<0.000000e+00> : vector<128x40xf32>
    %132 = tpu.matmul %129, %131, %cst_42 {dimension_numbers = #tpu.dot_dimension_numbers<[1], [0], [0], [1], [0, 0, 1, 1], [], []>} : vector<128x112xbf16>, vector<112x40xbf16>, vector<128x40xf32> -> vector<128x40xf32>
    %133 = arith.addf %124, %132 : vector<128x40xf32>
    %134 = vector.extract_strided_slice %114 {offsets = [64, 0], sizes = [32, 112], strides = [1, 1]} : vector<288x112xbf16> to vector<32x112xbf16>
    %135 = vector.extract_strided_slice %114 {offsets = [128, 0], sizes = [32, 112], strides = [1, 1]} : vector<288x112xbf16> to vector<32x112xbf16>
    %136 = vector.extract_strided_slice %114 {offsets = [192, 0], sizes = [32, 112], strides = [1, 1]} : vector<288x112xbf16> to vector<32x112xbf16>
    %137 = vector.extract_strided_slice %114 {offsets = [256, 0], sizes = [32, 112], strides = [1, 1]} : vector<288x112xbf16> to vector<32x112xbf16>
    %138 = tpu.concatenate %134, %135, %136, %137 in 0 : vector<32x112xbf16>, vector<32x112xbf16>, vector<32x112xbf16>, vector<32x112xbf16> -> vector<128x112xbf16>
    %c2_43 = arith.constant 2 : index
    %c0_44 = arith.constant 0 : index
    %c0_45 = arith.constant 0 : index
    %139 = vector.load %arg6[%c2_43, %c0_44, %c0_45] : memref<3x112x40xbf16, #tpu.memory_space<vmem>>, vector<1x112x40xbf16>
    %140 = vector.shape_cast %139 : vector<1x112x40xbf16> to vector<112x40xbf16>
    %cst_46 = arith.constant dense<0.000000e+00> : vector<128x40xf32>
    %141 = tpu.matmul %138, %140, %cst_46 {dimension_numbers = #tpu.dot_dimension_numbers<[1], [0], [0], [1], [0, 0, 1, 1], [], []>} : vector<128x112xbf16>, vector<112x40xbf16>, vector<128x40xf32> -> vector<128x40xf32>
    %142 = arith.addf %133, %141 : vector<128x40xf32>
    %c0_47 = arith.constant 0 : index
    %c0_48 = arith.constant 0 : index
    %143 = vector.load %arg7[%c0_47, %c0_48] : memref<1x40xf32, #tpu.memory_space<vmem>>, vector<1x40xf32>
    %144 = vector.broadcast %143 : vector<1x40xf32> to vector<128x40xf32>
    %145 = arith.addf %142, %144 : vector<128x40xf32>
    %cst_49 = arith.constant 0.000000e+00 : f32
    %146 = vector.broadcast %cst_49 : f32 to vector<128x40xf32>
    %147 = arith.maximumf %145, %146 : vector<128x40xf32>
    %148 = vector.extract_strided_slice %147 {offsets = [0, 0], sizes = [32, 40], strides = [1, 1]} : vector<128x40xf32> to vector<32x40xf32>
    %149 = vector.extract_strided_slice %147 {offsets = [32, 0], sizes = [32, 40], strides = [1, 1]} : vector<128x40xf32> to vector<32x40xf32>
    %150 = arith.addf %148, %149 : vector<32x40xf32>
    %151 = vector.extract_strided_slice %147 {offsets = [64, 0], sizes = [32, 40], strides = [1, 1]} : vector<128x40xf32> to vector<32x40xf32>
    %152 = arith.addf %150, %151 : vector<32x40xf32>
    %153 = vector.extract_strided_slice %147 {offsets = [96, 0], sizes = [32, 40], strides = [1, 1]} : vector<128x40xf32> to vector<32x40xf32>
    %154 = arith.addf %152, %153 : vector<32x40xf32>
    %c0_50 = arith.constant 0 : index
    %c0_51 = arith.constant 0 : index
    %155 = vector.load %arg8[%c0_50, %c0_51] : memref<40x10xf32, #tpu.memory_space<vmem>>, vector<40x10xf32>
    %cst_52 = arith.constant dense<0.000000e+00> : vector<32x10xf32>
    %156 = tpu.matmul %154, %155, %cst_52 {dimension_numbers = #tpu.dot_dimension_numbers<[1], [0], [0], [1], [0, 0, 1, 1], [], []>} : vector<32x40xf32>, vector<40x10xf32>, vector<32x10xf32> -> vector<32x10xf32>
    %c0_53 = arith.constant 0 : index
    %c0_54 = arith.constant 0 : index
    %157 = vector.load %arg9[%c0_53, %c0_54] : memref<32x10xf32, #tpu.memory_space<vmem>>, vector<32x10xf32>
    tpu.vector_store %arg9[%c0_53, %c0_54], %156 {strides = array<i32>} : memref<32x10xf32, #tpu.memory_space<vmem>>, vector<32x10xf32>,
    return
  }
  func.func @transform_0(%arg0: i32) -> (i32, i32, i32) {
    %c0_i32 = arith.constant 0 : i32
    %c0_i32_0 = arith.constant 0 : i32
    %c0_i32_1 = arith.constant 0 : i32
    return %arg0, %c0_i32, %c0_i32_0 : i32, i32, i32
  }
  func.func @transform_1(%arg0: i32) -> (i32, i32, i32) {
    %c0_i32 = arith.constant 0 : i32
    %c0_i32_0 = arith.constant 0 : i32
    %c0_i32_1 = arith.constant 0 : i32
    %c0_i32_2 = arith.constant 0 : i32
    return %c0_i32, %c0_i32_0, %c0_i32_1 : i32, i32, i32
  }
  func.func @transform_2(%arg0: i32) -> (i32, i32) {
    %c0_i32 = arith.constant 0 : i32
    %c0_i32_0 = arith.constant 0 : i32
    %c0_i32_1 = arith.constant 0 : i32
    return %c0_i32, %c0_i32_0 : i32, i32
  }
  func.func @transform_3(%arg0: i32) -> (i32, i32, i32) {
    %c0_i32 = arith.constant 0 : i32
    %c0_i32_0 = arith.constant 0 : i32
    %c0_i32_1 = arith.constant 0 : i32
    %c0_i32_2 = arith.constant 0 : i32
    return %c0_i32, %c0_i32_0, %c0_i32_1 : i32, i32, i32
  }
  func.func @transform_4(%arg0: i32) -> (i32, i32) {
    %c0_i32 = arith.constant 0 : i32
    %c0_i32_0 = arith.constant 0 : i32
    %c0_i32_1 = arith.constant 0 : i32
    return %c0_i32, %c0_i32_0 : i32, i32
  }
  func.func @transform_5(%arg0: i32) -> (i32, i32, i32) {
    %c0_i32 = arith.constant 0 : i32
    %c0_i32_0 = arith.constant 0 : i32
    %c0_i32_1 = arith.constant 0 : i32
    %c0_i32_2 = arith.constant 0 : i32
    return %c0_i32, %c0_i32_0, %c0_i32_1 : i32, i32, i32
  }
  func.func @transform_6(%arg0: i32) -> (i32, i32) {
    %c0_i32 = arith.constant 0 : i32
    %c0_i32_0 = arith.constant 0 : i32
    %c0_i32_1 = arith.constant 0 : i32
    return %c0_i32, %c0_i32_0 : i32, i32
  }
  func.func @transform_7(%arg0: i32) -> (i32, i32) {
    %c0_i32 = arith.constant 0 : i32
    %c0_i32_0 = arith.constant 0 : i32
    %c0_i32_1 = arith.constant 0 : i32
    return %c0_i32, %c0_i32_0 : i32, i32
  }
  func.func @transform_8(%arg0: i32) -> (i32, i32) {
    %c0_i32 = arith.constant 0 : i32
    %c0_i32_0 = arith.constant 0 : i32
    return %arg0, %c0_i32 : i32, i32
  }
}

</mosaic_0001>

<bundles_post_ra>
// kernel: tile.18
= control target key start
LH: loop header
LB: loop body
LE: loop exit
PB: predicated region body
PF: predicated region fallthrough
CT: control target
= control target key end

     0   :  { %s28_s0 = inlined_call_operand.vmem [shape: f32[16], index: 0, kind: input, shape index: {}]   ;;  %s29_s1 = inlined_call_operand.vmem [shape: f32[14,16], index: 1, kind: output, shape index: {}]  }
   0x1   :  { %v4_v0 = vld [vmem:[%s28_s0] ss:$0 sm:$0xff] }
   0x2   :  { %5 = vst [vmem:[%s29_s1] sm:$0xff] %v4_v0  ;;  %8 = vst [vmem:[%s29_s1 + $0x8] sm:$0xff] %v4_v0 }

// kernel: tile.19
= control target key start
LH: loop header
LB: loop body
LE: loop exit
PB: predicated region body
PF: predicated region fallthrough
CT: control target
= control target key end

     0   :  { %s19_s8 = smov 3  ;;  %s79_s9 = smov 112   ;;  %vm4_vm0 = vcmask 130048   ;;  %vm10_vm1 = vcmask 1048448   ;;  %vm16_vm2 = vcmask 917248   ;;  %vm23_vm3 = vcmask 786048   ;;  %s126_s0 = inlined_call_operand.vmem [shape: f32[14,16], index: 0, kind: input, shape index: {}]   ;;  %s127_s1 = inlined_call_operand.vmem [shape: f32[1,224], index: 1, kind: output, shape index: {}]  }
   0x1   :  { %v64_v0 = vld [vmem:[%s126_s0 + $0x7] sm:$0x1]   ;;  %v66_v1 = vld [vmem:[%s126_s0 + $0x5] ss:$8 sm:%s19_s8]   ;;  %s80_s12 = smov 80   ;;  %s26_s15 = smov 3 }
   0x2   :  { %8 = vrot.lane.b32.xlu0 %v64_v0, %s79_s9  ;;  %21 = vrot.lane.b32.xlu1 %v66_v1, %s80_s12  ;;  %v65_v2 = vld [vmem:[%s126_s0 + $0x6] sm:$0x1]   ;;  %s33_s18 = smov 3  ;;  %s40_s19 = smov 3  ;;  %vm30_vm4 = vcmask 654848   ;;  %vm37_vm5 = vcmask 523648  }
   0x3   :  { %v67_v3 = vld [vmem:[%s126_s0 + $0x4] ss:$8 sm:%s26_s15]   ;;  %s81_s20 = smov 96   ;;  %s82_s21 = smov 64   ;;  %v68_v4 = vld [vmem:[%s126_s0 + $0x3] ss:$8 sm:%s33_s18]  }
   0x4   :  { %s2_s24 = smov 3  ;;  %v69_v5 = vld [vmem:[%s126_s0 + $0x2] ss:$8 sm:%s40_s19]   ;;  %s47_s27 = smov 3  ;;  %vm44_vm6 = vcmask 392448   ;;  %vm51_vm7 = vcmask 261248  }
   0x5   :  { %v3_v6 = vld [vmem:[%s126_s0] ss:$8 sm:%s2_s24]   ;;  %s83_s30 = smov 48   ;;  %s84_s2 = smov 32   ;;  %v70_v7 = vld [vmem:[%s126_s0 + $0x1] ss:$8 sm:%s47_s27]  }
   0x6   :  { %14 = vrot.lane.b32.xlu0 %v65_v2, %s81_s20  ;;  %28 = vrot.lane.b32.xlu1 %v67_v3, %s82_s21  ;;  %5 = vst.msk [vmem:[#allocation0] ss:$8 sm:$0x3] %vm4_vm0, %v3_v6   ;;  %s85_s0 = smov 16  }
   0xa   :  { %35 = vrot.lane.b32.xlu0 %v68_v4, %s83_s30  ;;  %42 = vrot.lane.b32.xlu1 %v69_v5, %s84_s2 }
   0xe   :  { %49 = vrot.lane.b32.xlu0 %v70_v7, %s85_s0 }
  0x74   :  { %v9_v8 = vpop.permute.xlu0 %8   ;;  %v22_v9 = vpop.permute.xlu1 %21  }
  0x75   :  { %11 = vst.msk [vmem:[#allocation0] sm:$0x1] %vm10_vm1, %v9_v8  }
  0x78   :  { %v15_v10 = vpop.permute.xlu0 %14   ;;  %v29_v11 = vpop.permute.xlu1 %28  }
  0x79   :  { %17 = vst.msk [vmem:[#allocation0] sm:$0x1] %vm16_vm2, %v15_v10  }
  0x7a   :  { %24 = vst.msk [vmem:[#allocation0] ss:$8 sm:$0x3] %vm23_vm3, %v22_v9  }
  0x7b   :  { %31 = vst.msk [vmem:[#allocation0] ss:$8 sm:$0x3] %vm30_vm4, %v29_v11  }
  0x7c   :  { %v36_v12 = vpop.permute.xlu0 %35   ;;  %v43_v13 = vpop.permute.xlu1 %42  }
  0x7d   :  { %38 = vst.msk [vmem:[#allocation0] ss:$8 sm:$0x3] %vm37_vm5, %v36_v12  }
  0x7e   :  { %45 = vst.msk [vmem:[#allocation0] ss:$8 sm:$0x3] %vm44_vm6, %v43_v13  }
  0x80   :  { %v50_v14 = vpop.permute.xlu0 %49  }
  0x81   :  { %52 = vst.msk [vmem:[#allocation0] ss:$8 sm:$0x3] %vm51_vm7, %v50_v14  }
  0x88   :  { %v56_v15 = vld [vmem:[#allocation0] sm:$0x1]  ;;  %v60_v16 = vld [vmem:[#allocation0 + $0x8] sm:$0x1] }
  0x89   :  { %58 = vst [vmem:[%s127_s1] sm:$0x1] %v56_v15  ;;  %71 = vst [vmem:[%s127_s1 + $0x1] sm:$0x1] %v60_v16 }

// kernel: tile.23
= control target key start
LH: loop header
LB: loop body
LE: loop exit
PB: predicated region body
PF: predicated region fallthrough
CT: control target
= control target key end

     0   :  { %s22_s0 = inlined_call_operand.vmem [shape: f32[16], index: 0, kind: input, shape index: {}]   ;;  %s23_s1 = inlined_call_operand.vmem [shape: f32[7,16], index: 1, kind: output, shape index: {}]  }
   0x1   :  { %v4_v0 = vld [vmem:[%s22_s0] ss:$0 sm:$0xff] }
   0x2   :  { %5 = vst [vmem:[%s23_s1] sm:$0xff] %v4_v0 }

// kernel: tile.24
= control target key start
LH: loop header
LB: loop body
LE: loop exit
PB: predicated region body
PF: predicated region fallthrough
CT: control target
= control target key end

     0   :  { %s59_s10 = smov 96   ;;  %s60_s11 = smov 64   ;;  %vm3_vm0 = vcmask 130048   ;;  %vm9_vm1 = vcmask 917248   ;;  %vm15_vm2 = vcmask 786048   ;;  %vm21_vm3 = vcmask 654848   ;;  %s99_s0 = inlined_call_operand.vmem [shape: f32[7,16], index: 0, kind: input, shape index: {}]   ;;  %s100_s1 = inlined_call_operand.vmem [shape: f32[1,112], index: 1, kind: output, shape index: {}]  }
   0x1   :  { %v47_v0 = vld [vmem:[%s99_s0 + $0x6] sm:$0x1]   ;;  %v49_v1 = vld [vmem:[%s99_s0 + $0x4] sm:$0x1]   ;;  %v48_v2 = vld [vmem:[%s99_s0 + $0x5] sm:$0x1]  }
   0x2   :  { %7 = vrot.lane.b32.xlu0 %v47_v0, %s59_s10  ;;  %19 = vrot.lane.b32.xlu1 %v49_v1, %s60_s11  ;;  %v50_v3 = vld [vmem:[%s99_s0 + $0x3] sm:$0x1]   ;;  %v2_v4 = vld [vmem:[%s99_s0] sm:$0x1]   ;;  %s61_s18 = smov 80   ;;  %s62_s19 = smov 48  }
   0x3   :  { %4 = vst.msk [vmem:[#allocation0] sm:$0x1] %vm3_vm0, %v2_v4   ;;  %v51_v5 = vld [vmem:[%s99_s0 + $0x2] sm:$0x1]   ;;  %v52_v6 = vld [vmem:[%s99_s0 + $0x1] sm:$0x1]  }
   0x4   :  { %s63_s0 = smov 32   ;;  %s64_s24 = smov 16   ;;  %vm27_vm4 = vcmask 523648   ;;  %vm33_vm5 = vcmask 392448   ;;  %vm39_vm6 = vcmask 261248  }
   0x6   :  { %13 = vrot.lane.b32.xlu0 %v48_v2, %s61_s18  ;;  %25 = vrot.lane.b32.xlu1 %v50_v3, %s62_s19 }
   0xa   :  { %31 = vrot.lane.b32.xlu0 %v51_v5, %s63_s0  ;;  %37 = vrot.lane.b32.xlu1 %v52_v6, %s64_s24 }
  0x74   :  { %v8_v7 = vpop.permute.xlu0 %7   ;;  %v20_v8 = vpop.permute.xlu1 %19  }
  0x75   :  { %10 = vst.msk [vmem:[#allocation0] sm:$0x1] %vm9_vm1, %v8_v7  }
  0x78   :  { %v14_v9 = vpop.permute.xlu0 %13   ;;  %v26_v10 = vpop.permute.xlu1 %25  }
  0x79   :  { %16 = vst.msk [vmem:[#allocation0] sm:$0x1] %vm15_vm2, %v14_v9  }
  0x7a   :  { %22 = vst.msk [vmem:[#allocation0] sm:$0x1] %vm21_vm3, %v20_v8  }
  0x7b   :  { %28 = vst.msk [vmem:[#allocation0] sm:$0x1] %vm27_vm4, %v26_v10  }
  0x7c   :  { %v32_v11 = vpop.permute.xlu0 %31   ;;  %v38_v12 = vpop.permute.xlu1 %37  }
  0x7d   :  { %34 = vst.msk [vmem:[#allocation0] sm:$0x1] %vm33_vm5, %v32_v11  }
  0x7e   :  { %40 = vst.msk [vmem:[#allocation0] sm:$0x1] %vm39_vm6, %v38_v12  }
  0x85   :  { %v44_v13 = vld [vmem:[#allocation0] sm:$0x1] }
  0x86   :  { %46 = vst [vmem:[%s100_s1] sm:$0x1] %v44_v13 }

// kernel: tile.28
= control target key start
LH: loop header
LB: loop body
LE: loop exit
PB: predicated region body
PF: predicated region fallthrough
CT: control target
= control target key end

     0   :  { %s22_s0 = inlined_call_operand.vmem [shape: f32[10], index: 0, kind: input, shape index: {}]   ;;  %s23_s1 = inlined_call_operand.vmem [shape: f32[4,10], index: 1, kind: output, shape index: {}]  }
   0x1   :  { %v4_v0 = vld [vmem:[%s22_s0] ss:$0 sm:$0xff] }
   0x2   :  { %5 = vst [vmem:[%s23_s1] sm:$0xf] %v4_v0 }

// kernel: tile.29
= control target key start
LH: loop header
LB: loop body
LE: loop exit
PB: predicated region body
PF: predicated region fallthrough
CT: control target
= control target key end

     0   :  { %vm7_vm0 = vcmask 80896   ;;  %s37_s8 = smov 10   ;;  %s38_s9 = smov 20   ;;  %vm13_vm1 = vcmask 326896   ;;  %vm19_vm2 = vcmask 244896   ;;  %vm25_vm3 = vcmask 162896   ;;  %s55_s0 = inlined_call_operand.vmem [shape: f32[4,10], index: 0, kind: input, shape index: {}]   ;;  %s56_s1 = inlined_call_operand.vmem [shape: f32[1,40], index: 1, kind: output, shape index: {}]  }
   0x1   :  { %v4_v0 = vld [vmem:[%s55_s0] sm:$0xf]  ;;  %s36_s0 = smov 30  }
   0x2   :  { %5 = vst [vmem:[#allocation1] sm:$0xf] %v4_v0 }
   0x9   :  { %v10_v1 = vld [vmem:[#allocation1 + $0x3] sm:$0x1]   ;;  %v22_v2 = vld [vmem:[#allocation1 + $0x1] sm:$0x1]   ;;  %v6_v3 = vld [vmem:[#allocation1] sm:$0x1]  }
   0xa   :  { %11 = vrot.lane.b32.xlu0 %v10_v1, %s36_s0  ;;  %23 = vrot.lane.b32.xlu1 %v22_v2, %s37_s8  ;;  %v16_v4 = vld [vmem:[#allocation1 + $0x2] sm:$0x1]   ;;  %8 = vst.msk [vmem:[#allocation0] sm:$0x1] %vm7_vm0, %v6_v3  }
   0xe   :  { %17 = vrot.lane.b32.xlu0 %v16_v4, %s38_s9 }
  0x7c   :  { %v12_v5 = vpop.permute.xlu0 %11   ;;  %v24_v6 = vpop.permute.xlu1 %23  }
  0x7d   :  { %14 = vst.msk [vmem:[#allocation0] sm:$0x1] %vm13_vm1, %v12_v5  }
  0x80   :  { %v18_v7 = vpop.permute.xlu0 %17  }
  0x81   :  { %20 = vst.msk [vmem:[#allocation0] sm:$0x1] %vm19_vm2, %v18_v7  }
  0x82   :  { %26 = vst.msk [vmem:[#allocation0] sm:$0x1] %vm25_vm3, %v24_v6  }
  0x89   :  { %v30_v8 = vld [vmem:[#allocation0] sm:$0x1] }
  0x8a   :  { %32 = vst [vmem:[%s56_s1] sm:$0x1] %v30_v8 }

// kernel: mnist_cnn_forward.1
= control target key start
LH: loop header
LB: loop body
LE: loop exit
PB: predicated region body
PF: predicated region fallthrough
CT: control target
= control target key end

     0   :  { %s5017_s27 = smov 0   ;;  %s6349_s0 = inlined_call_operand.vmem [shape: bf16[2,896,28], index: 0, kind: input, shape index: {}]   ;;  %s6350_s1 = inlined_call_operand.vmem [shape: bf16[3,28,224], index: 1, kind: input, shape index: {}]   ;;  %s6351_s2 = inlined_call_operand.vmem [shape: f32[1,224], index: 2, kind: input, shape index: {}]   ;;  %s6352_s3 = inlined_call_operand.vmem [shape: bf16[3,224,112], index: 3, kind: input, shape index: {}]   ;;  %s6353_s4 = inlined_call_operand.vmem [shape: f32[1,112], index: 4, kind: input, shape index: {}]   ;;  %s6354_s5 = inlined_call_operand.vmem [shape: bf16[3,112,40], index: 5, kind: input, shape index: {}]   ;;  %s6355_s6 = inlined_call_operand.vmem [shape: f32[1,40], index: 6, kind: input, shape index: {}]   ;;  %s6356_s7 = inlined_call_operand.vmem [shape: f32[40,10], index: 7, kind: input, shape index: {}]   ;;  %s6357_s8 = inlined_call_operand.vmem [shape: f32[64,10], index: 8, kind: output, shape index: {}]  }
   0x1 LB: > { %s5023_s28 = sadd.s32 4294967295, %s4969_s27   ;;  %p4008_p0 = scmp.ge.s32.totalorder %s4969_s27, 1  ;;  %s4969_s27 = sphi %s5017_s27, %s18_s27  }
   0x2   : > { %p262_p1 = scmp.lt.s32.totalorder %s4969_s27, 3 }
   0x4   : > { %p263_p2 = pnand %p4008_p0, %p262_p1 }
   0x6   : > { %266 = sbr.rel (%p263_p2) target bundleno = 1732 (0x6c4), region = 52 }
   0xd   : > { %v4826_v0 = vld [vmem:[%s6350_s1 + $0x24] ss:$8 sps:$4 sm:$0xff]   ;;  %vm812_vm0 = vcmask 1045504   ;;  %v4828_v1 = vld [vmem:[%s6350_s1 + $0x20] ss:$8 sps:$4 sm:$0xff]   ;;  %v6368_v2 = vmov 0  }
   0xe   : > { %851 = vmatprep.mubr.bf16.mxu0 %v6368_v2  ;;  %p296_p3 = scmp.lt.s32.totalorder %s5023_s28, 1  ;;  %991 = vmatprep.mubr.bf16.mxu1 %v6368_v2  ;;  %v4829_v3 = vld [vmem:[%s6350_s1 + $0x34] ss:$8 sps:$4 sm:$0x3f]   ;;  %v4835_v6 = vld [vmem:[%s6350_s1 + $0x4] ss:$8 sps:$4 sm:$0xff]  }
   0xf   : > { %819 = vmatprep.subr.bf16.mxu0 %v4826_v0  ;;  %v4831_v4 = vld [vmem:[%s6350_s1 + $0x30] ss:$8 sps:$4 sm:$0x3f]   ;;  %4556 = vmatprep.subr.bf16.mxu1 %v4826_v0  ;;  %vm727_vm1 = vcmask 228352   ;;  %v4833_v9 = vld [vmem:[%s6350_s1] ss:$8 sps:$4 sm:$0xff]  }
  0x10   : > { %820 = vmatpush1.bf16.msra.mxu0 %v4828_v1  ;;  %s297_s15 = scalar_select %p296_p3, %s5023_s28, 1  ;;  %4558 = vmatpush1.bf16.msra.mxu1 %v4828_v1  ;;  %v814_v5 = vsel %vm812_vm0, %v4831_v4, 0  ;;  %v4843_v7 = vld [vmem:[%s6350_s1 + $0x14] ss:$8 sps:$4 sm:$0x3f]   ;;  %v4895_v4 = vld [vmem:[%s6352_s3 + $0x80] sm:$0xff]  }
  0x11   : > { %4076 = vmatprep.subr.msk.bf16.mxu0 %vm812_vm0, %v4829_v3  ;;  %4557 = vmatprep.subr.msk.bf16.mxu1 %vm812_vm0, %v4829_v3  ;;  %v4845_v8 = vld [vmem:[%s6350_s1 + $0x10] ss:$8 sps:$4 sm:$0x3f]   ;;  %v4854_v11 = vld [vmem:[%s6350_s1 + $0x44] ss:$8 sps:$4 sm:$0xff]   ;;  %vm2443_vm2 = vcmask 785408  }
  0x12   : > { %s4816_s18 = smul.u32 448, %s297_s15  ;;  %v1232_v12 = vsel %vm812_vm0, %v4845_v8, 0  ;;  %v4852_v26 = vld [vmem:[%s6350_s1 + $0x40] ss:$8 sps:$4 sm:$0xff]   ;;  %v4892_v0 = vld [vmem:[%s6352_s3 + $0x70] sm:$0xff]   ;;  %v4893_v1 = vld [vmem:[%s6352_s3 + $0x78] sm:$0xff]  }
  0x13   : > { %v4868_v27 = vld [vmem:[%s6350_s1 + $0x54] ss:$8 sps:$4 sm:$0x3f]   ;;  %v4870_v28 = vld [vmem:[%s6350_s1 + $0x50] ss:$8 sps:$4 sm:$0x3f]  }
  0x14   : > { %822 = vmatpush1.bf16.msra.mxu0 %v814_v5  ;;  %s5058_s25 = scalar_lea.vmem %s6349_s0, %s4816_s18  ;;  %4559 = vmatpush1.bf16.msra.mxu1 %v814_v5  ;;  %v1580_v29 = vsel %vm812_vm0, %v4870_v28, 0  ;;  %v4896_v5 = vld [vmem:[%s6352_s3 + $0x88] sm:$0xff]   ;;  %v4899_v8 = vld [vmem:[%s6352_s3 + $0x98] sm:$0xff]   ;;  %vm3338_vm3 = vcmask 916480   ;;  %vm3845_vm4 = vcmask 326656   ;;  %s4010_s19 = sshll.u32 %s5023_s28, 2 }
  0x15   : > { %v4832_v10 = vld [vmem:[%s5058_s25] sm:$0xff]   ;;  %1237 = vmatprep.subr.bf16.mxu0 %v4835_v6  ;;  %2486 = vmatprep.subr.bf16.mxu1 %v6368_v2  ;;  %v4836_v13 = vld [vmem:[%s5058_s25 + $0x8] sm:$0xff]   ;;  %v5127_v30 = vld [vmem:[%s5058_s25 + $0x10] sm:$0xff]   ;;  %p302_p4 = scmp.lt.s32.totalorder %s4010_s19, 7  ;;  %vm3943_vm5 = vcmask 80896  }
  0x16   : > { %v4837_v14 = vld [vmem:[%s5058_s25 + $0x20] sm:$0xff]   ;;  %v4838_v15 = vld [vmem:[%s5058_s25 + $0x28] sm:$0xff]   ;;  %v5133_v31 = vld [vmem:[%s5058_s25 + $0x18] sm:$0xff]  }
  0x17   : > { %4077 = vmatmul.mubr.msk.bf16.vlgmr.msra.gmra.mrb[0].mxu0 %vm727_vm1, %v4832_v10  ;;  %v4839_v16 = vld [vmem:[%s5058_s25 + $0x40] sm:$0xff]   ;;  %v4840_v17 = vld [vmem:[%s5058_s25 + $0x48] sm:$0xff]   ;;  %v5139_v32 = vld [vmem:[%s5058_s25 + $0x30] sm:$0xff]   ;;  %s6424_s19 = smov (!%p302_p4, %s4010_s19), 7 }
  0x18   : > { %1238 = vmatpush1.bf16.msra.mxu0 %v4833_v9  ;;  %861 = vmatprep.mubr.bf16.mxu0 %v6368_v2  ;;  %v4841_v18 = vld [vmem:[%s5058_s25 + $0x60] sm:$0xff]   ;;  %v4842_v19 = vld [vmem:[%s5058_s25 + $0x68] sm:$0xff]   ;;  %v5145_v33 = vld [vmem:[%s5058_s25 + $0x38] sm:$0xff]   ;;  %s4011_s20 = sshll.u32 %s6424_s19, 3 }
  0x19   : > { %4109 = vmatprep.subr.msk.bf16.mxu0 %vm812_vm0, %v4843_v7  ;;  %v4846_v20 = vld [vmem:[%s5058_s25 + $0x80] sm:$0xff]   ;;  %v4847_v21 = vld [vmem:[%s5058_s25 + $0x88] sm:$0xff]   ;;  %v5151_v34 = vld [vmem:[%s5058_s25 + $0x50] sm:$0xff]   ;;  %s305_s23 = scalar_lea.vmem %s6357_s8, %s4011_s20 }
  0x1a   : > { %v4848_v22 = vld [vmem:[%s5058_s25 + $0xa0] sm:$0xff]   ;;  %v4849_v23 = vld [vmem:[%s5058_s25 + $0xa8] sm:$0xff]   ;;  %v5157_v35 = vld [vmem:[%s5058_s25 + $0x58] sm:$0xff]  }
  0x1b   : > { %v4850_v24 = vld [vmem:[%s5058_s25 + $0xc0] sm:$0xff]   ;;  %v4851_v25 = vld [vmem:[%s5058_s25 + $0xc8] sm:$0xff]   ;;  %v5163_v36 = vld [vmem:[%s5058_s25 + $0x70] sm:$0xff]  }
  0x1c   : > { %1240 = vmatpush1.bf16.msra.mxu0 %v1232_v12  ;;  %v5169_v37 = vld [vmem:[%s5058_s25 + $0x78] sm:$0xff]   ;;  %v5175_v38 = vld [vmem:[%s5058_s25 + $0x90] sm:$0xff]   ;;  %v4884_v54 = vld [vmem:[%s5058_s25 + $0xe0] sm:$0xff]  }
  0x1d   : > { %1585 = vmatprep.subr.bf16.mxu0 %v4854_v11  ;;  %v5181_v39 = vld [vmem:[%s5058_s25 + $0x98] sm:$0xff]   ;;  %v5187_v40 = vld [vmem:[%s5058_s25 + $0xb0] sm:$0xff]   ;;  %4091 = vmatmul.mubr.msk.bf16.vlgmr.msra.gmra.mrb[0].mxu1 %vm727_vm1, %v4884_v54  ;;  %v4885_v56 = vld [vmem:[%s5058_s25 + $0xe8] sm:$0xff]  }
  0x1e   : > { %v5193_v41 = vld [vmem:[%s5058_s25 + $0xb8] sm:$0xff]   ;;  %v5199_v42 = vld [vmem:[%s5058_s25 + $0xd0] sm:$0xff]   ;;  %1001 = vmatprep.mubr.bf16.mxu1 %v6368_v2  ;;  %v4886_v58 = vld [vmem:[%s5058_s25 + $0x100] sm:$0xff]   ;;  %2487 = vmatpush1.bf16.msra.mxu1 %v4892_v0 }
  0x1f   : > { %4078 = vmatmul.mubr.msk.bf16.gmra.mrb[4].mxu0 %vm727_vm1, %v4836_v13  ;;  %v5205_v43 = vld [vmem:[%s5058_s25 + $0xd8] sm:$0xff]   ;;  %v5211_v44 = vld [vmem:[%s5058_s25 + $0xf0] sm:$0xff]   ;;  %v4887_v59 = vld [vmem:[%s5058_s25 + $0x108] sm:$0xff]   ;;  %2488 = vmatprep.subr.bf16.mxu1 %v6368_v2 }
  0x20   : > { %871 = vmatprep.mubr.bf16.mxu0 %v6368_v2  ;;  %v5217_v45 = vld [vmem:[%s5058_s25 + $0xf8] sm:$0xff]   ;;  %v5223_v46 = vld [vmem:[%s5058_s25 + $0x110] sm:$0xff]   ;;  %v4888_v60 = vld [vmem:[%s5058_s25 + $0x120] sm:$0xff]  }
  0x21   : > { %v5229_v47 = vld [vmem:[%s5058_s25 + $0x118] sm:$0xff]   ;;  %v5235_v48 = vld [vmem:[%s5058_s25 + $0x130] sm:$0xff]   ;;  %v4889_v61 = vld [vmem:[%s5058_s25 + $0x128] sm:$0xff]  }
  0x22   : > { %v5241_v49 = vld [vmem:[%s5058_s25 + $0x138] sm:$0xff]   ;;  %v5247_v50 = vld [vmem:[%s5058_s25 + $0x150] sm:$0xff]   ;;  %v4890_v62 = vld [vmem:[%s5058_s25 + $0x140] sm:$0xff]   ;;  %2489 = vmatpush1.bf16.msra.mxu1 %v4893_v1 }
  0x23   : > { %v5253_v51 = vld [vmem:[%s5058_s25 + $0x158] sm:$0xff]   ;;  %v5259_v52 = vld [vmem:[%s5058_s25 + $0x170] sm:$0xff]   ;;  %v4891_v63 = vld [vmem:[%s5058_s25 + $0x148] sm:$0xff]   ;;  %2490 = vmatprep.subr.bf16.mxu1 %v6368_v2 }
  0x24   : > { %v5265_v53 = vld [vmem:[%s5058_s25 + $0x178] sm:$0xff]   ;;  %v5274_v55 = vld [vmem:[%s5058_s25 + $0x190] sm:$0xff]   ;;  %v4894_v3 = vld [vmem:[%s5058_s25 + $0x160] sm:$0xff]  }
  0x25   : > { %4092 = vmatmul.mubr.msk.bf16.gmra.mrb[4].mxu1 %vm727_vm1, %v4885_v56  ;;  %v5283_v57 = vld [vmem:[%s5058_s25 + $0x198] sm:$0xff]   ;;  %v4897_v6 = vld [vmem:[%s5058_s25 + $0x168] sm:$0xff]   ;;  %v4898_v7 = vld [vmem:[%s6352_s3 + $0x90] sm:$0xff]  }
  0x26   : > { %1011 = vmatprep.mubr.bf16.mxu1 %v6368_v2  ;;  %2491 = vmatpush1.bf16.msra.mxu1 %v4895_v4  ;;  %v4900_v9 = vld [vmem:[%s5058_s25 + $0x180] sm:$0xff]   ;;  %v4902_v11 = vld [vmem:[%s6352_s3 + $0xa8] sm:$0xff]   ;;  %v4904_v13 = vld [vmem:[%s6352_s3 + $0xb0] sm:$0xff]  }
  0x27   : > { %4079 = vmatmul.mubr.msk.bf16.gmra.mrb[8].mxu0 %vm727_vm1, %v4837_v14  ;;  %2492 = vmatprep.subr.bf16.mxu1 %v6368_v2  ;;  %v4901_v10 = vld [vmem:[%s6352_s3 + $0xa0] sm:$0xff]   ;;  %v4903_v12 = vld [vmem:[%s5058_s25 + $0x188] sm:$0xff]   ;;  %v4905_v14 = vld [vmem:[%s6352_s3 + $0xb8] sm:$0xff]  }
  0x28   : > { %881 = vmatprep.mubr.bf16.mxu0 %v6368_v2 }
  0x2a   : > { %2493 = vmatpush1.bf16.msra.mxu1 %v4896_v5 }
  0x2b   : > { %2494 = vmatprep.subr.bf16.mxu1 %v6368_v2 }
  0x2d   : > { %4093 = vmatmul.mubr.msk.bf16.gmra.mrb[8].mxu1 %vm727_vm1, %v4886_v58 }
  0x2e   : > { %1021 = vmatprep.mubr.bf16.mxu1 %v6368_v2  ;;  %2495 = vmatpush1.bf16.msra.mxu1 %v4898_v7 }
  0x2f   : > { %4080 = vmatmul.mubr.msk.bf16.gmra.mrb[12].mxu0 %vm727_vm1, %v4838_v15  ;;  %2496 = vmatprep.subr.bf16.mxu1 %v6368_v2  ;;  %v4906_v15 = vld [vmem:[%s5058_s25 + $0x1a0] sm:$0xff]  }
  0x30   : > { %891 = vmatprep.mubr.bf16.mxu0 %v6368_v2 }
  0x32   : > { %2497 = vmatpush1.bf16.msra.mxu1 %v4899_v8 }
  0x33   : > { %2498 = vmatprep.subr.bf16.mxu1 %v6368_v2 }
  0x35   : > { %4094 = vmatmul.mubr.msk.bf16.gmra.mrb[12].mxu1 %vm727_vm1, %v4887_v59 }
  0x36   : > { %1031 = vmatprep.mubr.bf16.mxu1 %v6368_v2  ;;  %2499 = vmatpush1.bf16.msra.mxu1 %v4901_v10 }
  0x37   : > { %4081 = vmatmul.mubr.msk.bf16.gmra.mrb[16].mxu0 %vm727_vm1, %v4839_v16  ;;  %2500 = vmatprep.subr.bf16.mxu1 %v6368_v2  ;;  %v4907_v16 = vld [vmem:[%s6352_s3 + $0xc0] sm:$0xff]  }
  0x38   : > { %901 = vmatprep.mubr.bf16.mxu0 %v6368_v2 }
  0x3a   : > { %2501 = vmatpush1.bf16.msra.mxu1 %v4902_v11 }
  0x3b   : > { %2502 = vmatprep.subr.bf16.mxu1 %v6368_v2 }
  0x3d   : > { %4095 = vmatmul.mubr.msk.bf16.gmra.mrb[16].mxu1 %vm727_vm1, %v4888_v60  ;;  %v4914_v60 = vld [vmem:[%s6352_s3] sm:$0xff]  }
  0x3e   : > { %1041 = vmatprep.mubr.bf16.mxu1 %v6368_v2  ;;  %2503 = vmatpush1.bf16.msra.mxu1 %v4904_v13 }
  0x3f   : > { %4082 = vmatmul.mubr.msk.bf16.gmra.mrb[20].mxu0 %vm727_vm1, %v4840_v17  ;;  %2504 = vmatprep.subr.bf16.mxu1 %v6368_v2  ;;  %v4909_v17 = vld [vmem:[%s6352_s3 + $0xc8] sm:$0xff]  }
  0x40   : > { %911 = vmatprep.mubr.bf16.mxu0 %v6368_v2 }
  0x42   : > { %2505 = vmatpush1.bf16.msra.mxu1 %v4905_v14 }
  0x43   : > { %2506 = vmatprep.subr.bf16.mxu1 %v6368_v2 }
  0x45   : > { %4096 = vmatmul.mubr.msk.bf16.gmra.mrb[20].mxu1 %vm727_vm1, %v4889_v61 }
  0x46   : > { %1051 = vmatprep.mubr.bf16.mxu1 %v6368_v2  ;;  %2507 = vmatpush1.bf16.msra.mxu1 %v4907_v16 }
  0x47   : > { %4083 = vmatmul.mubr.msk.bf16.gmra.mrb[24].mxu0 %vm727_vm1, %v4841_v18  ;;  %2508 = vmatprep.subr.bf16.mxu1 %v6368_v2  ;;  %v4910_v18 = vld [vmem:[%s5058_s25 + $0x1a8] sm:$0xff]  }
  0x48   : > { %921 = vmatprep.mubr.bf16.mxu0 %v6368_v2 }
  0x4a   : > { %2509 = vmatpush1.bf16.msra.mxu1 %v4909_v17  ;;  %v4916_v17 = vld [vmem:[%s6352_s3 + $0x10] sm:$0xff]  }
  0x4b   : > { %2510 = vmatprep.subr.bf16.mxu1 %v6368_v2 }
  0x4d   : > { %4097 = vmatmul.mubr.msk.bf16.gmra.mrb[24].mxu1 %vm727_vm1, %v4890_v62 }
  0x4e   : > { %1061 = vmatprep.mubr.bf16.mxu1 %v6368_v2 }
  0x4f   : > { %4084 = vmatmul.mubr.msk.bf16.gmra.mrb[28].mxu0 %vm727_vm1, %v4842_v19  ;;  %v4911_v19 = vld [vmem:[%s6352_s3 + $0xd0] sm:$0xff]  }
  0x50   : > { %931 = vmatprep.mubr.bf16.mxu0 %v6368_v2  ;;  %2511 = vmatpush1.bf16.msra.mxu1 %v4911_v19 }
  0x51   : > { %2512 = vmatprep.subr.bf16.mxu1 %v6368_v2 }
  0x55   : > { %4098 = vmatmul.mubr.msk.bf16.gmra.mrb[28].mxu1 %vm727_vm1, %v4891_v63 }
  0x56   : > { %1071 = vmatprep.mubr.bf16.mxu1 %v6368_v2 }
  0x57   : > { %4085 = vmatmul.mubr.msk.bf16.gmra.mrb[32].mxu0 %vm727_vm1, %v4846_v20  ;;  %v4913_v20 = vld [vmem:[%s6352_s3 + $0xd8] sm:$0xff]  }
  0x58   : > { %941 = vmatprep.mubr.bf16.mxu0 %v6368_v2  ;;  %2513 = vmatpush1.bf16.msra.mxu1 %v4913_v20 }
  0x59   : > { %2753 = vmatprep.subr.bf16.mxu1 %v6368_v2 }
  0x5d   : > { %4099 = vmatmul.mubr.msk.bf16.gmra.mrb[32].mxu1 %vm727_vm1, %v4894_v3 }
  0x5e   : > { %1081 = vmatprep.mubr.bf16.mxu1 %v6368_v2 }
  0x5f   : > { %4086 = vmatmul.mubr.msk.bf16.gmra.mrb[36].mxu0 %vm727_vm1, %v4847_v21 }
  0x60   : > { %951 = vmatprep.mubr.bf16.mxu0 %v6368_v2 }
  0x65   : > { %4100 = vmatmul.mubr.msk.bf16.gmra.mrb[36].mxu1 %vm727_vm1, %v4897_v6  ;;  %v4915_v6 = vld [vmem:[%s6352_s3 + $0x8] sm:$0xff]  }
  0x66   : > { %1091 = vmatprep.mubr.bf16.mxu1 %v6368_v2 }
  0x67   : > { %4087 = vmatmul.mubr.msk.bf16.gmra.mrb[40].mxu0 %vm727_vm1, %v4848_v22 }
  0x68   : > { %961 = vmatprep.mubr.bf16.mxu0 %v6368_v2 }
  0x6d   : > { %4101 = vmatmul.mubr.msk.bf16.gmra.mrb[40].mxu1 %vm727_vm1, %v4900_v9 }
  0x6e   : > { %1101 = vmatprep.mubr.bf16.mxu1 %v6368_v2 }
  0x6f   : > { %4088 = vmatmul.mubr.msk.bf16.gmra.mrb[44].mxu0 %vm727_vm1, %v4849_v23 }
  0x70   : > { %971 = vmatprep.mubr.bf16.mxu0 %v6368_v2 }
  0x75   : > { %4102 = vmatmul.mubr.msk.bf16.gmra.mrb[44].mxu1 %vm727_vm1, %v4903_v12 }
  0x76   : > { %1111 = vmatprep.mubr.bf16.mxu1 %v6368_v2 }
  0x77   : > { %4089 = vmatmul.mubr.msk.bf16.gmra.mrb[48].mxu0 %vm727_vm1, %v4850_v24 }
  0x78   : > { %981 = vmatprep.mubr.bf16.mxu0 %v6368_v2 }
  0x7d   : > { %4103 = vmatmul.mubr.msk.bf16.gmra.mrb[48].mxu1 %vm727_vm1, %v4906_v15 }
  0x7e   : > { %1121 = vmatprep.mubr.bf16.mxu1 %v6368_v2 }
  0x7f   : > { %4090 = vmatmul.mubr.msk.bf16.gmra.mrb[52].mxu0 %vm727_vm1, %v4851_v25  ;;  %v2012_v25 = vlaneseq }
  0x80   : > { %1269 = vmatprep.mubr.bf16.mxu0 %v6368_v2 }
  0x85   : > { %4104 = vmatmul.mubr.msk.bf16.gmra.mrb[52].mxu1 %vm727_vm1, %v4910_v18 }
  0x87   : > { %1270 = vmatmul.mubr.bf16.vlgmr.msra.gmra.mrb[0].mxu0 %v6368_v2 }
  0x88   : > { %1586 = vmatpush1.bf16.msra.mxu0 %v4852_v26  ;;  %1279 = vmatprep.mubr.bf16.mxu0 %v6368_v2  ;;  %v2013_v26 = vshrl.u32 %v2012_v25, 7 }
  0x89   : > { %4144 = vmatprep.subr.msk.bf16.mxu0 %vm812_vm0, %v4868_v27 }
  0x8c   : > { %1588 = vmatpush1.bf16.msra.mxu0 %v1580_v29 }
  0x8f   : > { %1280 = vmatmul.mubr.bf16.gmra.mrb[4].mxu0 %v6368_v2 }
  0x90   : > { %1289 = vmatprep.mubr.bf16.mxu0 %v6368_v2 }
  0x97   : > { %4110 = vmatmul.mubr.msk.bf16.gmra.mrb[8].mxu0 %vm727_vm1, %v5127_v30 }
  0x98   : > { %1299 = vmatprep.mubr.bf16.mxu0 %v6368_v2 }
  0x9f   : > { %4111 = vmatmul.mubr.msk.bf16.gmra.mrb[12].mxu0 %vm727_vm1, %v5133_v31 }
  0xa0   : > { %1309 = vmatprep.mubr.bf16.mxu0 %v6368_v2 }
  0xa7   : > { %4112 = vmatmul.mubr.msk.bf16.gmra.mrb[16].mxu0 %vm727_vm1, %v5139_v32 }
  0xa8   : > { %1319 = vmatprep.mubr.bf16.mxu0 %v6368_v2 }
  0xaf   : > { %4113 = vmatmul.mubr.msk.bf16.gmra.mrb[20].mxu0 %vm727_vm1, %v5145_v33 }
  0xb0   : > { %1329 = vmatprep.mubr.bf16.mxu0 %v6368_v2 }
  0xb7   : > { %4114 = vmatmul.mubr.msk.bf16.gmra.mrb[24].mxu0 %vm727_vm1, %v5151_v34 }
  0xb8   : > { %1339 = vmatprep.mubr.bf16.mxu0 %v6368_v2 }
  0xbf   : > { %4115 = vmatmul.mubr.msk.bf16.gmra.mrb[28].mxu0 %vm727_vm1, %v5157_v35 }
  0xc0   : > { %1349 = vmatprep.mubr.bf16.mxu0 %v6368_v2 }
  0xc7   : > { %4116 = vmatmul.mubr.msk.bf16.gmra.mrb[32].mxu0 %vm727_vm1, %v5163_v36 }
  0xc8   : > { %1359 = vmatprep.mubr.bf16.mxu0 %v6368_v2 }
  0xcf   : > { %4117 = vmatmul.mubr.msk.bf16.gmra.mrb[36].mxu0 %vm727_vm1, %v5169_v37 }
  0xd0   : > { %1369 = vmatprep.mubr.bf16.mxu0 %v6368_v2 }
  0xd7   : > { %4118 = vmatmul.mubr.msk.bf16.gmra.mrb[40].mxu0 %vm727_vm1, %v5175_v38 }
  0xd8   : > { %1379 = vmatprep.mubr.bf16.mxu0 %v6368_v2 }
  0xdf   : > { %4119 = vmatmul.mubr.msk.bf16.gmra.mrb[44].mxu0 %vm727_vm1, %v5181_v39 }
  0xe0   : > { %1389 = vmatprep.mubr.bf16.mxu0 %v6368_v2 }
  0xe7   : > { %4120 = vmatmul.mubr.msk.bf16.gmra.mrb[48].mxu0 %vm727_vm1, %v5187_v40 }
  0xe8   : > { %1399 = vmatprep.mubr.bf16.mxu0 %v6368_v2 }
  0xef   : > { %4121 = vmatmul.mubr.msk.bf16.gmra.mrb[52].mxu0 %vm727_vm1, %v5193_v41 }
  0xf0   : > { %1409 = vmatprep.mubr.bf16.mxu0 %v6368_v2  ;;  %v5453_v21 = vpop.f32.mrb[0].mxu1 }
  0xf1   : > { %v5456_v22 = vpop.f32.mrb[1].mxu1 }
  0xf2   : > { %v5458_v23 = vpop.f32.mrb[2].mxu1 }
  0xf3   : > { %v5460_v24 = vpop.f32.mrb[3].mxu1 }
  0xf7   : > { %4122 = vmatmul.mubr.msk.bf16.gmra.mrb[56].mxu0 %vm727_vm1, %v5199_v42 }
  0xf8   : > { %1419 = vmatprep.mubr.bf16.mxu0 %v6368_v2  ;;  %v5464_v27 = vpop.f32.mrb[4].mxu1 }
  0xf9   : > { %v5467_v28 = vpop.f32.mrb[5].mxu1 }
  0xfa   : > { %v5469_v29 = vpop.f32.mrb[6].mxu1 }
  0xff   : > { %4123 = vmatmul.mubr.msk.bf16.gmra.mrb[60].mxu0 %vm727_vm1, %v5205_v43 }
 0x100   : > { %1429 = vmatprep.mubr.bf16.mxu0 %v6368_v2 }
 0x107   : > { %4124 = vmatmul.mubr.msk.bf16.gmra.mrb[64].mxu0 %vm727_vm1, %v5211_v44 }
 0x108   : > { %1439 = vmatprep.mubr.bf16.mxu0 %v6368_v2 }
 0x10f   : > { %4125 = vmatmul.mubr.msk.bf16.gmra.mrb[68].mxu0 %vm727_vm1, %v5217_v45 }
 0x110   : > { %1449 = vmatprep.mubr.bf16.mxu0 %v6368_v2 }
 0x117   : > { %4126 = vmatmul.mubr.msk.bf16.gmra.mrb[72].mxu0 %vm727_vm1, %v5223_v46 }
 0x118   : > { %1459 = vmatprep.mubr.bf16.mxu0 %v6368_v2 }
 0x11f   : > { %4127 = vmatmul.mubr.msk.bf16.gmra.mrb[76].mxu0 %vm727_vm1, %v5229_v47 }
 0x120   : > { %1469 = vmatprep.mubr.bf16.mxu0 %v6368_v2 }
 0x127   : > { %4128 = vmatmul.mubr.msk.bf16.gmra.mrb[80].mxu0 %vm727_vm1, %v5235_v48 }
 0x128   : > { %1479 = vmatprep.mubr.bf16.mxu0 %v6368_v2 }
 0x12f   : > { %4129 = vmatmul.mubr.msk.bf16.gmra.mrb[84].mxu0 %vm727_vm1, %v5241_v49 }
 0x130   : > { %1489 = vmatprep.mubr.bf16.mxu0 %v6368_v2 }
 0x137   : > { %4130 = vmatmul.mubr.msk.bf16.gmra.mrb[88].mxu0 %vm727_vm1, %v5247_v50 }
 0x138   : > { %1499 = vmatprep.mubr.bf16.mxu0 %v6368_v2 }
 0x13f   : > { %4131 = vmatmul.mubr.msk.bf16.gmra.mrb[92].mxu0 %vm727_vm1, %v5253_v51 }
 0x140   : > { %1509 = vmatprep.mubr.bf16.mxu0 %v6368_v2 }
 0x147   : > { %4132 = vmatmul.mubr.msk.bf16.gmra.mrb[96].mxu0 %vm727_vm1, %v5259_v52 }
 0x148   : > { %1519 = vmatprep.mubr.bf16.mxu0 %v6368_v2 }
 0x14f   : > { %4133 = vmatmul.mubr.msk.bf16.gmra.mrb[100].mxu0 %vm727_vm1, %v5265_v53 }
 0x150   : > { %1529 = vmatprep.mubr.bf16.mxu0 %v6368_v2 }
 0x157   : > { %4134 = vmatmul.mubr.msk.bf16.gmra.mrb[104].mxu0 %vm727_vm1, %v5274_v55 }
 0x158   : > { %1539 = vmatprep.mubr.bf16.mxu0 %v6368_v2 }
 0x15f   : > { %4135 = vmatmul.mubr.msk.bf16.gmra.mrb[108].mxu0 %vm727_vm1, %v5283_v57 }
 0x160   : > { %1617 = vmatprep.mubr.bf16.mxu0 %v6368_v2 }
 0x167   : > { %4145 = vmatmul.mubr.msk.bf16.vlgmr.msra.gmra.mrb[0].mxu0 %vm727_vm1, %v5127_v30  ;;  %v5471_v30 = vpop.f32.mrb[7].mxu1 }
 0x168   : > { %1627 = vmatprep.mubr.bf16.mxu0 %v6368_v2 }
 0x16f   : > { %4146 = vmatmul.mubr.msk.bf16.gmra.mrb[4].mxu0 %vm727_vm1, %v5133_v31  ;;  %v4908_v31 = vld [vmem:[%s5058_s25 + $0x1b0] sm:$0xff]  }
 0x170   : > { %1637 = vmatprep.mubr.bf16.mxu0 %v6368_v2 }
 0x177   : > { %4147 = vmatmul.mubr.msk.bf16.gmra.mrb[8].mxu0 %vm727_vm1, %v5139_v32  ;;  %v2014_v32 = vsub.s32 0, %v2013_v26 }
 0x178   : > { %1647 = vmatprep.mubr.bf16.mxu0 %v6368_v2 }
 0x17f   : > { %4148 = vmatmul.mubr.msk.bf16.gmra.mrb[12].mxu0 %vm727_vm1, %v5145_v33  ;;  %v2010_v33 = vld [vmem:[%s6351_s2] sm:$0x3] }
 0x180   : > { %1657 = vmatprep.mubr.bf16.mxu0 %v6368_v2 }
 0x187   : > { %4149 = vmatmul.mubr.msk.bf16.gmra.mrb[16].mxu0 %vm727_vm1, %v5151_v34  ;;  %v2018_v34 = vsub.s32 1, %v2013_v26 }
 0x188   : > { %1667 = vmatprep.mubr.bf16.mxu0 %v6368_v2 }
 0x18f   : > { %4150 = vmatmul.mubr.msk.bf16.gmra.mrb[20].mxu0 %vm727_vm1, %v5157_v35  ;;  %v5478_v35 = vrot.slane %v2010_v33, %v2014_v32 }
 0x190   : > { %1677 = vmatprep.mubr.bf16.mxu0 %v6368_v2 }
 0x197   : > { %4151 = vmatmul.mubr.msk.bf16.gmra.mrb[24].mxu0 %vm727_vm1, %v5163_v36  ;;  %v5480_v36 = vpop.f32.mrb[8].mxu1 }
 0x198   : > { %1687 = vmatprep.mubr.bf16.mxu0 %v6368_v2 }
 0x19f   : > { %4152 = vmatmul.mubr.msk.bf16.gmra.mrb[28].mxu0 %vm727_vm1, %v5169_v37  ;;  %v5482_v37 = vrot.slane %v2010_v33, %v2018_v34  ;;  %v4917_v34 = vld [vmem:[%s6352_s3 + $0x18] sm:$0xff]  }
 0x1a0   : > { %1697 = vmatprep.mubr.bf16.mxu0 %v6368_v2 }
 0x1a7   : > { %4153 = vmatmul.mubr.msk.bf16.gmra.mrb[32].mxu0 %vm727_vm1, %v5175_v38  ;;  %v5485_v38 = vpop.f32.mrb[9].mxu1 }
 0x1a8   : > { %1707 = vmatprep.mubr.bf16.mxu0 %v6368_v2 }
 0x1af   : > { %4154 = vmatmul.mubr.msk.bf16.gmra.mrb[36].mxu0 %vm727_vm1, %v5181_v39  ;;  %v5487_v39 = vpop.f32.mrb[10].mxu1 }
 0x1b0   : > { %1717 = vmatprep.mubr.bf16.mxu0 %v6368_v2 }
 0x1b7   : > { %4155 = vmatmul.mubr.msk.bf16.gmra.mrb[40].mxu0 %vm727_vm1, %v5187_v40 }
 0x1b8   : > { %1727 = vmatprep.mubr.bf16.mxu0 %v6368_v2 }
 0x1bf   : > { %4156 = vmatmul.mubr.msk.bf16.gmra.mrb[44].mxu0 %vm727_vm1, %v5193_v41  ;;  %v5489_v41 = vpop.f32.mrb[11].mxu1 }
 0x1c0   : > { %1737 = vmatprep.mubr.bf16.mxu0 %v6368_v2 }
 0x1c7   : > { %4157 = vmatmul.mubr.msk.bf16.gmra.mrb[48].mxu0 %vm727_vm1, %v5199_v42 }
 0x1c8   : > { %1747 = vmatprep.mubr.bf16.mxu0 %v6368_v2 }
 0x1cf   : > { %4158 = vmatmul.mubr.msk.bf16.gmra.mrb[52].mxu0 %vm727_vm1, %v5205_v43 }
 0x1d0   : > { %1757 = vmatprep.mubr.bf16.mxu0 %v6368_v2 }
 0x1d7   : > { %4159 = vmatmul.mubr.msk.bf16.gmra.mrb[56].mxu0 %vm727_vm1, %v5211_v44  ;;  %v4912_v44 = vld [vmem:[%s5058_s25 + $0x1b8] sm:$0xff]  }
 0x1d8   : > { %1767 = vmatprep.mubr.bf16.mxu0 %v6368_v2 }
 0x1df   : > { %4160 = vmatmul.mubr.msk.bf16.gmra.mrb[60].mxu0 %vm727_vm1, %v5217_v45 }
 0x1e0   : > { %1777 = vmatprep.mubr.bf16.mxu0 %v6368_v2 }
 0x1e7   : > { %4161 = vmatmul.mubr.msk.bf16.gmra.mrb[64].mxu0 %vm727_vm1, %v5223_v46 }
 0x1e8   : > { %1787 = vmatprep.mubr.bf16.mxu0 %v6368_v2 }
 0x1ef   : > { %4162 = vmatmul.mubr.msk.bf16.gmra.mrb[68].mxu0 %vm727_vm1, %v5229_v47 }
 0x1f0   : > { %1797 = vmatprep.mubr.bf16.mxu0 %v6368_v2 }
 0x1f7   : > { %4163 = vmatmul.mubr.msk.bf16.gmra.mrb[72].mxu0 %vm727_vm1, %v5235_v48 }
 0x1f8   : > { %1807 = vmatprep.mubr.bf16.mxu0 %v6368_v2 }
 0x1ff   : > { %4164 = vmatmul.mubr.msk.bf16.gmra.mrb[76].mxu0 %vm727_vm1, %v5241_v49 }
 0x200   : > { %1817 = vmatprep.mubr.bf16.mxu0 %v6368_v2 }
 0x207   : > { %4165 = vmatmul.mubr.msk.bf16.gmra.mrb[80].mxu0 %vm727_vm1, %v5247_v50 }
 0x208   : > { %1827 = vmatprep.mubr.bf16.mxu0 %v6368_v2 }
 0x20f   : > { %4166 = vmatmul.mubr.msk.bf16.gmra.mrb[84].mxu0 %vm727_vm1, %v5253_v51 }
 0x210   : > { %1837 = vmatprep.mubr.bf16.mxu0 %v6368_v2 }
 0x217   : > { %4167 = vmatmul.mubr.msk.bf16.gmra.mrb[88].mxu0 %vm727_vm1, %v5259_v52  ;;  %v5497_v52 = vpop.f32.mrb[12].mxu1 }
 0x218   : > { %1847 = vmatprep.mubr.bf16.mxu0 %v6368_v2 }
 0x21f   : > { %4168 = vmatmul.mubr.msk.bf16.gmra.mrb[92].mxu0 %vm727_vm1, %v5265_v53 }
 0x220   : > { %1857 = vmatprep.mubr.bf16.mxu0 %v6368_v2 }
 0x227   : > { %4169 = vmatmul.mubr.msk.bf16.gmra.mrb[96].mxu0 %vm727_vm1, %v5274_v55  ;;  %v5499_v55 = vpop.f32.mrb[13].mxu1 }
 0x228   : > { %1867 = vmatprep.mubr.bf16.mxu0 %v6368_v2 }
 0x22f   : > { %4170 = vmatmul.mubr.msk.bf16.gmra.mrb[100].mxu0 %vm727_vm1, %v5283_v57  ;;  %v5501_v57 = vpop.f32.mrb[14].mxu1 }
 0x230   : > { %1877 = vmatprep.mubr.bf16.mxu0 %v6368_v2  ;;  %v5506_v61 = vpop.f32.mrb[15].mxu1 }
 0x231   : > { %v5517_v9 = vpop.f32.mrb[16].mxu1 }
 0x232   : > { %v5519_v12 = vpop.f32.mrb[17].mxu1 }
 0x233   : > { %v5521_v14 = vpop.f32.mrb[18].mxu1 }
 0x234   : > { %v5526_v18 = vpop.f32.mrb[19].mxu1 }
 0x237   : > { %4171 = vmatmul.mubr.msk.bf16.gmra.mrb[104].mxu0 %vm727_vm1, %v4908_v31 }
 0x238   : > { %1887 = vmatprep.mubr.bf16.mxu0 %v6368_v2 }
 0x23a   : > { %v1619_v40 = vpop.f32.mrb[0].mxu0 }
 0x23b   : > { %v2022_v42 = vadd.f32 %v5478_v35, %v1619_v40  ;;  %v1621_v43 = vpop.f32.mrb[1].mxu0 }
 0x23c   : > { %v2023_v45 = vadd.f32 %v5482_v37, %v1621_v43  ;;  %v1623_v46 = vpop.f32.mrb[2].mxu0  ;;  %v5538_v43 = vpop.f32.mrb[20].mxu1 }
 0x23d   : > { %v2024_v47 = vadd.f32 %v5478_v35, %v1623_v46  ;;  %v1625_v48 = vpop.f32.mrb[3].mxu0  ;;  %v2134_v50 = vmax.f32 %v2022_v42, 0.0  ;;  %v5540_v46 = vpop.f32.mrb[21].mxu1 }
 0x23e   : > { %v2025_v49 = vadd.f32 %v5482_v37, %v1625_v48  ;;  %v2135_v53 = vmax.f32 %v2023_v45, 0.0  ;;  %v5544_v48 = vpop.f32.mrb[22].mxu1 }
 0x23f   : > { %v2136_v51 = vmax.f32 %v2024_v47, 0.0  ;;  %4172 = vmatmul.mubr.msk.bf16.gmra.mrb[108].mxu0 %vm727_vm1, %v4912_v44 }
 0x240   : > { %v2137_v54 = vmax.f32 %v2025_v49, 0.0 }
 0x241   : > { %v2246_v56 = vpack.c.bf16 %v2136_v51, %v2134_v50  ;;  %v4918_v51 = vld [vmem:[%s6352_s3 + $0x20] sm:$0xff]  }
 0x242   : > { %v2247_v58 = vpack.c.bf16 %v2137_v54, %v2135_v53  ;;  %v1629_v59 = vpop.f32.mrb[4].mxu0  ;;  %v5551_v53 = vpop.f32.mrb[23].mxu1 }
 0x243   : > { %v2026_v62 = vadd.f32 %v5478_v35, %v1629_v59  ;;  %v1631_v63 = vpop.f32.mrb[5].mxu0 }
 0x244   : > { %v2027_v0 = vadd.f32 %v5482_v37, %v1631_v63  ;;  %v1633_v1 = vpop.f32.mrb[6].mxu0  ;;  %4215 = vmatprep.mubr.msk.bf16.mxu1 %vm2443_vm2, %v2247_v58 }
 0x245   : > { %v2028_v3 = vadd.f32 %v5478_v35, %v1633_v1  ;;  %v1635_v4 = vpop.f32.mrb[7].mxu0  ;;  %2519 = vmatmul.mubr.bf16.vlgmr.msra.gmra.mrb[56].mxu1 %v2246_v56  ;;  %v2138_v7 = vmax.f32 %v2026_v62, 0.0 }
 0x246   : > { %v2029_v5 = vadd.f32 %v5482_v37, %v1635_v4  ;;  %2754 = vmatpush1.bf16.msra.mxu1 %v4914_v60  ;;  %v2139_v10 = vmax.f32 %v2027_v0, 0.0  ;;  %v4919_v0 = vld [vmem:[%s6352_s3 + $0x28] sm:$0xff]   ;;  %v5562_v4 = vpop.f32.mrb[24].mxu1 }
 0x247   : > { %v2140_v8 = vmax.f32 %v2028_v3, 0.0  ;;  %2755 = vmatprep.subr.bf16.mxu1 %v6368_v2 }
 0x248   : > { %v2141_v11 = vmax.f32 %v2029_v5, 0.0 }
 0x249   : > { %v2248_v13 = vpack.c.bf16 %v2140_v8, %v2138_v7  ;;  %v5564_v7 = vpop.f32.mrb[25].mxu1 }
 0x24a   : > { %v2249_v15 = vpack.c.bf16 %v2141_v11, %v2139_v10  ;;  %v1639_v16 = vpop.f32.mrb[8].mxu0  ;;  %2756 = vmatpush1.bf16.msra.mxu1 %v4915_v6  ;;  %v5568_v10 = vpop.f32.mrb[26].mxu1 }
 0x24b   : > { %v2030_v19 = vadd.f32 %v5478_v35, %v1639_v16  ;;  %v1641_v20 = vpop.f32.mrb[9].mxu0  ;;  %2757 = vmatprep.subr.bf16.mxu1 %v6368_v2 }
 0x24c   : > { %v2031_v25 = vadd.f32 %v5482_v37, %v1641_v20  ;;  %v1643_v26 = vpop.f32.mrb[10].mxu0  ;;  %4216 = vmatprep.mubr.msk.bf16.mxu1 %vm2443_vm2, %v2249_v15  ;;  %v5572_v15 = vpop.f32.mrb[27].mxu1 }
 0x24d   : > { %v2032_v31 = vadd.f32 %v5478_v35, %v1643_v26  ;;  %v1645_v32 = vpop.f32.mrb[11].mxu0  ;;  %2527 = vmatmul.mubr.bf16.gmra.mrb[60].mxu1 %v2248_v13  ;;  %v2142_v40 = vmax.f32 %v2030_v19, 0.0 }
 0x24e   : > { %v2033_v33 = vadd.f32 %v5482_v37, %v1645_v32  ;;  %2758 = vmatpush1.bf16.msra.mxu1 %v4916_v17  ;;  %v2143_v44 = vmax.f32 %v2031_v25, 0.0  ;;  %v4920_v25 = vld [vmem:[%s6352_s3 + $0x30] sm:$0xff]  }
 0x24f   : > { %v2144_v42 = vmax.f32 %v2032_v31, 0.0  ;;  %2759 = vmatprep.subr.bf16.mxu1 %v6368_v2 }
 0x250   : > { %v2145_v45 = vmax.f32 %v2033_v33, 0.0 }
 0x251   : > { %v5542_v47 = vpack.c.bf16 %v2144_v42, %v2142_v40  ;;  %v5583_v40 = vpop.f32.mrb[28].mxu1 }
 0x252   : > { %v5546_v49 = vpack.c.bf16 %v2145_v45, %v2143_v44  ;;  %v1649_v50 = vpop.f32.mrb[12].mxu0  ;;  %2760 = vmatpush1.bf16.msra.mxu1 %v4917_v34  ;;  %v5585_v45 = vpop.f32.mrb[29].mxu1 }
 0x253   : > { %6372 = vst [vmem:[#allocation2_spill] sm:$0xff] %v5542_v47  ;;  %v2034_v54 = vadd.f32 %v5478_v35, %v1649_v50  ;;  %v1651_v56 = vpop.f32.mrb[13].mxu0  ;;  %2761 = vmatprep.subr.bf16.mxu1 %v6368_v2 }
 0x254   : > { %6373 = vst [vmem:[#allocation3_spill] sm:$0xff] %v5546_v49  ;;  %v2035_v58 = vadd.f32 %v5482_v37, %v1651_v56  ;;  %v1653_v59 = vpop.f32.mrb[14].mxu0 }
 0x255   : > { %v2036_v60 = vadd.f32 %v5478_v35, %v1653_v59  ;;  %v1655_v62 = vpop.f32.mrb[15].mxu0  ;;  %v2146_v1 = vmax.f32 %v2034_v54, 0.0 }
 0x256   : > { %v2037_v63 = vadd.f32 %v5482_v37, %v1655_v62  ;;  %2762 = vmatpush1.bf16.msra.mxu1 %v4918_v51  ;;  %v2147_v5 = vmax.f32 %v2035_v58, 0.0  ;;  %v5587_v51 = vpop.f32.mrb[30].mxu1 }
 0x257   : > { %v2148_v3 = vmax.f32 %v2036_v60, 0.0  ;;  %2763 = vmatprep.subr.bf16.mxu1 %v6368_v2  ;;  %v5589_v58 = vpop.f32.mrb[31].mxu1 }
 0x258   : > { %v2149_v6 = vmax.f32 %v2037_v63, 0.0 }
 0x259   : > { %v5566_v8 = vpack.c.bf16 %v2148_v3, %v2146_v1 }
 0x25a   : > { %v5570_v11 = vpack.c.bf16 %v2149_v6, %v2147_v5  ;;  %v1659_v13 = vpop.f32.mrb[16].mxu0  ;;  %2764 = vmatpush1.bf16.msra.mxu1 %v4919_v0  ;;  %v4921_v0 = vld [vmem:[%s6352_s3 + $0x38] sm:$0xff]  }
 0x25b   : > { %6374 = vst [vmem:[#allocation4_spill] sm:$0xff] %v5566_v8  ;;  %v2038_v16 = vadd.f32 %v5478_v35, %v1659_v13  ;;  %v1661_v17 = vpop.f32.mrb[17].mxu0  ;;  %2765 = vmatprep.subr.bf16.mxu1 %v6368_v2 }
 0x25c   : > { %6375 = vst [vmem:[#allocation5_spill] sm:$0xff] %v5570_v11  ;;  %v2039_v19 = vadd.f32 %v5482_v37, %v1661_v17  ;;  %v1663_v20 = vpop.f32.mrb[18].mxu0 }
 0x25d   : > { %v2040_v26 = vadd.f32 %v5478_v35, %v1663_v20  ;;  %v1665_v31 = vpop.f32.mrb[19].mxu0  ;;  %v2150_v33 = vmax.f32 %v2038_v16, 0.0  ;;  %v5600_v16 = vpop.f32.mrb[32].mxu1 }
 0x25e   : > { %v2041_v32 = vadd.f32 %v5482_v37, %v1665_v31  ;;  %2766 = vmatpush1.bf16.msra.mxu1 %v4920_v25  ;;  %v2151_v42 = vmax.f32 %v2039_v19, 0.0  ;;  %v5602_v20 = vpop.f32.mrb[33].mxu1 }
 0x25f   : > { %v2152_v34 = vmax.f32 %v2040_v26, 0.0  ;;  %2767 = vmatprep.subr.bf16.mxu1 %v6368_v2  ;;  %v5604_v26 = vpop.f32.mrb[34].mxu1 }
 0x260   : > { %v2153_v44 = vmax.f32 %v2041_v32, 0.0 }
 0x261   : > { %v2254_v50 = vpack.c.bf16 %v2152_v34, %v2150_v33  ;;  %v5606_v33 = vpop.f32.mrb[35].mxu1 }
 0x262   : > { %v2255_v54 = vpack.c.bf16 %v2153_v44, %v2151_v42  ;;  %v1669_v56 = vpop.f32.mrb[20].mxu0  ;;  %2768 = vmatpush1.bf16.msra.mxu1 %v4921_v0  ;;  %v5617_v0 = vpop.f32.mrb[36].mxu1 }
 0x263   : > { %v2042_v59 = vadd.f32 %v5478_v35, %v1669_v56  ;;  %v1671_v60 = vpop.f32.mrb[21].mxu0  ;;  %2769 = vmatprep.subr.bf16.mxu1 %v6368_v2 }
 0x264   : > { %v2043_v62 = vadd.f32 %v5482_v37, %v1671_v60  ;;  %v1673_v63 = vpop.f32.mrb[22].mxu0  ;;  %4217 = vmatprep.mubr.msk.bf16.mxu1 %vm2443_vm2, %v2255_v54  ;;  %v4922_v54 = vld [vmem:[%s6352_s3 + $0x40] sm:$0xff]  }
 0x265   : > { %v2044_v1 = vadd.f32 %v5478_v35, %v1673_v63  ;;  %v1675_v3 = vpop.f32.mrb[23].mxu0  ;;  %2535 = vmatmul.mubr.bf16.gmra.mrb[64].mxu1 %v2254_v50  ;;  %v2154_v6 = vmax.f32 %v2042_v59, 0.0 }
 0x266   : > { %v2045_v5 = vadd.f32 %v5482_v37, %v1675_v3  ;;  %v2155_v17 = vmax.f32 %v2043_v62, 0.0  ;;  %2770 = vmatpush1.bf16.msra.mxu1 %v4922_v54 }
 0x267   : > { %v2156_v13 = vmax.f32 %v2044_v1, 0.0  ;;  %2771 = vmatprep.subr.bf16.mxu1 %v6368_v2 }
 0x268   : > { %v2157_v19 = vmax.f32 %v2045_v5, 0.0  ;;  %v5619_v5 = vpop.f32.mrb[37].mxu1 }
 0x269   : > { %v2256_v25 = vpack.c.bf16 %v2156_v13, %v2154_v6  ;;  %v5623_v13 = vpop.f32.mrb[38].mxu1 }
 0x26a   : > { %v2257_v31 = vpack.c.bf16 %v2157_v19, %v2155_v17  ;;  %v1679_v32 = vpop.f32.mrb[24].mxu0 }
 0x26b   : > { %v2046_v34 = vadd.f32 %v5478_v35, %v1679_v32  ;;  %v1681_v42 = vpop.f32.mrb[25].mxu0 }
 0x26c   : > { %v2047_v44 = vadd.f32 %v5482_v37, %v1681_v42  ;;  %v1683_v50 = vpop.f32.mrb[26].mxu0  ;;  %4218 = vmatprep.mubr.msk.bf16.mxu1 %vm2443_vm2, %v2257_v31 }
 0x26d   : > { %v2048_v56 = vadd.f32 %v5478_v35, %v1683_v50  ;;  %v1685_v59 = vpop.f32.mrb[27].mxu0  ;;  %2543 = vmatmul.mubr.bf16.gmra.mrb[68].mxu1 %v2256_v25  ;;  %v2158_v62 = vmax.f32 %v2046_v34, 0.0  ;;  %v5627_v25 = vpop.f32.mrb[39].mxu1 }
 0x26e   : > { %v2049_v60 = vadd.f32 %v5482_v37, %v1685_v59  ;;  %v2159_v1 = vmax.f32 %v2047_v44, 0.0  ;;  %v4923_v44 = vld [vmem:[%s6352_s3 + $0x48] sm:$0xff]  }
 0x26f   : > { %v2160_v63 = vmax.f32 %v2048_v56, 0.0  ;;  %2772 = vmatpush1.bf16.msra.mxu1 %v4923_v44 }
 0x270   : > { %v2161_v3 = vmax.f32 %v2049_v60, 0.0  ;;  %2773 = vmatprep.subr.bf16.mxu1 %v6368_v2 }
 0x271   : > { %v5621_v6 = vpack.c.bf16 %v2160_v63, %v2158_v62  ;;  %v5637_v62 = vpop.f32.mrb[40].mxu1 }
 0x272   : > { %v5625_v17 = vpack.c.bf16 %v2161_v3, %v2159_v1  ;;  %v1689_v19 = vpop.f32.mrb[28].mxu0  ;;  %v5639_v3 = vpop.f32.mrb[41].mxu1 }
 0x273   : > { %6376 = vst [vmem:[#allocation6_spill] sm:$0xff] %v5621_v6  ;;  %v2050_v31 = vadd.f32 %v5478_v35, %v1689_v19  ;;  %v1691_v32 = vpop.f32.mrb[29].mxu0 }
 0x274   : > { %6377 = vst [vmem:[#allocation7_spill] sm:$0xff] %v5625_v17  ;;  %v2051_v34 = vadd.f32 %v5482_v37, %v1691_v32  ;;  %v1693_v42 = vpop.f32.mrb[30].mxu0  ;;  %v5643_v32 = vpop.f32.mrb[42].mxu1 }
 0x275   : > { %v2052_v50 = vadd.f32 %v5478_v35, %v1693_v42  ;;  %v1695_v54 = vpop.f32.mrb[31].mxu0  ;;  %v2162_v59 = vmax.f32 %v2050_v31, 0.0  ;;  %v5647_v17 = vpop.f32.mrb[43].mxu1 }
 0x276   : > { %v2053_v56 = vadd.f32 %v5482_v37, %v1695_v54  ;;  %v2163_v63 = vmax.f32 %v2051_v34, 0.0  ;;  %6380 = vst [vmem:[#allocation10_spill] sm:$0xff] %v5647_v17  ;;  %v4924_v34 = vld [vmem:[%s6352_s3 + $0x50] sm:$0xff]  }
 0x277   : > { %v2164_v60 = vmax.f32 %v2052_v50, 0.0  ;;  %2774 = vmatpush1.bf16.msra.mxu1 %v4924_v34 }
 0x278   : > { %v2165_v1 = vmax.f32 %v2053_v56, 0.0  ;;  %2775 = vmatprep.subr.bf16.mxu1 %v6368_v2 }
 0x279   : > { %v5641_v19 = vpack.c.bf16 %v2164_v60, %v2162_v59 }
 0x27a   : > { %v5645_v6 = vpack.c.bf16 %v2165_v1, %v2163_v63  ;;  %v1699_v42 = vpop.f32.mrb[32].mxu0 }
 0x27b   : > { %6378 = vst [vmem:[#allocation8_spill] sm:$0xff] %v5641_v19  ;;  %v2054_v31 = vadd.f32 %v5478_v35, %v1699_v42  ;;  %v1701_v44 = vpop.f32.mrb[33].mxu0  ;;  %v5657_v19 = vpop.f32.mrb[44].mxu1 }
 0x27c   : > { %6379 = vst [vmem:[#allocation9_spill] sm:$0xff] %v5645_v6  ;;  %v2055_v50 = vadd.f32 %v5482_v37, %v1701_v44  ;;  %v1703_v54 = vpop.f32.mrb[34].mxu0  ;;  %6381 = vst [vmem:[#allocation11_spill] sm:$0xff] %v5657_v19  ;;  %v5659_v44 = vpop.f32.mrb[45].mxu1 }
 0x27d   : > { %v2056_v56 = vadd.f32 %v5478_v35, %v1703_v54  ;;  %v1705_v59 = vpop.f32.mrb[35].mxu0  ;;  %v2166_v63 = vmax.f32 %v2054_v31, 0.0  ;;  %6382 = vst [vmem:[#allocation12_spill] sm:$0xff] %v5659_v44  ;;  %v5661_v11 = vpop.f32.mrb[46].mxu1 }
 0x27e   : > { %v2057_v60 = vadd.f32 %v5482_v37, %v1705_v59  ;;  %v2167_v42 = vmax.f32 %v2055_v50, 0.0  ;;  %6383 = vst [vmem:[#allocation13_spill] sm:$0xff] %v5661_v11  ;;  %v5663_v54 = vpop.f32.mrb[47].mxu1  ;;  %v4925_v50 = vld [vmem:[%s6352_s3 + $0x58] sm:$0xff]  }
 0x27f   : > { %v2168_v1 = vmax.f32 %v2056_v56, 0.0  ;;  %6384 = vst [vmem:[#allocation14_spill] sm:$0xff] %v5663_v54  ;;  %2776 = vmatpush1.bf16.msra.mxu1 %v4925_v50  ;;  %v5674_v44 = vpop.f32.mrb[48].mxu1 }
 0x280   : > { %v2169_v6 = vmax.f32 %v2057_v60, 0.0  ;;  %2777 = vmatprep.subr.bf16.mxu1 %v6368_v2  ;;  %6385 = vst [vmem:[#allocation15_spill] sm:$0xff] %v5674_v44 }
 0x281   : > { %v2262_v8 = vpack.c.bf16 %v2168_v1, %v2166_v63 }
 0x282   : > { %v2263_v47 = vpack.c.bf16 %v2169_v6, %v2167_v42  ;;  %v1709_v49 = vpop.f32.mrb[36].mxu0 }
 0x283   : > { %v2058_v59 = vadd.f32 %v5478_v35, %v1709_v49  ;;  %v1711_v34 = vpop.f32.mrb[37].mxu0 }
 0x284   : > { %v2059_v31 = vadd.f32 %v5482_v37, %v1711_v34  ;;  %v1713_v56 = vpop.f32.mrb[38].mxu0  ;;  %4219 = vmatprep.mubr.msk.bf16.mxu1 %vm2443_vm2, %v2263_v47 }
 0x285   : > { %v2060_v60 = vadd.f32 %v5478_v35, %v1713_v56  ;;  %v1715_v63 = vpop.f32.mrb[39].mxu0  ;;  %2551 = vmatmul.mubr.bf16.gmra.mrb[72].mxu1 %v2262_v8  ;;  %v2170_v1 = vmax.f32 %v2058_v59, 0.0  ;;  %v5677_v56 = vpop.f32.mrb[49].mxu1  ;;  %v4926_v59 = vld [vmem:[%s6352_s3 + $0x60] sm:$0xff]  }
 0x286   : > { %v2061_v6 = vadd.f32 %v5482_v37, %v1715_v63  ;;  %v2171_v49 = vmax.f32 %v2059_v31, 0.0  ;;  %6386 = vst [vmem:[#allocation16_spill] sm:$0xff] %v5677_v56  ;;  %v5684_v31 = vpop.f32.mrb[50].mxu1  ;;  %2778 = vmatpush1.bf16.msra.mxu1 %v4926_v59 }
 0x287   : > { %v2172_v42 = vmax.f32 %v2060_v60, 0.0  ;;  %6387 = vst [vmem:[#allocation17_spill] sm:$0xff] %v5684_v31  ;;  %2779 = vmatprep.subr.bf16.mxu1 %v6368_v2 }
 0x288   : > { %v2173_v34 = vmax.f32 %v2061_v6, 0.0  ;;  %v5687_v6 = vpop.f32.mrb[51].mxu1 }
 0x289   : > { %v2264_v54 = vpack.c.bf16 %v2172_v42, %v2170_v1  ;;  %6388 = vst [vmem:[#allocation18_spill] sm:$0xff] %v5687_v6 }
 0x28a   : > { %v2265_v11 = vpack.c.bf16 %v2173_v34, %v2171_v49  ;;  %v1719_v47 = vpop.f32.mrb[40].mxu0 }
 0x28b   : > { %v2062_v19 = vadd.f32 %v5478_v35, %v1719_v47  ;;  %v1721_v17 = vpop.f32.mrb[41].mxu0 }
 0x28c   : > { %v2063_v8 = vadd.f32 %v5482_v37, %v1721_v17  ;;  %v1723_v63 = vpop.f32.mrb[42].mxu0  ;;  %4220 = vmatprep.mubr.msk.bf16.mxu1 %vm2443_vm2, %v2265_v11 }
 0x28d   : > { %v2064_v50 = vadd.f32 %v5478_v35, %v1723_v63  ;;  %v1725_v60 = vpop.f32.mrb[43].mxu0  ;;  %2559 = vmatmul.mubr.bf16.gmra.mrb[76].mxu1 %v2264_v54  ;;  %v2174_v42 = vmax.f32 %v2062_v19, 0.0  ;;  %v4927_v54 = vld [vmem:[%s6352_s3 + $0x68] sm:$0xff]   ;;  %v5698_v63 = vpop.f32.mrb[52].mxu1 }
 0x28e   : > { %v2065_v1 = vadd.f32 %v5482_v37, %v1725_v60  ;;  %v2175_v11 = vmax.f32 %v2063_v8, 0.0  ;;  %6391 = vst [vmem:[#allocation21_spill] sm:$0xff] %v5698_v63  ;;  %v5701_v19 = vpop.f32.mrb[53].mxu1  ;;  %2780 = vmatpush1.bf16.msra.mxu1 %v4927_v54 }
 0x28f   : > { %v2176_v17 = vmax.f32 %v2064_v50, 0.0  ;;  %6392 = vst [vmem:[#allocation22_spill] sm:$0xff] %v5701_v19  ;;  %3017 = vmatprep.subr.bf16.mxu1 %v6368_v2 }
 0x290   : > { %v2177_v49 = vmax.f32 %v2065_v1, 0.0  ;;  %v5704_v1 = vpop.f32.mrb[54].mxu1 }
 0x291   : > { %v5691_v34 = vpack.c.bf16 %v2176_v17, %v2174_v42  ;;  %6393 = vst [vmem:[#allocation23_spill] sm:$0xff] %v5704_v1 }
 0x292   : > { %v5693_v47 = vpack.c.bf16 %v2177_v49, %v2175_v11  ;;  %v1729_v31 = vpop.f32.mrb[44].mxu0  ;;  %v5707_v11 = vpop.f32.mrb[55].mxu1 }
 0x293   : > { %6389 = vst [vmem:[#allocation19_spill] sm:$0xff] %v5691_v34  ;;  %v2066_v60 = vadd.f32 %v5478_v35, %v1729_v31  ;;  %v1731_v59 = vpop.f32.mrb[45].mxu0  ;;  %6394 = vst [vmem:[#allocation24_spill] sm:$0xff] %v5707_v11 }
 0x294   : > { %6390 = vst [vmem:[#allocation20_spill] sm:$0xff] %v5693_v47  ;;  %v2067_v50 = vadd.f32 %v5482_v37, %v1731_v59  ;;  %v1733_v8 = vpop.f32.mrb[46].mxu0 }
 0x295   : > { %v2068_v42 = vadd.f32 %v5478_v35, %v1733_v8  ;;  %v1735_v17 = vpop.f32.mrb[47].mxu0  ;;  %v2178_v34 = vmax.f32 %v2066_v60, 0.0 }
 0x296   : > { %v2069_v49 = vadd.f32 %v5482_v37, %v1735_v17  ;;  %v2179_v47 = vmax.f32 %v2067_v50, 0.0 }
 0x297   : > { %v2180_v31 = vmax.f32 %v2068_v42, 0.0 }
 0x298   : > { %v2181_v63 = vmax.f32 %v2069_v49, 0.0 }
 0x299   : > { %v5711_v19 = vpack.c.bf16 %v2180_v31, %v2178_v34 }
 0x29a   : > { %v5713_v59 = vpack.c.bf16 %v2181_v63, %v2179_v47  ;;  %v1739_v54 = vpop.f32.mrb[48].mxu0 }
 0x29b   : > { %6395 = vst [vmem:[#allocation25_spill] sm:$0xff] %v5711_v19  ;;  %v2070_v1 = vadd.f32 %v5478_v35, %v1739_v54  ;;  %v1741_v6 = vpop.f32.mrb[49].mxu0 }
 0x29c   : > { %6396 = vst [vmem:[#allocation26_spill] sm:$0xff] %v5713_v59  ;;  %v2071_v8 = vadd.f32 %v5482_v37, %v1741_v6  ;;  %v1743_v56 = vpop.f32.mrb[50].mxu0 }
 0x29d   : > { %v2072_v11 = vadd.f32 %v5478_v35, %v1743_v56  ;;  %v1745_v2 = vpop.f32.mrb[51].mxu0  ;;  %v2182_v60 = vmax.f32 %v2070_v1, 0.0 }
 0x29e   : > { %v2073_v17 = vadd.f32 %v5482_v37, %v1745_v2  ;;  %v2183_v50 = vmax.f32 %v2071_v8, 0.0 }
 0x29f   : > { %v2184_v42 = vmax.f32 %v2072_v11, 0.0 }
 0x2a0   : > { %v2185_v49 = vmax.f32 %v2073_v17, 0.0 }
 0x2a1   : > { %v2270_v34 = vpack.c.bf16 %v2184_v42, %v2182_v60 }
 0x2a2   : > { %v2271_v31 = vpack.c.bf16 %v2185_v49, %v2183_v50  ;;  %v1749_v47 = vpop.f32.mrb[52].mxu0 }
 0x2a3   : > { %v2074_v63 = vadd.f32 %v5478_v35, %v1749_v47  ;;  %v1751_v19 = vpop.f32.mrb[53].mxu0 }
 0x2a4   : > { %v2075_v54 = vadd.f32 %v5482_v37, %v1751_v19  ;;  %v1753_v59 = vpop.f32.mrb[54].mxu0  ;;  %4221 = vmatprep.mubr.msk.bf16.mxu1 %vm2443_vm2, %v2271_v31 }
 0x2a5   : > { %v2076_v56 = vadd.f32 %v5478_v35, %v1753_v59  ;;  %v1755_v6 = vpop.f32.mrb[55].mxu0  ;;  %2567 = vmatmul.mubr.bf16.gmra.mrb[80].mxu1 %v2270_v34  ;;  %v2186_v1 = vmax.f32 %v2074_v63, 0.0 }
 0x2a6   : > { %v2077_v2 = vadd.f32 %v5482_v37, %v1755_v6  ;;  %v2187_v8 = vmax.f32 %v2075_v54, 0.0 }
 0x2a7   : > { %v2188_v11 = vmax.f32 %v2076_v56, 0.0 }
 0x2a8   : > { %v2189_v17 = vmax.f32 %v2077_v2, 0.0 }
 0x2a9   : > { %v2272_v60 = vpack.c.bf16 %v2188_v11, %v2186_v1 }
 0x2aa   : > { %v2273_v42 = vpack.c.bf16 %v2189_v17, %v2187_v8  ;;  %v1759_v50 = vpop.f32.mrb[56].mxu0 }
 0x2ab   : > { %v4560_v49 = vadd.f32 %v1759_v50, %v5453_v21  ;;  %v1761_v47 = vpop.f32.mrb[57].mxu0 }
 0x2ac   : > { %v4561_v19 = vadd.f32 %v1761_v47, %v5456_v22  ;;  %v1763_v44 = vpop.f32.mrb[58].mxu0  ;;  %4222 = vmatprep.mubr.msk.bf16.mxu1 %vm2443_vm2, %v2273_v42 }
 0x2ad   : > { %v2078_v59 = vadd.f32 %v4560_v49, %v5478_v35  ;;  %v4562_v34 = vadd.f32 %v1763_v44, %v5458_v23  ;;  %v1765_v31 = vpop.f32.mrb[59].mxu0  ;;  %2575 = vmatmul.mubr.bf16.gmra.mrb[84].mxu1 %v2272_v60 }
 0x2ae   : > { %v2079_v63 = vadd.f32 %v4561_v19, %v5482_v37  ;;  %v4563_v54 = vadd.f32 %v1765_v31, %v5460_v24 }
 0x2af   : > { %v2080_v56 = vadd.f32 %v4562_v34, %v5478_v35  ;;  %v2190_v6 = vmax.f32 %v2078_v59, 0.0 }
 0x2b0   : > { %v2081_v21 = vadd.f32 %v4563_v54, %v5482_v37  ;;  %v2191_v22 = vmax.f32 %v2079_v63, 0.0 }
 0x2b1   : > { %v2192_v2 = vmax.f32 %v2080_v56, 0.0 }
 0x2b2   : > { %v2193_v1 = vmax.f32 %v2081_v21, 0.0  ;;  %v1769_v11 = vpop.f32.mrb[60].mxu0 }
 0x2b3   : > { %v4564_v8 = vadd.f32 %v1769_v11, %v5464_v27  ;;  %v1771_v17 = vpop.f32.mrb[61].mxu0  ;;  %v5734_v42 = vpack.c.bf16 %v2192_v2, %v2190_v6 }
 0x2b4   : > { %v5736_v23 = vpack.c.bf16 %v2193_v1, %v2191_v22  ;;  %v4565_v44 = vadd.f32 %v1771_v17, %v5467_v28  ;;  %v1773_v60 = vpop.f32.mrb[62].mxu0 }
 0x2b5   : > { %v2082_v24 = vadd.f32 %v4564_v8, %v5478_v35  ;;  %v4566_v50 = vadd.f32 %v1773_v60, %v5469_v29  ;;  %v1775_v49 = vpop.f32.mrb[63].mxu0 }
 0x2b6   : > { %v2083_v47 = vadd.f32 %v4565_v44, %v5482_v37  ;;  %v4567_v19 = vadd.f32 %v1775_v49, %v5471_v30 }
 0x2b7   : > { %v2084_v59 = vadd.f32 %v4566_v50, %v5478_v35  ;;  %v2194_v34 = vmax.f32 %v2082_v24, 0.0 }
 0x2b8   : > { %v2085_v27 = vadd.f32 %v4567_v19, %v5482_v37  ;;  %v2195_v63 = vmax.f32 %v2083_v47, 0.0 }
 0x2b9   : > { %v2196_v31 = vmax.f32 %v2084_v59, 0.0 }
 0x2ba   : > { %v2197_v54 = vmax.f32 %v2085_v27, 0.0  ;;  %v1779_v56 = vpop.f32.mrb[64].mxu0 }
 0x2bb   : > { %v4568_v28 = vadd.f32 %v1779_v56, %v5480_v36  ;;  %v1781_v21 = vpop.f32.mrb[65].mxu0  ;;  %v5746_v6 = vpack.c.bf16 %v2196_v31, %v2194_v34 }
 0x2bc   : > { %v5748_v29 = vpack.c.bf16 %v2197_v54, %v2195_v63  ;;  %v4569_v2 = vadd.f32 %v1781_v21, %v5485_v38  ;;  %v1783_v22 = vpop.f32.mrb[66].mxu0 }
 0x2bd   : > { %v2086_v30 = vadd.f32 %v4568_v28, %v5478_v35  ;;  %v4570_v1 = vadd.f32 %v1783_v22, %v5487_v39  ;;  %v1785_v11 = vpop.f32.mrb[67].mxu0 }
 0x2be   : > { %v2087_v8 = vadd.f32 %v4569_v2, %v5482_v37  ;;  %v4571_v17 = vadd.f32 %v1785_v11, %v5489_v41 }
 0x2bf   : > { %v2088_v44 = vadd.f32 %v4570_v1, %v5478_v35  ;;  %v2198_v60 = vmax.f32 %v2086_v30, 0.0 }
 0x2c0   : > { %v2089_v36 = vadd.f32 %v4571_v17, %v5482_v37  ;;  %v2199_v50 = vmax.f32 %v2087_v8, 0.0 }
 0x2c1   : > { %v2200_v24 = vmax.f32 %v2088_v44, 0.0 }
 0x2c2   : > { %v2201_v49 = vmax.f32 %v2089_v36, 0.0  ;;  %v1789_v47 = vpop.f32.mrb[68].mxu0 }
 0x2c3   : > { %v4572_v38 = vadd.f32 %v1789_v47, %v5497_v52  ;;  %v1791_v19 = vpop.f32.mrb[69].mxu0  ;;  %v2278_v59 = vpack.c.bf16 %v2200_v24, %v2198_v60 }
 0x2c4   : > { %v2279_v27 = vpack.c.bf16 %v2201_v49, %v2199_v50  ;;  %v4573_v39 = vadd.f32 %v1791_v19, %v5499_v55  ;;  %v1793_v34 = vpop.f32.mrb[70].mxu0 }
 0x2c5   : > { %v2090_v31 = vadd.f32 %v4572_v38, %v5478_v35  ;;  %v4574_v41 = vadd.f32 %v1793_v34, %v5501_v57  ;;  %v1795_v63 = vpop.f32.mrb[71].mxu0 }
 0x2c6   : > { %v2091_v54 = vadd.f32 %v4573_v39, %v5482_v37  ;;  %v4575_v56 = vadd.f32 %v1795_v63, %v5506_v61  ;;  %4223 = vmatprep.mubr.msk.bf16.mxu1 %vm2443_vm2, %v2279_v27 }
 0x2c7   : > { %v2092_v28 = vadd.f32 %v4574_v41, %v5478_v35  ;;  %2583 = vmatmul.mubr.bf16.gmra.mrb[88].mxu1 %v2278_v59  ;;  %v2202_v21 = vmax.f32 %v2090_v31, 0.0 }
 0x2c8   : > { %v2093_v52 = vadd.f32 %v4575_v56, %v5482_v37  ;;  %v2203_v55 = vmax.f32 %v2091_v54, 0.0 }
 0x2c9   : > { %v2204_v2 = vmax.f32 %v2092_v28, 0.0 }
 0x2ca   : > { %v2205_v22 = vmax.f32 %v2093_v52, 0.0  ;;  %v1799_v30 = vpop.f32.mrb[72].mxu0 }
 0x2cb   : > { %v4576_v1 = vadd.f32 %v1799_v30, %v5517_v9  ;;  %v1801_v57 = vpop.f32.mrb[73].mxu0  ;;  %v2280_v11 = vpack.c.bf16 %v2204_v2, %v2202_v21 }
 0x2cc   : > { %v2281_v8 = vpack.c.bf16 %v2205_v22, %v2203_v55  ;;  %v4577_v17 = vadd.f32 %v1801_v57, %v5519_v12  ;;  %v1803_v61 = vpop.f32.mrb[74].mxu0 }
 0x2cd   : > { %v2094_v44 = vadd.f32 %v4576_v1, %v5478_v35  ;;  %v4578_v36 = vadd.f32 %v1803_v61, %v5521_v14  ;;  %v1805_v60 = vpop.f32.mrb[75].mxu0 }
 0x2ce   : > { %v2095_v24 = vadd.f32 %v4577_v17, %v5482_v37  ;;  %v4579_v50 = vadd.f32 %v1805_v60, %v5526_v18  ;;  %4224 = vmatprep.mubr.msk.bf16.mxu1 %vm2443_vm2, %v2281_v8 }
 0x2cf   : > { %v2096_v49 = vadd.f32 %v4578_v36, %v5478_v35  ;;  %2591 = vmatmul.mubr.bf16.gmra.mrb[92].mxu1 %v2280_v11  ;;  %v2206_v47 = vmax.f32 %v2094_v44, 0.0 }
 0x2d0   : > { %v2097_v9 = vadd.f32 %v4579_v50, %v5482_v37  ;;  %v2207_v12 = vmax.f32 %v2095_v24, 0.0 }
 0x2d1   : > { %v2208_v38 = vmax.f32 %v2096_v49, 0.0 }
 0x2d2   : > { %v2209_v19 = vmax.f32 %v2097_v9, 0.0  ;;  %v1809_v59 = vpop.f32.mrb[76].mxu0 }
 0x2d3   : > { %v4580_v27 = vadd.f32 %v1809_v59, %v5538_v43  ;;  %v1811_v14 = vpop.f32.mrb[77].mxu0  ;;  %v5776_v39 = vpack.c.bf16 %v2208_v38, %v2206_v47 }
 0x2d4   : > { %v5778_v34 = vpack.c.bf16 %v2209_v19, %v2207_v12  ;;  %v4581_v18 = vadd.f32 %v1811_v14, %v5540_v46  ;;  %v1813_v31 = vpop.f32.mrb[78].mxu0 }
 0x2d5   : > { %v2098_v41 = vadd.f32 %v4580_v27, %v5478_v35  ;;  %v4582_v63 = vadd.f32 %v1813_v31, %v5544_v48  ;;  %v1815_v54 = vpop.f32.mrb[79].mxu0 }
 0x2d6   : > { %v2099_v56 = vadd.f32 %v4581_v18, %v5482_v37  ;;  %v4583_v28 = vadd.f32 %v1815_v54, %v5551_v53 }
 0x2d7   : > { %v2100_v52 = vadd.f32 %v4582_v63, %v5478_v35  ;;  %v2210_v21 = vmax.f32 %v2098_v41, 0.0 }
 0x2d8   : > { %v2101_v43 = vadd.f32 %v4583_v28, %v5482_v37  ;;  %v2211_v55 = vmax.f32 %v2099_v56, 0.0 }
 0x2d9   : > { %v2212_v2 = vmax.f32 %v2100_v52, 0.0 }
 0x2da   : > { %v2213_v22 = vmax.f32 %v2101_v43, 0.0  ;;  %v1819_v30 = vpop.f32.mrb[80].mxu0 }
 0x2db   : > { %v4584_v46 = vadd.f32 %v1819_v30, %v5562_v4  ;;  %v1821_v1 = vpop.f32.mrb[81].mxu0  ;;  %v5788_v57 = vpack.c.bf16 %v2212_v2, %v2210_v21 }
 0x2dc   : > { %v5790_v48 = vpack.c.bf16 %v2213_v22, %v2211_v55  ;;  %v4585_v11 = vadd.f32 %v1821_v1, %v5564_v7  ;;  %v1823_v8 = vpop.f32.mrb[82].mxu0 }
 0x2dd   : > { %v2102_v53 = vadd.f32 %v4584_v46, %v5478_v35  ;;  %v4586_v17 = vadd.f32 %v1823_v8, %v5568_v10  ;;  %v1825_v61 = vpop.f32.mrb[83].mxu0 }
 0x2de   : > { %v2103_v44 = vadd.f32 %v4585_v11, %v5482_v37  ;;  %v4587_v36 = vadd.f32 %v1825_v61, %v5572_v15 }
 0x2df   : > { %v2104_v60 = vadd.f32 %v4586_v17, %v5478_v35  ;;  %v2214_v24 = vmax.f32 %v2102_v53, 0.0 }
 0x2e0   : > { %v2105_v4 = vadd.f32 %v4587_v36, %v5482_v37  ;;  %v2215_v49 = vmax.f32 %v2103_v44, 0.0 }
 0x2e1   : > { %v2216_v50 = vmax.f32 %v2104_v60, 0.0 }
 0x2e2   : > { %v2217_v9 = vmax.f32 %v2105_v4, 0.0  ;;  %v1829_v47 = vpop.f32.mrb[84].mxu0 }
 0x2e3   : > { %v4588_v7 = vadd.f32 %v1829_v47, %v5583_v40  ;;  %v1831_v38 = vpop.f32.mrb[85].mxu0  ;;  %v2286_v12 = vpack.c.bf16 %v2216_v50, %v2214_v24 }
 0x2e4   : > { %v2287_v19 = vpack.c.bf16 %v2217_v9, %v2215_v49  ;;  %v4589_v10 = vadd.f32 %v1831_v38, %v5585_v45  ;;  %v1833_v59 = vpop.f32.mrb[86].mxu0 }
 0x2e5   : > { %v2106_v27 = vadd.f32 %v4588_v7, %v5478_v35  ;;  %v4590_v15 = vadd.f32 %v1833_v59, %v5587_v51  ;;  %v1835_v14 = vpop.f32.mrb[87].mxu0 }
 0x2e6   : > { %v2107_v18 = vadd.f32 %v4589_v10, %v5482_v37  ;;  %v4591_v31 = vadd.f32 %v1835_v14, %v5589_v58  ;;  %4225 = vmatprep.mubr.msk.bf16.mxu1 %vm2443_vm2, %v2287_v19 }
 0x2e7   : > { %v2108_v41 = vadd.f32 %v4590_v15, %v5478_v35  ;;  %2599 = vmatmul.mubr.bf16.gmra.mrb[96].mxu1 %v2286_v12  ;;  %v2218_v63 = vmax.f32 %v2106_v27, 0.0 }
 0x2e8   : > { %v2109_v40 = vadd.f32 %v4591_v31, %v5482_v37  ;;  %v2219_v45 = vmax.f32 %v2107_v18, 0.0 }
 0x2e9   : > { %v2220_v54 = vmax.f32 %v2108_v41, 0.0 }
 0x2ea   : > { %v2221_v56 = vmax.f32 %v2109_v40, 0.0  ;;  %v1839_v28 = vpop.f32.mrb[88].mxu0 }
 0x2eb   : > { %v4592_v52 = vadd.f32 %v1839_v28, %v5600_v16  ;;  %v1841_v51 = vpop.f32.mrb[89].mxu0  ;;  %v2288_v43 = vpack.c.bf16 %v2220_v54, %v2218_v63  ;;  %v6397_v63 = vld [vmem:[#allocation10_spill] sm:$0xff] }
 0x2ec   : > { %v2289_v21 = vpack.c.bf16 %v2221_v56, %v2219_v45  ;;  %v4593_v2 = vadd.f32 %v1841_v51, %v5602_v20  ;;  %v1843_v58 = vpop.f32.mrb[90].mxu0 }
 0x2ed   : > { %v2110_v55 = vadd.f32 %v4592_v52, %v5478_v35  ;;  %v4594_v22 = vadd.f32 %v1843_v58, %v5604_v26  ;;  %v1845_v30 = vpop.f32.mrb[91].mxu0 }
 0x2ee   : > { %v2111_v46 = vadd.f32 %v4593_v2, %v5482_v37  ;;  %v4595_v1 = vadd.f32 %v1845_v30, %v5606_v33  ;;  %4226 = vmatprep.mubr.msk.bf16.mxu1 %vm2443_vm2, %v2289_v21 }
 0x2ef   : > { %v2112_v11 = vadd.f32 %v4594_v22, %v5478_v35  ;;  %2607 = vmatmul.mubr.bf16.gmra.mrb[100].mxu1 %v2288_v43  ;;  %v2222_v8 = vmax.f32 %v2110_v55, 0.0 }
 0x2f0   : > { %v2113_v16 = vadd.f32 %v4595_v1, %v5482_v37  ;;  %v2223_v20 = vmax.f32 %v2111_v46, 0.0  ;;  %v6400_v1 = vld [vmem:[#allocation13_spill] sm:$0xff] }
 0x2f1   : > { %v2224_v53 = vmax.f32 %v2112_v11, 0.0 }
 0x2f2   : > { %v2225_v17 = vmax.f32 %v2113_v16, 0.0  ;;  %v1849_v61 = vpop.f32.mrb[92].mxu0 }
 0x2f3   : > { %v4596_v44 = vadd.f32 %v1849_v61, %v5617_v0  ;;  %v1851_v26 = vpop.f32.mrb[93].mxu0  ;;  %v5818_v36 = vpack.c.bf16 %v2224_v53, %v2222_v8  ;;  %v6401_v53 = vld [vmem:[#allocation14_spill] sm:$0xff] }
 0x2f4   : > { %v5820_v60 = vpack.c.bf16 %v2225_v17, %v2223_v20  ;;  %v4597_v33 = vadd.f32 %v1851_v26, %v5619_v5  ;;  %v1853_v4 = vpop.f32.mrb[94].mxu0 }
 0x2f5   : > { %v2114_v24 = vadd.f32 %v4596_v44, %v5478_v35  ;;  %v4598_v50 = vadd.f32 %v1853_v4, %v5623_v13  ;;  %v1855_v49 = vpop.f32.mrb[95].mxu0 }
 0x2f6   : > { %v2115_v9 = vadd.f32 %v4597_v33, %v5482_v37  ;;  %v4599_v47 = vadd.f32 %v1855_v49, %v5627_v25 }
 0x2f7   : > { %v2116_v7 = vadd.f32 %v4598_v50, %v5478_v35  ;;  %v2226_v38 = vmax.f32 %v2114_v24, 0.0  ;;  %v6402_v50 = vld [vmem:[#allocation15_spill] sm:$0xff] }
 0x2f8   : > { %v2117_v0 = vadd.f32 %v4599_v47, %v5482_v37  ;;  %v2227_v19 = vmax.f32 %v2115_v9, 0.0 }
 0x2f9   : > { %v2228_v12 = vmax.f32 %v2116_v7, 0.0 }
 0x2fa   : > { %v2229_v10 = vmax.f32 %v2117_v0, 0.0  ;;  %v1859_v59 = vpop.f32.mrb[96].mxu0  ;;  %v6403_v0 = vld [vmem:[#allocation16_spill] sm:$0xff] }
 0x2fb   : > { %v4600_v5 = vadd.f32 %v1859_v59, %v5637_v62  ;;  %v1861_v27 = vpop.f32.mrb[97].mxu0  ;;  %v5830_v15 = vpack.c.bf16 %v2228_v12, %v2226_v38 }
 0x2fc   : > { %v5832_v13 = vpack.c.bf16 %v2229_v10, %v2227_v19  ;;  %v4601_v14 = vadd.f32 %v1861_v27, %v5639_v3  ;;  %v1863_v18 = vpop.f32.mrb[98].mxu0  ;;  %v6398_v3 = vld [vmem:[#allocation11_spill] sm:$0xff]  ;;  %v6404_v10 = vld [vmem:[#allocation17_spill] sm:$0xff] }
 0x2fd   : > { %v2118_v25 = vadd.f32 %v4600_v5, %v5478_v35  ;;  %v4602_v31 = vadd.f32 %v1863_v18, %v5643_v32  ;;  %v1865_v41 = vpop.f32.mrb[99].mxu0  ;;  %v6399_v32 = vld [vmem:[#allocation12_spill] sm:$0xff] }
 0x2fe   : > { %v2119_v40 = vadd.f32 %v4601_v14, %v5482_v37  ;;  %v4603_v54 = vadd.f32 %v1865_v41, %v6397_v63  ;;  %v6405_v14 = vld [vmem:[#allocation18_spill] sm:$0xff]  ;;  %v6406_v41 = vmov 0  }
 0x2ff   : > { %v2120_v45 = vadd.f32 %v4602_v31, %v5478_v35  ;;  %v2230_v56 = vmax.f32 %v2118_v25, 0.0 }
 0x300   : > { %v2121_v62 = vadd.f32 %v4603_v54, %v5482_v37  ;;  %v2231_v52 = vmax.f32 %v2119_v40, 0.0 }
 0x301   : > { %v2232_v28 = vmax.f32 %v2120_v45, 0.0 }
 0x302   : > { %v2233_v51 = vmax.f32 %v2121_v62, 0.0  ;;  %v1869_v43 = vpop.f32.mrb[100].mxu0 }
 0x303   : > { %v4604_v21 = vadd.f32 %v1869_v43, %v6398_v3  ;;  %v1871_v2 = vpop.f32.mrb[101].mxu0  ;;  %v2294_v58 = vpack.c.bf16 %v2232_v28, %v2230_v56  ;;  %v6407_v56 = vld [vmem:[#allocation21_spill] sm:$0xff]  ;;  %v6408_v3 = vld [vmem:[#allocation22_spill] sm:$0xff] }
 0x304   : > { %v2295_v55 = vpack.c.bf16 %v2233_v51, %v2231_v52  ;;  %v4605_v22 = vadd.f32 %v1871_v2, %v6399_v32  ;;  %v1873_v30 = vpop.f32.mrb[102].mxu0  ;;  %v6409_v32 = vld [vmem:[#allocation23_spill] sm:$0xff] }
 0x305   : > { %v2122_v46 = vadd.f32 %v4604_v21, %v5478_v35  ;;  %v4606_v11 = vadd.f32 %v1873_v30, %v6400_v1  ;;  %v1875_v16 = vpop.f32.mrb[103].mxu0  ;;  %v6410_v1 = vld [vmem:[#allocation24_spill] sm:$0xff] }
 0x306   : > { %v2123_v8 = vadd.f32 %v4605_v22, %v5482_v37  ;;  %v4607_v20 = vadd.f32 %v1875_v16, %v6401_v53  ;;  %4227 = vmatprep.mubr.msk.bf16.mxu1 %vm2443_vm2, %v2295_v55 }
 0x307   : > { %v2124_v17 = vadd.f32 %v4606_v11, %v5478_v35  ;;  %2615 = vmatmul.mubr.bf16.gmra.mrb[104].mxu1 %v2294_v58  ;;  %v2234_v44 = vmax.f32 %v2122_v46, 0.0  ;;  %v4928_v58 = vld [vmem:[%s6352_s3 + $0xe0] sm:$0xff]  }
 0x308   : > { %v2125_v61 = vadd.f32 %v4607_v20, %v5482_v37  ;;  %v2235_v33 = vmax.f32 %v2123_v8, 0.0  ;;  %v4929_v20 = vld [vmem:[%s6352_s3 + $0xe8] sm:$0xff]  }
 0x309   : > { %v2236_v26 = vmax.f32 %v2124_v17, 0.0 }
 0x30a   : > { %v2237_v4 = vmax.f32 %v2125_v61, 0.0  ;;  %v1879_v24 = vpop.f32.mrb[104].mxu0 }
 0x30b   : > { %v4608_v49 = vadd.f32 %v1879_v24, %v6402_v50  ;;  %v1881_v9 = vpop.f32.mrb[105].mxu0  ;;  %v2296_v47 = vpack.c.bf16 %v2236_v26, %v2234_v44  ;;  %v4930_v50 = vld [vmem:[%s6352_s3 + $0xf0] sm:$0xff]  }
 0x30c   : > { %v2297_v7 = vpack.c.bf16 %v2237_v4, %v2235_v33  ;;  %v4609_v38 = vadd.f32 %v1881_v9, %v6403_v0  ;;  %v1883_v12 = vpop.f32.mrb[106].mxu0  ;;  %v6411_v9 = vld [vmem:[#allocation3_spill] sm:$0xff] }
 0x30d   : > { %v2126_v19 = vadd.f32 %v4608_v49, %v5478_v35  ;;  %v4610_v59 = vadd.f32 %v1883_v12, %v6404_v10  ;;  %v1885_v5 = vpop.f32.mrb[107].mxu0  ;;  %v4932_v12 = vld [vmem:[%s6352_s3 + $0x100] sm:$0xff]   ;;  %v6413_v10 = vld [vmem:[#allocation5_spill] sm:$0xff] }
 0x30e   : > { %v2127_v27 = vadd.f32 %v4609_v38, %v5482_v37  ;;  %v4611_v18 = vadd.f32 %v1885_v5, %v6405_v14  ;;  %4228 = vmatprep.mubr.msk.bf16.mxu1 %vm2443_vm2, %v2297_v7  ;;  %v4934_v5 = vld [vmem:[%s6352_s3 + $0x110] sm:$0xff]   ;;  %v6415_v14 = vld [vmem:[#allocation7_spill] sm:$0xff] }
 0x30f   : > { %v2128_v25 = vadd.f32 %v4610_v59, %v5478_v35  ;;  %2623 = vmatmul.mubr.bf16.gmra.mrb[108].mxu1 %v2296_v47  ;;  %v2238_v40 = vmax.f32 %v2126_v19, 0.0  ;;  %v4931_v47 = vld [vmem:[%s6352_s3 + $0xf8] sm:$0xff]   ;;  %v6412_v19 = vld [vmem:[#allocation2_spill] sm:$0xff]  ;;  %v4933_v59 = vld [vmem:[%s6352_s3 + $0x108] sm:$0xff]  }
 0x310   : > { %v2129_v31 = vadd.f32 %v4611_v18, %v5482_v37  ;;  %2785 = vmatprep.mubr.bf16.mxu1 %v6406_v41  ;;  %v2239_v54 = vmax.f32 %v2127_v27, 0.0  ;;  %v6414_v27 = vld [vmem:[#allocation4_spill] sm:$0xff]  ;;  %v4935_v18 = vld [vmem:[%s6352_s3 + $0x118] sm:$0xff]  }
 0x311   : > { %v2240_v63 = vmax.f32 %v2128_v25, 0.0  ;;  %v4936_v25 = vld [vmem:[%s6352_s3 + $0x120] sm:$0xff]  }
 0x312   : > { %v2241_v45 = vmax.f32 %v2129_v31, 0.0  ;;  %v1889_v62 = vpop.f32.mrb[108].mxu0  ;;  %v6416_v31 = vld [vmem:[#allocation6_spill] sm:$0xff] }
 0x313   : > { %v4612_v28 = vadd.f32 %v1889_v62, %v6407_v56  ;;  %v1891_v52 = vpop.f32.mrb[109].mxu0  ;;  %v5861_v51 = vpack.c.bf16 %v2240_v63, %v2238_v40  ;;  %v6417_v63 = vld [vmem:[#allocation9_spill] sm:$0xff] }
 0x314   : > { %v5863_v43 = vpack.c.bf16 %v2241_v45, %v2239_v54  ;;  %v4613_v21 = vadd.f32 %v1891_v52, %v6408_v3  ;;  %v1893_v2 = vpop.f32.mrb[110].mxu0  ;;  %v4937_v54 = vld [vmem:[%s6352_s3 + $0x128] sm:$0xff]   ;;  %v6418_v52 = vld [vmem:[#allocation8_spill] sm:$0xff] }
 0x315   : > { %v2130_v55 = vadd.f32 %v4612_v28, %v5478_v35  ;;  %v4614_v22 = vadd.f32 %v1893_v2, %v6409_v32  ;;  %v1895_v30 = vpop.f32.mrb[111].mxu0  ;;  %v4938_v28 = vld [vmem:[%s6352_s3 + $0x130] sm:$0xff]   ;;  %v4939_v2 = vld [vmem:[%s6352_s3 + $0x138] sm:$0xff]  }
 0x316   : > { %v2131_v46 = vadd.f32 %v4613_v21, %v5482_v37  ;;  %v4615_v11 = vadd.f32 %v1895_v30, %v6410_v1  ;;  %v6419_v21 = vld [vmem:[#allocation20_spill] sm:$0xff]  ;;  %v6420_v30 = vld [vmem:[#allocation19_spill] sm:$0xff] }
 0x317   : > { %v2132_v16 = vadd.f32 %v4614_v22, %v5478_v35  ;;  %2786 = vmatmul.mubr.bf16.vlgmr.msra.gmra.mrb[112].mxu1 %v6406_v41  ;;  %v2242_v17 = vmax.f32 %v2130_v55, 0.0  ;;  %v4940_v22 = vld [vmem:[%s6352_s3 + $0x140] sm:$0xff]   ;;  %v4941_v1 = vld [vmem:[%s6352_s3 + $0x148] sm:$0xff]  }
 0x318   : > { %v2133_v8 = vadd.f32 %v4615_v11, %v5482_v37  ;;  %v5876_v53 = vpop.f32.mrb[56].mxu1  ;;  %3018 = vmatpush1.bf16.msra.mxu1 %v4928_v58  ;;  %2793 = vmatprep.mubr.bf16.mxu1 %v6406_v41  ;;  %v2243_v26 = vmax.f32 %v2131_v46, 0.0  ;;  %v6421_v46 = vld [vmem:[#allocation26_spill] sm:$0xff]  ;;  %v6422_v11 = vld [vmem:[#allocation25_spill] sm:$0xff] }
 0x319   : > { %v2244_v61 = vmax.f32 %v2132_v16, 0.0  ;;  %v2522_v44 = vpop.f32.mrb[57].mxu1  ;;  %3019 = vmatprep.subr.bf16.mxu1 %v6406_v41 }
 0x31a   : > { %v2245_v35 = vmax.f32 %v2133_v8, 0.0  ;;  %v5883_v33 = vpop.f32.mrb[58].mxu1 }
 0x31b   : > { %v2525_v4 = vpop.f32.mrb[59].mxu1  ;;  %v5885_v37 = vpack.c.bf16 %v2244_v61, %v2242_v17 }
 0x31c   : > { %v5887_v24 = vpack.c.bf16 %v2245_v35, %v2243_v26  ;;  %3020 = vmatpush1.bf16.msra.mxu1 %v4929_v20 }
 0x31d   : > { %3021 = vmatprep.subr.bf16.mxu1 %v6406_v41 }
 0x31f   : > { %2794 = vmatmul.mubr.bf16.gmra.mrb[116].mxu1 %v6406_v41 }
 0x320   : > { %v5894_v49 = vpop.f32.mrb[60].mxu1  ;;  %4243 = vmatprep.mubr.msk.bf16.mxu1 %vm2443_vm2, %v6411_v9  ;;  %3022 = vmatpush1.bf16.msra.mxu1 %v4930_v50 }
 0x321   : > { %v2530_v7 = vpop.f32.mrb[61].mxu1  ;;  %3023 = vmatprep.subr.bf16.mxu1 %v6406_v41 }
 0x322   : > { %v5902_v0 = vpop.f32.mrb[62].mxu1 }
 0x323   : > { %v2533_v38 = vpop.f32.mrb[63].mxu1 }
 0x324   : > { %3024 = vmatpush1.bf16.msra.mxu1 %v4931_v47 }
 0x325   : > { %3025 = vmatprep.subr.bf16.mxu1 %v6406_v41 }
 0x327   : > { %2802 = vmatmul.mubr.bf16.gmra.mrb[120].mxu1 %v6412_v19 }
 0x328   : > { %4244 = vmatprep.mubr.msk.bf16.mxu1 %vm2443_vm2, %v6413_v10  ;;  %3026 = vmatpush1.bf16.msra.mxu1 %v4932_v12 }
 0x329   : > { %3027 = vmatprep.subr.bf16.mxu1 %v6406_v41 }
 0x32c   : > { %3028 = vmatpush1.bf16.msra.mxu1 %v4933_v59 }
 0x32d   : > { %3029 = vmatprep.subr.bf16.mxu1 %v6406_v41 }
 0x32f   : > { %2810 = vmatmul.mubr.bf16.gmra.mrb[124].mxu1 %v6414_v27 }
 0x330   : > { %4245 = vmatprep.mubr.msk.bf16.mxu1 %vm2443_vm2, %v6415_v14  ;;  %3030 = vmatpush1.bf16.msra.mxu1 %v4934_v5 }
 0x331   : > { %3031 = vmatprep.subr.bf16.mxu1 %v6406_v41 }
 0x334   : > { %3032 = vmatpush1.bf16.msra.mxu1 %v4935_v18 }
 0x335   : > { %3033 = vmatprep.subr.bf16.mxu1 %v6406_v41 }
 0x337   : > { %2818 = vmatmul.mubr.bf16.gmra.mrb[128].mxu1 %v6416_v31 }
 0x338   : > { %v5931_v40 = vpop.f32.mrb[64].mxu1  ;;  %4246 = vmatprep.mubr.msk.bf16.mxu1 %vm2443_vm2, %v6417_v63  ;;  %3034 = vmatpush1.bf16.msra.mxu1 %v4936_v25 }
 0x339   : > { %v2538_v45 = vpop.f32.mrb[65].mxu1  ;;  %3035 = vmatprep.subr.bf16.mxu1 %v6406_v41 }
 0x33a   : > { %v5939_v62 = vpop.f32.mrb[66].mxu1 }
 0x33b   : > { %v2541_v56 = vpop.f32.mrb[67].mxu1 }
 0x33c   : > { %3036 = vmatpush1.bf16.msra.mxu1 %v4937_v54 }
 0x33d   : > { %3037 = vmatprep.subr.bf16.mxu1 %v6406_v41 }
 0x33f   : > { %2826 = vmatmul.mubr.bf16.gmra.mrb[132].mxu1 %v6418_v52 }
 0x340   : > { %v5946_v3 = vpop.f32.mrb[68].mxu1  ;;  %4247 = vmatprep.mubr.msk.bf16.mxu1 %vm2443_vm2, %v6419_v21  ;;  %3038 = vmatpush1.bf16.msra.mxu1 %v4938_v28 }
 0x341   : > { %v2546_v58 = vpop.f32.mrb[69].mxu1  ;;  %3039 = vmatprep.subr.bf16.mxu1 %v6406_v41 }
 0x342   : > { %v5954_v55 = vpop.f32.mrb[70].mxu1  ;;  %v4947_v58 = vld [vmem:[%s6354_s5 + $0x60] sm:$0xff]  }
 0x343   : > { %v2549_v32 = vpop.f32.mrb[71].mxu1 }
 0x344   : > { %3040 = vmatpush1.bf16.msra.mxu1 %v4939_v2 }
 0x345   : > { %3041 = vmatprep.subr.bf16.mxu1 %v6406_v41 }
 0x347   : > { %2834 = vmatmul.mubr.bf16.gmra.mrb[136].mxu1 %v6420_v30 }
 0x348   : > { %4248 = vmatprep.mubr.msk.bf16.mxu1 %vm2443_vm2, %v6421_v46  ;;  %3042 = vmatpush1.bf16.msra.mxu1 %v4940_v22 }
 0x349   : > { %3043 = vmatprep.subr.bf16.mxu1 %v6406_v41 }
 0x34c   : > { %3044 = vmatpush1.bf16.msra.mxu1 %v4941_v1 }
 0x34f   : > { %2842 = vmatmul.mubr.bf16.gmra.mrb[140].mxu1 %v6422_v11 }
 0x350   : > { %4249 = vmatprep.mubr.msk.bf16.mxu1 %vm2443_vm2, %v5736_v23 }
 0x357   : > { %2850 = vmatmul.mubr.bf16.gmra.mrb[144].mxu1 %v5734_v42 }
 0x358   : > { %v5971_v16 = vpop.f32.mrb[72].mxu1  ;;  %4250 = vmatprep.mubr.msk.bf16.mxu1 %vm2443_vm2, %v5748_v29 }
 0x359   : > { %v2554_v8 = vpop.f32.mrb[73].mxu1 }
 0x35a   : > { %v5975_v20 = vpop.f32.mrb[74].mxu1 }
 0x35b   : > { %v2557_v17 = vpop.f32.mrb[75].mxu1 }
 0x35f   : > { %2858 = vmatmul.mubr.bf16.gmra.mrb[148].mxu1 %v5746_v6 }
 0x360   : > { %v5978_v61 = vpop.f32.mrb[76].mxu1  ;;  %4251 = vmatprep.mubr.msk.bf16.mxu1 %vm2443_vm2, %v5778_v34 }
 0x361   : > { %v2562_v44 = vpop.f32.mrb[77].mxu1 }
 0x362   : > { %v5982_v26 = vpop.f32.mrb[78].mxu1 }
 0x363   : > { %v2565_v35 = vpop.f32.mrb[79].mxu1 }
 0x367   : > { %2866 = vmatmul.mubr.bf16.gmra.mrb[152].mxu1 %v5776_v39 }
 0x368   : > { %4252 = vmatprep.mubr.msk.bf16.mxu1 %vm2443_vm2, %v5790_v48 }
 0x36f   : > { %2874 = vmatmul.mubr.bf16.gmra.mrb[156].mxu1 %v5788_v57 }
 0x370   : > { %4253 = vmatprep.mubr.msk.bf16.mxu1 %vm2443_vm2, %v5820_v60 }
 0x377   : > { %2882 = vmatmul.mubr.bf16.gmra.mrb[160].mxu1 %v5818_v36 }
 0x378   : > { %v5991_v4 = vpop.f32.mrb[80].mxu1  ;;  %4254 = vmatprep.mubr.msk.bf16.mxu1 %vm2443_vm2, %v5832_v13 }
 0x379   : > { %v2570_v50 = vpop.f32.mrb[81].mxu1 }
 0x37a   : > { %v5995_v47 = vpop.f32.mrb[82].mxu1 }
 0x37b   : > { %v2573_v7 = vpop.f32.mrb[83].mxu1 }
 0x37f   : > { %2890 = vmatmul.mubr.bf16.gmra.mrb[164].mxu1 %v5830_v15 }
 0x380   : > { %v5998_v38 = vpop.f32.mrb[84].mxu1  ;;  %4297 = vmatprep.mubr.msk.bf16.mxu1 %vm2443_vm2, %v6411_v9 }
 0x381   : > { %v2578_v12 = vpop.f32.mrb[85].mxu1 }
 0x382   : > { %v6002_v59 = vpop.f32.mrb[86].mxu1 }
 0x383   : > { %v2581_v5 = vpop.f32.mrb[87].mxu1 }
 0x387   : > { %3050 = vmatmul.mubr.bf16.vlgmr.msra.gmra.mrb[168].mxu1 %v6412_v19 }
 0x388   : > { %4298 = vmatprep.mubr.msk.bf16.mxu1 %vm2443_vm2, %v6413_v10 }
 0x38f   : > { %3058 = vmatmul.mubr.bf16.gmra.mrb[172].mxu1 %v6414_v27 }
 0x390   : > { %4299 = vmatprep.mubr.msk.bf16.mxu1 %vm2443_vm2, %v6415_v14 }
 0x397   : > { %3066 = vmatmul.mubr.bf16.gmra.mrb[176].mxu1 %v6416_v31 }
 0x398   : > { %4300 = vmatprep.mubr.msk.bf16.mxu1 %vm2443_vm2, %v6417_v63 }
 0x39a   : > { %v6013_v9 = vpop.f32.mrb[88].mxu1 }
 0x39b   : > { %v2586_v18 = vpop.f32.mrb[89].mxu1 }
 0x39c   : > { %v6015_v25 = vpop.f32.mrb[90].mxu1 }
 0x39d   : > { %v2589_v54 = vpop.f32.mrb[91].mxu1 }
 0x39f   : > { %3074 = vmatmul.mubr.bf16.gmra.mrb[180].mxu1 %v6418_v52 }
 0x3a0   : > { %4301 = vmatprep.mubr.msk.bf16.mxu1 %vm2443_vm2, %v6419_v21 }
 0x3a2   : > { %v6020_v19 = vpop.f32.mrb[92].mxu1 }
 0x3a3   : > { %v2594_v10 = vpop.f32.mrb[93].mxu1 }
 0x3a4   : > { %v6022_v27 = vpop.f32.mrb[94].mxu1 }
 0x3a5   : > { %v2597_v14 = vpop.f32.mrb[95].mxu1 }
 0x3a7   : > { %3082 = vmatmul.mubr.bf16.gmra.mrb[184].mxu1 %v6420_v30 }
 0x3a8   : > { %4302 = vmatprep.mubr.msk.bf16.mxu1 %vm2443_vm2, %v6421_v46 }
 0x3af   : > { %3090 = vmatmul.mubr.bf16.gmra.mrb[188].mxu1 %v6422_v11 }
 0x3b0   : > { %4303 = vmatprep.mubr.msk.bf16.mxu1 %vm2443_vm2, %v5736_v23 }
 0x3b7   : > { %3098 = vmatmul.mubr.bf16.gmra.mrb[192].mxu1 %v5734_v42 }
 0x3b8   : > { %4304 = vmatprep.mubr.msk.bf16.mxu1 %vm2443_vm2, %v5748_v29  ;;  %v4942_v29 = vld [vmem:[%s6354_s5 + $0x38] sm:$0xff]  }
 0x3b9   : > { %4442 = vmatprep.subr.bf16.mxu1 %v4942_v29 }
 0x3ba   : > { %v6033_v31 = vpop.f32.mrb[96].mxu1  ;;  %4443 = vmatpush3.bf16.msra.mxu1 %v4942_v29 }
 0x3bb   : > { %v2602_v63 = vpop.f32.mrb[97].mxu1 }
 0x3bc   : > { %v6035_v45 = vpop.f32.mrb[98].mxu1 }
 0x3bd   : > { %v2605_v56 = vpop.f32.mrb[99].mxu1 }
 0x3bf   : > { %3106 = vmatmul.mubr.bf16.gmra.mrb[196].mxu1 %v5746_v6  ;;  %v4943_v6 = vld [vmem:[%s6354_s5 + $0x40] sm:$0xff]  }
 0x3c0   : > { %4305 = vmatprep.mubr.msk.bf16.mxu1 %vm2443_vm2, %v5778_v34  ;;  %4444 = vmatprep.subr.bf16.mxu1 %v4943_v6  ;;  %v4944_v34 = vld [vmem:[%s6354_s5 + $0x48] sm:$0xff]  }
 0x3c1   : > { %4445 = vmatpush3.bf16.msra.mxu1 %v4943_v6 }
 0x3c2   : > { %v6040_v28 = vpop.f32.mrb[100].mxu1  ;;  %4446 = vmatprep.subr.bf16.mxu1 %v4944_v34 }
 0x3c3   : > { %v2610_v52 = vpop.f32.mrb[101].mxu1 }
 0x3c4   : > { %v6042_v23 = vpop.f32.mrb[102].mxu1 }
 0x3c5   : > { %v2613_v42 = vpop.f32.mrb[103].mxu1  ;;  %4447 = vmatpush3.bf16.msra.mxu1 %v4944_v34 }
 0x3c7   : > { %3114 = vmatmul.mubr.bf16.gmra.mrb[200].mxu1 %v5776_v39 }
 0x3c8   : > { %4306 = vmatprep.mubr.msk.bf16.mxu1 %vm2443_vm2, %v5790_v48  ;;  %v4945_v48 = vld [vmem:[%s6354_s5 + $0x50] sm:$0xff]  }
 0x3c9   : > { %4448 = vmatprep.subr.bf16.mxu1 %v4945_v48 }
 0x3ca   : > { %4449 = vmatpush3.bf16.msra.mxu1 %v4945_v48 }
 0x3cf   : > { %3122 = vmatmul.mubr.bf16.gmra.mrb[204].mxu1 %v5788_v57 }
 0x3d0   : > { %4307 = vmatprep.mubr.msk.bf16.mxu1 %vm2443_vm2, %v5820_v60 }
 0x3d7   : > { %3130 = vmatmul.mubr.bf16.gmra.mrb[208].mxu1 %v5818_v36  ;;  %v4946_v36 = vld [vmem:[%s6354_s5 + $0x58] sm:$0xff]  }
 0x3d8   : > { %4308 = vmatprep.mubr.msk.bf16.mxu1 %vm2443_vm2, %v5832_v13  ;;  %4450 = vmatprep.subr.bf16.mxu1 %v4946_v36 }
 0x3d9   : > { %4451 = vmatpush3.bf16.msra.mxu1 %v4946_v36 }
 0x3da   : > { %v6062_v39 = vpop.f32.mrb[104].mxu1  ;;  %4452 = vmatprep.subr.bf16.mxu1 %v4947_v58 }
 0x3db   : > { %v2618_v57 = vpop.f32.mrb[105].mxu1 }
 0x3dc   : > { %v6067_v60 = vpop.f32.mrb[106].mxu1 }
 0x3dd   : > { %v2621_v21 = vpop.f32.mrb[107].mxu1  ;;  %4453 = vmatpush3.bf16.msra.mxu1 %v4947_v58 }
 0x3df   : > { %3138 = vmatmul.mubr.bf16.gmra.mrb[212].mxu1 %v5830_v15  ;;  %v4948_v15 = vld [vmem:[%s6354_s5 + $0x68] sm:$0xff]  }
 0x3e0   : > { %4309 = vmatprep.mubr.msk.bf16.mxu1 %vm2443_vm2, %v5863_v43  ;;  %4454 = vmatprep.subr.bf16.mxu1 %v4948_v15 }
 0x3e1   : > { %4455 = vmatpush3.bf16.msra.mxu1 %v4948_v15 }
 0x3e2   : > { %v6075_v13 = vpop.f32.mrb[108].mxu1 }
 0x3e3   : > { %v2626_v2 = vpop.f32.mrb[109].mxu1 }
 0x3e4   : > { %v6080_v32 = vpop.f32.mrb[110].mxu1 }
 0x3e5   : > { %v2629_v22 = vpop.f32.mrb[111].mxu1 }
 0x3e7   : > { %3146 = vmatmul.mubr.bf16.gmra.mrb[216].mxu1 %v5861_v51 }
 0x3e8   : > { %4310 = vmatprep.mubr.msk.bf16.mxu1 %vm2443_vm2, %v5887_v24 }
 0x3ea   : > { %v2787_v43 = vpop.f32.mrb[112].mxu1 }
 0x3eb   : > { %v6089_v30 = vadd.f32 %v2787_v43, %v5876_v53  ;;  %v2789_v46 = vpop.f32.mrb[113].mxu1 }
 0x3ec   : > { %v2790_v1 = vpop.f32.mrb[114].mxu1 }
 0x3ed   : > { %v6092_v11 = vadd.f32 %v2790_v1, %v5883_v33  ;;  %v2792_v8 = vpop.f32.mrb[115].mxu1 }
 0x3ef   : > { %3154 = vmatmul.mubr.bf16.gmra.mrb[220].mxu1 %v5885_v37 }
 0x3f2   : > { %v2795_v51 = vpop.f32.mrb[116].mxu1 }
 0x3f3   : > { %v6096_v17 = vadd.f32 %v2795_v51, %v5894_v49  ;;  %v2797_v44 = vpop.f32.mrb[117].mxu1 }
 0x3f4   : > { %v2798_v24 = vpop.f32.mrb[118].mxu1 }
 0x3f5   : > { %v6099_v35 = vadd.f32 %v2798_v24, %v5902_v0  ;;  %v2800_v50 = vpop.f32.mrb[119].mxu1 }
 0x3fa   : > { %v2803_v53 = vpop.f32.mrb[120].mxu1 }
 0x3fb   : > { %v6102_v7 = vadd.f32 %v2803_v53, %v5931_v40  ;;  %v2805_v12 = vpop.f32.mrb[121].mxu1 }
 0x3fc   : > { %v2806_v33 = vpop.f32.mrb[122].mxu1 }
 0x3fd   : > { %v6105_v5 = vadd.f32 %v2806_v33, %v5939_v62  ;;  %v2808_v37 = vpop.f32.mrb[123].mxu1 }
 0x402   : > { %v2811_v18 = vpop.f32.mrb[124].mxu1 }
 0x403   : > { %v6108_v49 = vadd.f32 %v2811_v18, %v5946_v3  ;;  %v2813_v54 = vpop.f32.mrb[125].mxu1 }
 0x404   : > { %v2814_v10 = vpop.f32.mrb[126].mxu1 }
 0x405   : > { %v6111_v0 = vadd.f32 %v2814_v10, %v5954_v55  ;;  %v2816_v14 = vpop.f32.mrb[127].mxu1 }
 0x40a   : > { %v2819_v63 = vpop.f32.mrb[128].mxu1 }
 0x40b   : > { %v6114_v40 = vadd.f32 %v2819_v63, %v5971_v16  ;;  %v2821_v56 = vpop.f32.mrb[129].mxu1 }
 0x40c   : > { %v2822_v52 = vpop.f32.mrb[130].mxu1 }
 0x40d   : > { %v6117_v62 = vadd.f32 %v2822_v52, %v5975_v20  ;;  %v2824_v42 = vpop.f32.mrb[131].mxu1 }
 0x412   : > { %v2827_v29 = vpop.f32.mrb[132].mxu1 }
 0x413   : > { %v6120_v3 = vadd.f32 %v2827_v29, %v5978_v61  ;;  %v2829_v6 = vpop.f32.mrb[133].mxu1 }
 0x414   : > { %v2830_v34 = vpop.f32.mrb[134].mxu1 }
 0x415   : > { %v6123_v55 = vadd.f32 %v2830_v34, %v5982_v26  ;;  %v2832_v57 = vpop.f32.mrb[135].mxu1 }
 0x41a   : > { %v2835_v48 = vpop.f32.mrb[136].mxu1 }
 0x41b   : > { %v6126_v16 = vadd.f32 %v2835_v48, %v5991_v4  ;;  %v2837_v21 = vpop.f32.mrb[137].mxu1 }
 0x41c   : > { %v2838_v36 = vpop.f32.mrb[138].mxu1 }
 0x41d   : > { %v6129_v20 = vadd.f32 %v2838_v36, %v5995_v47  ;;  %v2840_v2 = vpop.f32.mrb[139].mxu1 }
 0x422   : > { %v2843_v58 = vpop.f32.mrb[140].mxu1 }
 0x423   : > { %v6132_v61 = vadd.f32 %v2843_v58, %v5998_v38  ;;  %v2845_v22 = vpop.f32.mrb[141].mxu1 }
 0x424   : > { %v2846_v15 = vpop.f32.mrb[142].mxu1 }
 0x425   : > { %v6135_v26 = vadd.f32 %v2846_v15, %v6002_v59  ;;  %v2848_v43 = vpop.f32.mrb[143].mxu1 }
 0x42a   : > { %v2851_v46 = vpop.f32.mrb[144].mxu1 }
 0x42b   : > { %v6138_v4 = vadd.f32 %v2851_v46, %v6013_v9  ;;  %v2853_v1 = vpop.f32.mrb[145].mxu1  ;;  %v4949_v9 = vld [vmem:[%s6354_s5] sm:$0xff]  }
 0x42c   : > { %v2854_v8 = vpop.f32.mrb[146].mxu1  ;;  %4472 = vmatprep.subr.bf16.mxu1 %v4949_v9 }
 0x42d   : > { %v6141_v47 = vadd.f32 %v2854_v8, %v6015_v25  ;;  %v2856_v51 = vpop.f32.mrb[147].mxu1 }
 0x432   : > { %v2859_v44 = vpop.f32.mrb[148].mxu1 }
 0x433   : > { %v6144_v38 = vadd.f32 %v2859_v44, %v6020_v19  ;;  %v2861_v24 = vpop.f32.mrb[149].mxu1 }
 0x434   : > { %v2862_v50 = vpop.f32.mrb[150].mxu1 }
 0x435   : > { %v6147_v59 = vadd.f32 %v2862_v50, %v6022_v27  ;;  %v2864_v53 = vpop.f32.mrb[151].mxu1 }
 0x43a   : > { %v2867_v12 = vpop.f32.mrb[152].mxu1 }
 0x43b   : > { %v6153_v25 = vadd.f32 %v2867_v12, %v6033_v31  ;;  %v2869_v33 = vpop.f32.mrb[153].mxu1 }
 0x43c   : > { %v2870_v37 = vpop.f32.mrb[154].mxu1 }
 0x43d   : > { %v6156_v19 = vadd.f32 %v2870_v37, %v6035_v45  ;;  %v2872_v18 = vpop.f32.mrb[155].mxu1 }
 0x442   : > { %v2875_v54 = vpop.f32.mrb[156].mxu1 }
 0x443   : > { %v6159_v27 = vadd.f32 %v2875_v54, %v6040_v28  ;;  %v2877_v10 = vpop.f32.mrb[157].mxu1 }
 0x444   : > { %v2878_v14 = vpop.f32.mrb[158].mxu1 }
 0x445   : > { %v6162_v63 = vadd.f32 %v2878_v14, %v6042_v23  ;;  %v2880_v56 = vpop.f32.mrb[159].mxu1 }
 0x44a   : > { %v2883_v52 = vpop.f32.mrb[160].mxu1 }
 0x44b   : > { %v6165_v31 = vadd.f32 %v2883_v52, %v6062_v39  ;;  %v2885_v42 = vpop.f32.mrb[161].mxu1  ;;  %v6179_v39 = vld [vmem:[%s6353_s4] ss:$0 sm:$0xff] }
 0x44c   : > { %v2886_v29 = vpop.f32.mrb[162].mxu1 }
 0x44d   : > { %v6168_v45 = vadd.f32 %v2886_v29, %v6067_v60  ;;  %v2888_v6 = vpop.f32.mrb[163].mxu1 }
 0x452   : > { %v2891_v34 = vpop.f32.mrb[164].mxu1 }
 0x453   : > { %v6171_v28 = vadd.f32 %v2891_v34, %v6075_v13  ;;  %v2893_v57 = vpop.f32.mrb[165].mxu1 }
 0x454   : > { %v2894_v48 = vpop.f32.mrb[166].mxu1 }
 0x455   : > { %v6174_v23 = vadd.f32 %v2894_v48, %v6080_v32  ;;  %v2896_v21 = vpop.f32.mrb[167].mxu1 }
 0x45a   : > { %v3051_v36 = vpop.f32.mrb[168].mxu1 }
 0x45b   : > { %v3162_v60 = vadd.f32 %v3051_v36, %v6089_v30  ;;  %v3053_v2 = vpop.f32.mrb[169].mxu1 }
 0x45c   : > { %v3054_v58 = vpop.f32.mrb[170].mxu1 }
 0x45d   : > { %v3197_v22 = vadd.f32 %v6179_v39, %v3162_v60  ;;  %v3163_v13 = vadd.f32 %v3054_v58, %v6092_v11  ;;  %v3056_v15 = vpop.f32.mrb[171].mxu1 }
 0x45f   : > { %v3198_v43 = vadd.f32 %v6179_v39, %v3163_v13  ;;  %v3225_v32 = vmax.f32 %v3197_v22, 0.0 }
 0x461   : > { %v3226_v46 = vmax.f32 %v3198_v43, 0.0 }
 0x462   : > { %v3059_v1 = vpop.f32.mrb[172].mxu1 }
 0x463   : > { %v3253_v8 = vpack.c.bf16 %v3226_v46, %v3225_v32  ;;  %v3164_v51 = vadd.f32 %v3059_v1, %v6096_v17  ;;  %v3061_v44 = vpop.f32.mrb[173].mxu1  ;;  %v4950_v17 = vld [vmem:[%s6354_s5 + $0x8] sm:$0xff]  }
 0x464   : > { %v3062_v24 = vpop.f32.mrb[174].mxu1 }
 0x465   : > { %v3199_v30 = vadd.f32 %v6179_v39, %v3164_v51  ;;  %v3165_v50 = vadd.f32 %v3062_v24, %v6099_v35  ;;  %v3064_v53 = vpop.f32.mrb[175].mxu1  ;;  %4456 = vmatprep.mubr.msk.bf16.mxu1 %vm3338_vm3, %v3253_v8 }
 0x467   : > { %v3200_v11 = vadd.f32 %v6179_v39, %v3165_v50  ;;  %v3227_v12 = vmax.f32 %v3199_v30, 0.0 }
 0x469   : > { %v3228_v33 = vmax.f32 %v3200_v11, 0.0 }
 0x46a   : > { %v3067_v37 = vpop.f32.mrb[176].mxu1 }
 0x46b   : > { %v3254_v18 = vpack.c.bf16 %v3228_v33, %v3227_v12  ;;  %v3166_v54 = vadd.f32 %v3067_v37, %v6102_v7  ;;  %v3069_v10 = vpop.f32.mrb[177].mxu1  ;;  %v4951_v7 = vld [vmem:[%s6354_s5 + $0x10] sm:$0xff]  }
 0x46c   : > { %v3070_v14 = vpop.f32.mrb[178].mxu1 }
 0x46d   : > { %v3201_v56 = vadd.f32 %v6179_v39, %v3166_v54  ;;  %v3167_v35 = vadd.f32 %v3070_v14, %v6105_v5  ;;  %v3072_v52 = vpop.f32.mrb[179].mxu1  ;;  %4457 = vmatmul.mubr.msk.bf16.vlgmr.msra.gmra.mrb[224].mxu1 %vm3338_vm3, %v3254_v18 }
 0x46e   : > { %4473 = vmatpush3.bf16.msra.mxu1 %v4949_v9  ;;  %v4952_v9 = vld [vmem:[%s6354_s5 + $0x18] sm:$0xff]  }
 0x46f   : > { %v3202_v42 = vadd.f32 %v6179_v39, %v3167_v35  ;;  %4474 = vmatprep.subr.bf16.mxu1 %v4950_v17  ;;  %v3229_v29 = vmax.f32 %v3201_v56, 0.0 }
 0x471   : > { %v3230_v6 = vmax.f32 %v3202_v42, 0.0 }
 0x472   : > { %v3075_v34 = vpop.f32.mrb[180].mxu1  ;;  %4475 = vmatpush3.bf16.msra.mxu1 %v4950_v17 }
 0x473   : > { %v6201_v57 = vpack.c.bf16 %v3230_v6, %v3229_v29  ;;  %v3168_v48 = vadd.f32 %v3075_v34, %v6108_v49  ;;  %v3077_v5 = vpop.f32.mrb[181].mxu1  ;;  %4476 = vmatprep.subr.bf16.mxu1 %v4951_v7  ;;  %v4953_v49 = vld [vmem:[%s6354_s5 + $0x20] sm:$0xff]  }
 0x474   : > { %v3078_v21 = vpop.f32.mrb[182].mxu1 }
 0x475   : > { %v3203_v36 = vadd.f32 %v6179_v39, %v3168_v48  ;;  %v3169_v60 = vadd.f32 %v3078_v21, %v6111_v0  ;;  %v3080_v2 = vpop.f32.mrb[183].mxu1  ;;  %v4954_v0 = vld [vmem:[%s6354_s5 + $0x28] sm:$0xff]  }
 0x476   : > { %4477 = vmatpush3.bf16.msra.mxu1 %v4951_v7 }
 0x477   : > { %v3204_v58 = vadd.f32 %v6179_v39, %v3169_v60  ;;  %4478 = vmatprep.subr.bf16.mxu1 %v4952_v9  ;;  %v3231_v22 = vmax.f32 %v3203_v36, 0.0 }
 0x479   : > { %v3232_v13 = vmax.f32 %v3204_v58, 0.0 }
 0x47a   : > { %v3083_v15 = vpop.f32.mrb[184].mxu1  ;;  %4479 = vmatpush3.bf16.msra.mxu1 %v4952_v9 }
 0x47b   : > { %v6213_v43 = vpack.c.bf16 %v3232_v13, %v3231_v22  ;;  %v3170_v32 = vadd.f32 %v3083_v15, %v6114_v40  ;;  %v3085_v46 = vpop.f32.mrb[185].mxu1  ;;  %4480 = vmatprep.subr.bf16.mxu1 %v4953_v49  ;;  %v4955_v40 = vld [vmem:[%s6354_s5 + $0x30] sm:$0xff]  }
 0x47c   : > { %v3086_v1 = vpop.f32.mrb[186].mxu1 }
 0x47d   : > { %v3205_v8 = vadd.f32 %v6179_v39, %v3170_v32  ;;  %v3171_v51 = vadd.f32 %v3086_v1, %v6117_v62  ;;  %v3088_v44 = vpop.f32.mrb[187].mxu1  ;;  %v6229_v62 = vld [vmem:[%s6354_s5 + $0x70] sm:$0xff]  }
 0x47e   : > { %4481 = vmatpush3.bf16.msra.mxu1 %v4953_v49 }
 0x47f   : > { %v3206_v24 = vadd.f32 %v6179_v39, %v3171_v51  ;;  %4482 = vmatprep.subr.bf16.mxu1 %v4954_v0  ;;  %v3233_v30 = vmax.f32 %v3205_v8, 0.0 }
 0x481   : > { %v3234_v50 = vmax.f32 %v3206_v24, 0.0 }
 0x482   : > { %v3091_v53 = vpop.f32.mrb[188].mxu1  ;;  %4483 = vmatpush3.bf16.msra.mxu1 %v4954_v0 }
 0x483   : > { %v3257_v11 = vpack.c.bf16 %v3234_v50, %v3233_v30  ;;  %v3172_v12 = vadd.f32 %v3091_v53, %v6120_v3  ;;  %v3093_v33 = vpop.f32.mrb[189].mxu1  ;;  %4484 = vmatprep.subr.bf16.mxu1 %v4955_v40 }
 0x484   : > { %v3094_v37 = vpop.f32.mrb[190].mxu1 }
 0x485   : > { %v3207_v18 = vadd.f32 %v6179_v39, %v3172_v12  ;;  %v3173_v54 = vadd.f32 %v3094_v37, %v6123_v55  ;;  %v3096_v10 = vpop.f32.mrb[191].mxu1  ;;  %4460 = vmatprep.mubr.msk.bf16.mxu1 %vm3338_vm3, %v3257_v11 }
 0x486   : > { %4485 = vmatpush3.bf16.msra.mxu1 %v4955_v40 }
 0x487   : > { %v3208_v17 = vadd.f32 %v6179_v39, %v3173_v54  ;;  %4502 = vmatprep.subr.bf16.mxu1 %v6229_v62  ;;  %v3235_v3 = vmax.f32 %v3207_v18, 0.0 }
 0x489   : > { %v3236_v14 = vmax.f32 %v3208_v17, 0.0 }
 0x48a   : > { %v3099_v56 = vpop.f32.mrb[192].mxu1 }
 0x48b   : > { %v3258_v35 = vpack.c.bf16 %v3236_v14, %v3235_v3  ;;  %v3174_v52 = vadd.f32 %v3099_v56, %v6126_v16  ;;  %v3101_v42 = vpop.f32.mrb[193].mxu1 }
 0x48c   : > { %v3102_v7 = vpop.f32.mrb[194].mxu1 }
 0x48d   : > { %v3209_v29 = vadd.f32 %v6179_v39, %v3174_v52  ;;  %v3175_v55 = vadd.f32 %v3102_v7, %v6129_v20  ;;  %v3104_v6 = vpop.f32.mrb[195].mxu1  ;;  %4461 = vmatmul.mubr.msk.bf16.gmra.mrb[228].mxu1 %vm3338_vm3, %v3258_v35 }
 0x48f   : > { %v3210_v34 = vadd.f32 %v6179_v39, %v3175_v55  ;;  %v3237_v48 = vmax.f32 %v3209_v29, 0.0 }
 0x491   : > { %v3238_v5 = vmax.f32 %v3210_v34, 0.0 }
 0x492   : > { %v3107_v9 = vpop.f32.mrb[196].mxu1 }
 0x493   : > { %v6241_v21 = vpack.c.bf16 %v3238_v5, %v3237_v48  ;;  %v3176_v36 = vadd.f32 %v3107_v9, %v6132_v61  ;;  %v3109_v60 = vpop.f32.mrb[197].mxu1 }
 0x494   : > { %v3110_v16 = vpop.f32.mrb[198].mxu1 }
 0x495   : > { %v3211_v2 = vadd.f32 %v6179_v39, %v3176_v36  ;;  %v3177_v58 = vadd.f32 %v3110_v16, %v6135_v26  ;;  %v3112_v49 = vpop.f32.mrb[199].mxu1 }
 0x497   : > { %v3212_v20 = vadd.f32 %v6179_v39, %v3177_v58  ;;  %v3239_v22 = vmax.f32 %v3211_v2, 0.0 }
 0x499   : > { %v3240_v13 = vmax.f32 %v3212_v20, 0.0 }
 0x49a   : > { %v3115_v15 = vpop.f32.mrb[200].mxu1 }
 0x49b   : > { %v6247_v32 = vpack.c.bf16 %v3240_v13, %v3239_v22  ;;  %v3178_v46 = vadd.f32 %v3115_v15, %v6138_v4  ;;  %v3117_v0 = vpop.f32.mrb[201].mxu1 }
 0x49c   : > { %v3118_v1 = vpop.f32.mrb[202].mxu1 }
 0x49d   : > { %v3213_v61 = vadd.f32 %v6179_v39, %v3178_v46  ;;  %v3179_v8 = vadd.f32 %v3118_v1, %v6141_v47  ;;  %v3120_v51 = vpop.f32.mrb[203].mxu1 }
 0x49f   : > { %v3214_v44 = vadd.f32 %v6179_v39, %v3179_v8  ;;  %v3241_v26 = vmax.f32 %v3213_v61, 0.0 }
 0x4a1   : > { %v3242_v24 = vmax.f32 %v3214_v44, 0.0 }
 0x4a2   : > { %v3123_v40 = vpop.f32.mrb[204].mxu1 }
 0x4a3   : > { %v3261_v30 = vpack.c.bf16 %v3242_v24, %v3241_v26  ;;  %v3180_v50 = vadd.f32 %v3123_v40, %v6144_v38  ;;  %v3125_v53 = vpop.f32.mrb[205].mxu1 }
 0x4a4   : > { %v3126_v11 = vpop.f32.mrb[206].mxu1  ;;  %v3843_v53 = vld [vmem:[%s6356_s7 + $0x18] sm:$0xff] }
 0x4a5   : > { %v3215_v12 = vadd.f32 %v6179_v39, %v3180_v50  ;;  %v3181_v4 = vadd.f32 %v3126_v11, %v6147_v59  ;;  %v3128_v33 = vpop.f32.mrb[207].mxu1  ;;  %4464 = vmatprep.mubr.msk.bf16.mxu1 %vm3338_vm3, %v3261_v30  ;;  %v4961_v30 = vld [vmem:[%s6354_s5 + $0x98] sm:$0xff]   ;;  %v4962_v50 = vld [vmem:[%s6354_s5 + $0xa0] sm:$0xff]  }
 0x4a6   : > { %v3844_v11 = vld [vmem:[%s6356_s7 + $0x20] sm:$0xff] }
 0x4a7   : > { %v3216_v47 = vadd.f32 %v6179_v39, %v3181_v4  ;;  %v3243_v37 = vmax.f32 %v3215_v12, 0.0 }
 0x4a9   : > { %v3244_v18 = vmax.f32 %v3216_v47, 0.0 }
 0x4aa   : > { %v3131_v54 = vpop.f32.mrb[208].mxu1 }
 0x4ab   : > { %v3262_v10 = vpack.c.bf16 %v3244_v18, %v3243_v37  ;;  %v3182_v17 = vadd.f32 %v3131_v54, %v6153_v25  ;;  %v3133_v3 = vpop.f32.mrb[209].mxu1  ;;  %v4381_v37 = vld [vmem:[%s6355_s6] ss:$0 sm:$0xff] }
 0x4ac   : > { %v3134_v14 = vpop.f32.mrb[210].mxu1 }
 0x4ad   : > { %v3217_v38 = vadd.f32 %v6179_v39, %v3182_v17  ;;  %v3183_v56 = vadd.f32 %v3134_v14, %v6156_v19  ;;  %v3136_v35 = vpop.f32.mrb[211].mxu1  ;;  %4465 = vmatmul.mubr.msk.bf16.gmra.mrb[232].mxu1 %vm3338_vm3, %v3262_v10 }
 0x4af   : > { %v3218_v59 = vadd.f32 %v6179_v39, %v3183_v56  ;;  %v3245_v52 = vmax.f32 %v3217_v38, 0.0 }
 0x4b1   : > { %v3246_v42 = vmax.f32 %v3218_v59, 0.0 }
 0x4b2   : > { %v3139_v7 = vpop.f32.mrb[212].mxu1 }
 0x4b3   : > { %v6263_v29 = vpack.c.bf16 %v3246_v42, %v3245_v52  ;;  %v3184_v55 = vadd.f32 %v3139_v7, %v6159_v27  ;;  %v3141_v6 = vpop.f32.mrb[213].mxu1 }
 0x4b4   : > { %v3142_v25 = vpop.f32.mrb[214].mxu1 }
 0x4b5   : > { %v3219_v34 = vadd.f32 %v6179_v39, %v3184_v55  ;;  %v3185_v48 = vadd.f32 %v3142_v25, %v6162_v63  ;;  %v3144_v5 = vpop.f32.mrb[215].mxu1 }
 0x4b7   : > { %v3220_v19 = vadd.f32 %v6179_v39, %v3185_v48  ;;  %v3247_v9 = vmax.f32 %v3219_v34, 0.0 }
 0x4b9   : > { %v3248_v36 = vmax.f32 %v3220_v19, 0.0 }
 0x4ba   : > { %v3147_v60 = vpop.f32.mrb[216].mxu1 }
 0x4bb   : > { %v3264_v16 = vpack.c.bf16 %v3248_v36, %v3247_v9  ;;  %v3186_v2 = vadd.f32 %v3147_v60, %v6165_v31  ;;  %v3149_v58 = vpop.f32.mrb[217].mxu1 }
 0x4bc   : > { %v3150_v49 = vpop.f32.mrb[218].mxu1 }
 0x4bd   : > { %v3221_v20 = vadd.f32 %v6179_v39, %v3186_v2  ;;  %v3187_v27 = vadd.f32 %v3150_v49, %v6168_v45  ;;  %v3152_v22 = vpop.f32.mrb[219].mxu1 }
 0x4bf   : > { %v3222_v13 = vadd.f32 %v6179_v39, %v3187_v27  ;;  %v3249_v15 = vmax.f32 %v3221_v20, 0.0 }
 0x4c1   : > { %v3250_v63 = vmax.f32 %v3222_v13, 0.0 }
 0x4c2   : > { %v3155_v46 = vpop.f32.mrb[220].mxu1 }
 0x4c3   : > { %v3265_v0 = vpack.c.bf16 %v3250_v63, %v3249_v15  ;;  %v3188_v1 = vadd.f32 %v3155_v46, %v6171_v28  ;;  %v3157_v61 = vpop.f32.mrb[221].mxu1  ;;  %v4957_v28 = vld [vmem:[%s6354_s5 + $0x78] sm:$0xff]  }
 0x4c4   : > { %v3158_v8 = vpop.f32.mrb[222].mxu1 }
 0x4c5   : > { %v3223_v51 = vadd.f32 %v6179_v39, %v3188_v1  ;;  %v3189_v31 = vadd.f32 %v3158_v8, %v6174_v23  ;;  %v3160_v44 = vpop.f32.mrb[223].mxu1  ;;  %4468 = vmatprep.mubr.msk.bf16.mxu1 %vm3338_vm3, %v3265_v0  ;;  %v4958_v23 = vld [vmem:[%s6354_s5 + $0x80] sm:$0xff]  }
 0x4c7   : > { %v3224_v45 = vadd.f32 %v6179_v39, %v3189_v31  ;;  %v3251_v26 = vmax.f32 %v3223_v51, 0.0  ;;  %v4959_v39 = vld [vmem:[%s6354_s5 + $0x88] sm:$0xff]  }
 0x4c9   : > { %v3252_v24 = vmax.f32 %v3224_v45, 0.0 }
 0x4cb   : > { %v3266_v40 = vpack.c.bf16 %v3252_v24, %v3251_v26 }
 0x4cd   : > { %4469 = vmatmul.mubr.msk.bf16.gmra.mrb[236].mxu1 %vm3338_vm3, %v3266_v40 }
 0x4ce   : > { %4486 = vmatprep.mubr.bf16.mxu1 %v6406_v41 }
 0x4d5   : > { %4487 = vmatmul.mubr.bf16.vlgmr.msra.gmra.mrb[224].mxu1 %v6406_v41 }
 0x4d6   : > { %4490 = vmatprep.mubr.msk.bf16.mxu1 %vm3338_vm3, %v6201_v57  ;;  %4503 = vmatpush3.bf16.msra.mxu1 %v6229_v62  ;;  %v4960_v62 = vld [vmem:[%s6354_s5 + $0x90] sm:$0xff]  }
 0x4d7   : > { %4504 = vmatprep.subr.bf16.mxu1 %v4957_v28 }
 0x4da   : > { %4505 = vmatpush3.bf16.msra.mxu1 %v4957_v28 }
 0x4db   : > { %4506 = vmatprep.subr.bf16.mxu1 %v4958_v23 }
 0x4dd   : > { %4491 = vmatmul.mubr.msk.bf16.gmra.mrb[228].mxu1 %vm3338_vm3, %v6213_v43 }
 0x4de   : > { %4494 = vmatprep.mubr.msk.bf16.mxu1 %vm3338_vm3, %v6241_v21  ;;  %4507 = vmatpush3.bf16.msra.mxu1 %v4958_v23 }
 0x4df   : > { %4508 = vmatprep.subr.bf16.mxu1 %v4959_v39 }
 0x4e2   : > { %4509 = vmatpush3.bf16.msra.mxu1 %v4959_v39 }
 0x4e3   : > { %4510 = vmatprep.subr.bf16.mxu1 %v4960_v62 }
 0x4e5   : > { %4495 = vmatmul.mubr.msk.bf16.gmra.mrb[232].mxu1 %vm3338_vm3, %v6247_v32 }
 0x4e6   : > { %4498 = vmatprep.mubr.msk.bf16.mxu1 %vm3338_vm3, %v6263_v29  ;;  %4511 = vmatpush3.bf16.msra.mxu1 %v4960_v62 }
 0x4e7   : > { %4512 = vmatprep.subr.bf16.mxu1 %v4961_v30 }
 0x4ea   : > { %4513 = vmatpush3.bf16.msra.mxu1 %v4961_v30 }
 0x4eb   : > { %4514 = vmatprep.subr.bf16.mxu1 %v4962_v50 }
 0x4ed   : > { %4499 = vmatmul.mubr.msk.bf16.gmra.mrb[236].mxu1 %vm3338_vm3, %v3264_v16 }
 0x4ee   : > { %4516 = vmatprep.mubr.msk.bf16.mxu1 %vm3338_vm3, %v6201_v57  ;;  %4515 = vmatpush3.bf16.msra.mxu1 %v4962_v50  ;;  %v3840_v57 = vld [vmem:[%s6356_s7] sm:$0xff] }
 0x4f5   : > { %4517 = vmatmul.mubr.msk.bf16.vlgmr.msra.gmra.mrb[224].mxu1 %vm3338_vm3, %v6213_v43  ;;  %v3841_v43 = vld [vmem:[%s6356_s7 + $0x8] sm:$0xff] }
 0x4f6   : > { %4520 = vmatprep.mubr.msk.bf16.mxu1 %vm3338_vm3, %v6241_v21  ;;  %v4548_v21 = vpack.c.bf16 %v3841_v43, %v3840_v57 }
 0x4f8   : > { %4549 = vmatprep.subr.bf16.mxu1 %v4548_v21 }
 0x4f9   : > { %4551 = vmatpush3.bf16.msra.mxu1 %v4548_v21 }
 0x4fd   : > { %4521 = vmatmul.mubr.msk.bf16.gmra.mrb[228].mxu1 %vm3338_vm3, %v6247_v32  ;;  %v3842_v32 = vld [vmem:[%s6356_s7 + $0x10] sm:$0xff] }
 0x4fe   : > { %4524 = vmatprep.mubr.msk.bf16.mxu1 %vm3338_vm3, %v6263_v29 }
 0x505   : > { %4525 = vmatmul.mubr.msk.bf16.gmra.mrb[232].mxu1 %vm3338_vm3, %v3264_v16 }
 0x506   : > { %4528 = vmatprep.mubr.bf16.mxu1 %v6406_v41 }
 0x50d   : > { %4529 = vmatmul.mubr.bf16.gmra.mrb[236].mxu1 %v6406_v41  ;;  %v4552_v41 = vpack.c.bf16 %v3843_v53, %v3842_v32 }
 0x50f   : > { %4553 = vmatprep.subr.bf16.mxu1 %v4552_v41 }
 0x510   : > { %4555 = vmatpush3.bf16.msra.mxu1 %v4552_v41 }
 0x511   : > { %4540 = vmatprep.subr.mxu1 %v3844_v11 }
 0x514   : > { %4541 = vmatpush3.msra.mxu1 %v3844_v11 }
 0x5c8   : > { %v4518_v12 = vpop.f32.mrb[224].mxu1 }
 0x5c9   : > { %v3710_v4 = vpop.f32.mrb[225].mxu1  ;;  %v3798_v18 = vadd.f32 %v4518_v12, %v4381_v37 }
 0x5ca   : > { %v4519_v33 = vpop.f32.mrb[226].mxu1  ;;  %v3796_v54 = vadd.f32 %v4381_v37, %v3710_v4 }
 0x5cb   : > { %v3713_v47 = vpop.f32.mrb[227].mxu1  ;;  %v3799_v17 = vadd.f32 %v4519_v33, %v4381_v37  ;;  %v3814_v59 = vmax.f32 %v3798_v18, 0.0 }
 0x5cc   : > { %v3797_v38 = vadd.f32 %v4381_v37, %v3713_v47  ;;  %v3812_v29 = vmax.f32 %v3796_v54, 0.0 }
 0x5cd   : > { %v3815_v25 = vmax.f32 %v3799_v17, 0.0 }
 0x5ce   : > { %v3813_v5 = vmax.f32 %v3797_v38, 0.0 }
 0x5d0   : > { %v4522_v10 = vpop.f32.mrb[228].mxu1 }
 0x5d1   : > { %v3802_v3 = vadd.f32 %v4522_v10, %v4381_v37  ;;  %v3726_v14 = vpop.f32.mrb[229].mxu1 }
 0x5d2   : > { %v3800_v56 = vadd.f32 %v4381_v37, %v3726_v14  ;;  %v4523_v35 = vpop.f32.mrb[230].mxu1 }
 0x5d3   : > { %v3818_v52 = vmax.f32 %v3802_v3, 0.0  ;;  %v3803_v42 = vadd.f32 %v4523_v35, %v4381_v37  ;;  %v3729_v7 = vpop.f32.mrb[231].mxu1 }
 0x5d4   : > { %v3816_v55 = vmax.f32 %v3800_v56, 0.0  ;;  %v3801_v6 = vadd.f32 %v4381_v37, %v3729_v7 }
 0x5d5   : > { %v3830_v34 = vadd.f32 %v3818_v52, %v3814_v59  ;;  %v3819_v48 = vmax.f32 %v3803_v42, 0.0 }
 0x5d6   : > { %v3828_v19 = vadd.f32 %v3816_v55, %v3812_v29  ;;  %v3817_v9 = vmax.f32 %v3801_v6, 0.0 }
 0x5d7   : > { %v3831_v36 = vadd.f32 %v3819_v48, %v3815_v25 }
 0x5d8   : > { %v3829_v60 = vadd.f32 %v3817_v9, %v3813_v5  ;;  %v4526_v16 = vpop.f32.mrb[232].mxu1 }
 0x5d9   : > { %v3806_v2 = vadd.f32 %v4526_v16, %v4381_v37  ;;  %v3742_v58 = vpop.f32.mrb[233].mxu1 }
 0x5da   : > { %v3804_v49 = vadd.f32 %v4381_v37, %v3742_v58  ;;  %v4527_v20 = vpop.f32.mrb[234].mxu1 }
 0x5db   : > { %v3822_v27 = vmax.f32 %v3806_v2, 0.0  ;;  %v3807_v22 = vadd.f32 %v4527_v20, %v4381_v37  ;;  %v3745_v13 = vpop.f32.mrb[235].mxu1 }
 0x5dc   : > { %v3820_v15 = vmax.f32 %v3804_v49, 0.0  ;;  %v3805_v63 = vadd.f32 %v4381_v37, %v3745_v13 }
 0x5dd   : > { %v3834_v46 = vadd.f32 %v3830_v34, %v3822_v27  ;;  %v3823_v0 = vmax.f32 %v3807_v22, 0.0 }
 0x5de   : > { %v3832_v1 = vadd.f32 %v3828_v19, %v3820_v15  ;;  %v3821_v61 = vmax.f32 %v3805_v63, 0.0 }
 0x5df   : > { %v3835_v8 = vadd.f32 %v3831_v36, %v3823_v0 }
 0x5e0   : > { %v3833_v51 = vadd.f32 %v3829_v60, %v3821_v61  ;;  %v4530_v31 = vpop.f32.mrb[236].mxu1 }
 0x5e1   : > { %v3810_v44 = vadd.f32 %v4530_v31, %v4381_v37  ;;  %v3758_v45 = vpop.f32.mrb[237].mxu1 }
 0x5e2   : > { %v3808_v26 = vadd.f32 %v4381_v37, %v3758_v45  ;;  %v4531_v24 = vpop.f32.mrb[238].mxu1 }
 0x5e3   : > { %v3826_v40 = vmax.f32 %v3810_v44, 0.0  ;;  %v3811_v28 = vadd.f32 %v4531_v24, %v4381_v37  ;;  %v3761_v23 = vpop.f32.mrb[239].mxu1 }
 0x5e4   : > { %v3824_v39 = vmax.f32 %v3808_v26, 0.0  ;;  %v3809_v62 = vadd.f32 %v4381_v37, %v3761_v23 }
 0x5e5   : > { %v3838_v30 = vadd.f32 %v3834_v46, %v3826_v40  ;;  %v3827_v50 = vmax.f32 %v3811_v28, 0.0 }
 0x5e6   : > { %v3836_v57 = vadd.f32 %v3832_v1, %v3824_v39  ;;  %v3825_v43 = vmax.f32 %v3809_v62, 0.0 }
 0x5e7   : > { %v3839_v21 = vadd.f32 %v3835_v8, %v3827_v50 }
 0x5e8   : > { %v3837_v32 = vadd.f32 %v3833_v51, %v3825_v43  ;;  %4542 = vmatprep.mubr.msk.f32.mxu1 %vm3845_vm4, %v3836_v57 }
 0x5ea   : > { %4543 = vmatmul.mubr.msk.f32.vlgmr.msra.gmra.mrb[240].mxu1 %vm3845_vm4, %v3837_v32 }
 0x5eb   : > { %4545 = vmatprep.mubr.msk.f32.mxu1 %vm3845_vm4, %v3838_v30 }
 0x5ee   : > { %4546 = vmatmul.mubr.msk.f32.gmra.mrb[242].mxu1 %vm3845_vm4, %v3839_v21 }
 0x6bd   : > { %v4544_v53 = vpop.f32.mrb[240].mxu1 }
 0x6be   : > { %v3924_v41 = vpop.f32.mrb[241].mxu1  ;;  %3945 = vst.msk [vmem:[%s305_s23 + $0x8] sm:$0xff] %vm3943_vm5, %v4544_v53 }
 0x6bf   : > { %3944 = vst.msk [vmem:[%s305_s23] sm:$0xff] %vm3943_vm5, %v3924_v41 }
 0x6c1   : > { %v4547_v11 = vpop.f32.mrb[242].mxu1 }
 0x6c2   : > { %v3934_v12 = vpop.f32.mrb[243].mxu1  ;;  %3947 = vst.msk [vmem:[%s305_s23 + $0x18] sm:$0xff] %vm3943_vm5, %v4547_v11 }
 0x6c3   : > { %3946 = vst.msk [vmem:[%s305_s23 + $0x10] sm:$0xff] %vm3943_vm5, %v3934_v12 }
 0x6c4 PF: > { %s18_s27 = sadd.s32 1, %s4969_s27  }
 0x6c5   : > { %p15_p5 = scmp.ge.s32.totalorder %s18_s27, 4  }
 0x6c7   :  { %17 = sbr.rel (!%p15_p5) target bundleno = 1 (0x1), region = 88 }

</bundles_post_ra>
